<compile_context>
chip_gen: v6e
topology: v6e:2x2x1
jax: 0.10.0
libtpu: 0.0.40
codegen_flags: <defaults>
</compile_context>

<pallas_src>
import jax
import jax.numpy as jnp
from jax.experimental import pallas as pl
from jax.experimental.pallas import tpu as pltpu


def _round_up(x, m):
    return -(-x // m) * m


# ---------------------------------------------------------------------------
# Fused kernel: in-kernel one-hot gather (MXU) + Linear, h resident in VMEM.
# ---------------------------------------------------------------------------
def _fused_edge_score_kernel(src_ref, dst_ref, h_ref, w1_ref, w2_ref, b_ref,
                             out_ref):
    # src_ref/dst_ref: (tile, 1) int32 ; h_ref: (N, F) bf16 (resident)
    # w1_ref/w2_ref:   (F, C) bf16 (resident) ; b_ref: (1, C) f32
    tile = src_ref.shape[0]
    n = h_ref.shape[0]
    cd = h_ref.dtype

    node_ids = jax.lax.broadcasted_iota(jnp.int32, (tile, n), 1)
    oh_src = (node_ids == src_ref[...]).astype(cd)           # (tile, N)
    oh_dst = (node_ids == dst_ref[...]).astype(cd)           # (tile, N)

    # Exact row selection on the MXU, then back to compute dtype for the Linear.
    h_u = jnp.dot(oh_src, h_ref[...], preferred_element_type=jnp.float32).astype(cd)
    h_v = jnp.dot(oh_dst, h_ref[...], preferred_element_type=jnp.float32).astype(cd)

    acc = jnp.dot(h_u, w1_ref[...], preferred_element_type=jnp.float32)
    acc = acc + jnp.dot(h_v, w2_ref[...], preferred_element_type=jnp.float32)
    out_ref[...] = (acc + b_ref[...]).astype(out_ref.dtype)


# ---------------------------------------------------------------------------
# Fallback kernel (large N): pre-gathered [tile, 2F] block, fused Linear.
# ---------------------------------------------------------------------------
def _edge_linear_kernel(x_ref, w_ref, b_ref, out_ref):
    acc = jnp.dot(x_ref[...], w_ref[...], preferred_element_type=jnp.float32)
    out_ref[...] = (acc + b_ref[...]).astype(out_ref.dtype)


def mlp_predictor_forward(h, src, dst, W, b, *, edge_tile=8192,
                          compute_dtype=jnp.bfloat16,
                          out_dtype=jnp.bfloat16,
                          vmem_budget_bytes=28 * 1024 * 1024):
    """h: [N, F] node features; src/dst: [E] int32 edge endpoints;
    W: [C, 2F] Linear weight; b: [C] bias  ->  scores [E, C] (out_dtype)."""
    N, F = h.shape
    C, twoF = W.shape
    assert twoF == 2 * F
    E = src.shape[0]
    out_bytes = jnp.dtype(out_dtype).itemsize

    # Fused (resident-h, in-kernel one-hot gather) path only when the node
    # table and the per-tile one-hot temporaries are cheap.
    use_fused = (N * F * 2 <= 8 * 1024 * 1024) and (N <= 2048)

    # Tile sizing: don't exceed E (rounded up), keep sublane-aligned, and shrink
    # until the double-buffered pipeline + temporaries fit the VMEM budget
    # (conservative enough for v7x's 64 MiB; v5e/v6e have 128 MiB).
    tile = max(8, min(edge_tile, _round_up(E, 8)))
    tile = _round_up(tile, 8)

    def fused_footprint(t):
        idx = 2 * 2 * t * 4                              # src/dst blocks, 2 bufs
        out = 2 * t * C * out_bytes                      # output blocks, 2 bufs
        h_res = 2 * N * F * 2                            # resident h (bf16)
        w_res = 2 * (2 * F * C * 2 + C * 4)              # W halves + bias
        tmp = 2 * t * N * 2 + 2 * t * F * 4 + t * C * 4  # one-hots + gathered rows
        return idx + out + h_res + w_res + tmp

    def fallback_footprint(t):
        return (2 * t * twoF * 2 + 2 * t * C * out_bytes
                + 2 * (twoF * C * 2 + C * 4))

    footprint = fused_footprint if use_fused else fallback_footprint
    while tile > 512 and footprint(tile) > vmem_budget_bytes:
        tile = _round_up(max(8, tile // 2), 8)

    E_pad = _round_up(E, tile)
    grid = (E_pad // tile,)
    # 32 MiB floor is safe on every generation (v5e scoped default is 16 MiB);
    # scale up (capped) only if the chosen tiles actually need it.
    vmem_limit = int(min(96 * 1024 * 1024,
                         max(32 * 1024 * 1024, 2 * footprint(tile))))
    cparams = pltpu.CompilerParams(
        dimension_semantics=("parallel",),   # megacore / v7x 2-TC sharding
        vmem_limit_bytes=vmem_limit,
    )

    if use_fused:
        src_p = jnp.pad(src.astype(jnp.int32), (0, E_pad - E)).reshape(E_pad, 1)
        dst_p = jnp.pad(dst.astype(jnp.int32), (0, E_pad - E)).reshape(E_pad, 1)
        h_c = h.astype(compute_dtype)                  # (N, F), resident in VMEM
        w1 = W[:, :F].T.astype(compute_dtype)          # (F, C)
        w2 = W[:, F:].T.astype(compute_dtype)          # (F, C)
        b2 = b.reshape(1, C).astype(jnp.float32)       # bias added in f32

        out = pl.pallas_call(
            _fused_edge_score_kernel,
            out_shape=jax.ShapeDtypeStruct((E_pad, C), out_dtype),
            grid_spec=pltpu.PrefetchScalarGridSpec(
                num_scalar_prefetch=0,
                grid=grid,
                in_specs=[
                    pl.BlockSpec((tile, 1), lambda i: (i, 0)),   # src ids
                    pl.BlockSpec((tile, 1), lambda i: (i, 0)),   # dst ids
                    pl.BlockSpec((N, F), lambda i: (0, 0)),      # resident h
                    pl.BlockSpec((F, C), lambda i: (0, 0)),      # W[:, :F].T
                    pl.BlockSpec((F, C), lambda i: (0, 0)),      # W[:, F:].T
                    pl.BlockSpec((1, C), lambda i: (0, 0)),      # bias
                ],
                out_specs=pl.BlockSpec((tile, C), lambda i: (i, 0)),
            ),
            compiler_params=cparams,
        )(src_p, dst_p, h_c, w1, w2, b2)
        return out[:E]

    # ---- Fallback for large node tables (see TODO(synk) above) ----
    h_c = h.astype(compute_dtype)
    x = jnp.concatenate([jnp.take(h_c, src, axis=0),
                         jnp.take(h_c, dst, axis=0)], axis=1)     # [E, 2F]
    if E_pad != E:
        x = jnp.pad(x, ((0, E_pad - E), (0, 0)))
    Wt = W.T.astype(compute_dtype)                 # [2F, C]
    b2 = b.reshape(1, C).astype(jnp.float32)

    out = pl.pallas_call(
        _edge_linear_kernel,
        out_shape=jax.ShapeDtypeStruct((E_pad, C), out_dtype),
        grid_spec=pltpu.PrefetchScalarGridSpec(
            num_scalar_prefetch=0,
            grid=grid,
            in_specs=[
                pl.BlockSpec((tile, twoF), lambda i: (i, 0)),   # edge tile
                pl.BlockSpec((twoF, C), lambda i: (0, 0)),      # W.T (resident)
                pl.BlockSpec((1, C), lambda i: (0, 0)),         # bias (resident)
            ],
            out_specs=pl.BlockSpec((tile, C), lambda i: (i, 0)),
        ),
        compiler_params=cparams,
    )(x, Wt, b2)
    return out[:E]


if __name__ == "__main__":
    key = jax.random.PRNGKey(0)
    k_h, k_w, k_b, k_src, k_dst = jax.random.split(key, 5)

    # Small synthetic graph: 64 nodes, 32 features, 1000 edges, 8 output classes.
    # (E deliberately not a multiple of 8/tile to exercise the padding path.)
    N, F, E, C = 64, 32, 1000, 8
    h = jax.random.normal(k_h, (N, F), dtype=jnp.float32)
    src = jax.random.randint(k_src, (E,), 0, N, dtype=jnp.int32)
    dst = jax.random.randint(k_dst, (E,), 0, N, dtype=jnp.int32)

    # nn.Linear(in_features*2, out_classes) parameter shapes.
    W = jax.random.normal(k_w, (C, 2 * F), dtype=jnp.float32) * 0.05
    b = jax.random.normal(k_b, (C,), dtype=jnp.float32) * 0.05

    scores = mlp_predictor_forward(h, src, dst, W, b)
    scores = jax.block_until_ready(scores)

    # Pure-JAX f32 reference: W(cat([h_u, h_v], 1)).
    ref = jnp.concatenate([h[src], h[dst]], axis=1) @ W.T + b
    assert scores.shape == (E, C)
    # bf16 matmul operands + bf16 output -> loose tolerance vs. full-f32 ref.
    assert jnp.allclose(scores.astype(jnp.float32), ref, atol=5e-2, rtol=5e-2)

    print("KERNEL_OK")
</pallas_src>

<mosaic_0001>
module attributes {stable_mosaic.version = 11 : i64} {
  func.func @_fused_edge_score_kernel(%arg0: i32, %arg1: memref<1000x1xi32, #tpu.memory_space<vmem>>, %arg2: memref<1000x1xi32, #tpu.memory_space<vmem>>, %arg3: memref<64x32xbf16, #tpu.memory_space<vmem>>, %arg4: memref<32x8xbf16, #tpu.memory_space<vmem>>, %arg5: memref<32x8xbf16, #tpu.memory_space<vmem>>, %arg6: memref<1x8xf32, #tpu.memory_space<vmem>>, %arg7: memref<1000x8xbf16, #tpu.memory_space<vmem>>) attributes {dimension_semantics = [#tpu.dimension_semantics<parallel>], iteration_bounds = array<i64: 1>, scalar_prefetch = 0 : i64, scratch_operands = 0 : i64, tpu.core_type = #tpu.core_type<tc>, window_params = [{transform_indices = @transform_0, window_bounds = array<i64: 1000, 1>}, {transform_indices = @transform_1, window_bounds = array<i64: 1000, 1>}, {pipeline_mode = #tpu.pipeline_mode<synchronous>, transform_indices = @transform_2, window_bounds = array<i64: 64, 32>}, {pipeline_mode = #tpu.pipeline_mode<synchronous>, transform_indices = @transform_3, window_bounds = array<i64: 32, 8>}, {pipeline_mode = #tpu.pipeline_mode<synchronous>, transform_indices = @transform_4, window_bounds = array<i64: 32, 8>}, {pipeline_mode = #tpu.pipeline_mode<synchronous>, transform_indices = @transform_5, window_bounds = array<i64: 1, 8>}, {transform_indices = @transform_6, window_bounds = array<i64: 1000, 8>}]} {
    %0 = tpu.iota {dimensions = array<i32: 1>} : vector<1000x64xi32>
    %c0 = arith.constant 0 : index
    %c0_0 = arith.constant 0 : index
    %1 = vector.load %arg1[%c0, %c0_0] : memref<1000x1xi32, #tpu.memory_space<vmem>>, vector<1000x1xi32>
    %2 = vector.broadcast %1 : vector<1000x1xi32> to vector<1000x64xi32>
    %3 = arith.cmpi eq, %0, %2 : vector<1000x64xi32>
    %4 = arith.extui %3 : vector<1000x64xi1> to vector<1000x64xi32>
    %5 = arith.sitofp %4 : vector<1000x64xi32> to vector<1000x64xf32>
    %6 = arith.truncf %5 : vector<1000x64xf32> to vector<1000x64xbf16>
    %c0_1 = arith.constant 0 : index
    %c0_2 = arith.constant 0 : index
    %7 = vector.load %arg2[%c0_1, %c0_2] : memref<1000x1xi32, #tpu.memory_space<vmem>>, vector<1000x1xi32>
    %8 = vector.broadcast %7 : vector<1000x1xi32> to vector<1000x64xi32>
    %9 = arith.cmpi eq, %0, %8 : vector<1000x64xi32>
    %10 = arith.extui %9 : vector<1000x64xi1> to vector<1000x64xi32>
    %11 = arith.sitofp %10 : vector<1000x64xi32> to vector<1000x64xf32>
    %12 = arith.truncf %11 : vector<1000x64xf32> to vector<1000x64xbf16>
    %c0_3 = arith.constant 0 : index
    %c0_4 = arith.constant 0 : index
    %13 = vector.load %arg3[%c0_3, %c0_4] : memref<64x32xbf16, #tpu.memory_space<vmem>>, vector<64x32xbf16>
    %cst = arith.constant dense<0.000000e+00> : vector<1000x32xf32>
    %14 = tpu.matmul %6, %13, %cst {dimension_numbers = #tpu.dot_dimension_numbers<[1], [0], [0], [1], [0, 0, 1, 1], [], []>} : vector<1000x64xbf16>, vector<64x32xbf16>, vector<1000x32xf32> -> vector<1000x32xf32>
    %15 = arith.truncf %14 : vector<1000x32xf32> to vector<1000x32xbf16>
    %c0_5 = arith.constant 0 : index
    %c0_6 = arith.constant 0 : index
    %16 = vector.load %arg3[%c0_5, %c0_6] : memref<64x32xbf16, #tpu.memory_space<vmem>>, vector<64x32xbf16>
    %cst_7 = arith.constant dense<0.000000e+00> : vector<1000x32xf32>
    %17 = tpu.matmul %12, %16, %cst_7 {dimension_numbers = #tpu.dot_dimension_numbers<[1], [0], [0], [1], [0, 0, 1, 1], [], []>} : vector<1000x64xbf16>, vector<64x32xbf16>, vector<1000x32xf32> -> vector<1000x32xf32>
    %18 = arith.truncf %17 : vector<1000x32xf32> to vector<1000x32xbf16>
    %c0_8 = arith.constant 0 : index
    %c0_9 = arith.constant 0 : index
    %19 = vector.load %arg4[%c0_8, %c0_9] : memref<32x8xbf16, #tpu.memory_space<vmem>>, vector<32x8xbf16>
    %cst_10 = arith.constant dense<0.000000e+00> : vector<1000x8xf32>
    %20 = tpu.matmul %15, %19, %cst_10 {dimension_numbers = #tpu.dot_dimension_numbers<[1], [0], [0], [1], [0, 0, 1, 1], [], []>} : vector<1000x32xbf16>, vector<32x8xbf16>, vector<1000x8xf32> -> vector<1000x8xf32>
    %c0_11 = arith.constant 0 : index
    %c0_12 = arith.constant 0 : index
    %21 = vector.load %arg5[%c0_11, %c0_12] : memref<32x8xbf16, #tpu.memory_space<vmem>>, vector<32x8xbf16>
    %cst_13 = arith.constant dense<0.000000e+00> : vector<1000x8xf32>
    %22 = tpu.matmul %18, %21, %cst_13 {dimension_numbers = #tpu.dot_dimension_numbers<[1], [0], [0], [1], [0, 0, 1, 1], [], []>} : vector<1000x32xbf16>, vector<32x8xbf16>, vector<1000x8xf32> -> vector<1000x8xf32>
    %23 = arith.addf %20, %22 : vector<1000x8xf32>
    %c0_14 = arith.constant 0 : index
    %c0_15 = arith.constant 0 : index
    %24 = vector.load %arg6[%c0_14, %c0_15] : memref<1x8xf32, #tpu.memory_space<vmem>>, vector<1x8xf32>
    %25 = vector.broadcast %24 : vector<1x8xf32> to vector<1000x8xf32>
    %26 = arith.addf %23, %25 : vector<1000x8xf32>
    %27 = arith.truncf %26 : vector<1000x8xf32> to vector<1000x8xbf16>
    %c0_16 = arith.constant 0 : index
    %c0_17 = arith.constant 0 : index
    %28 = vector.load %arg7[%c0_16, %c0_17] : memref<1000x8xbf16, #tpu.memory_space<vmem>>, vector<1000x8xbf16>
    tpu.vector_store %arg7[%c0_16, %c0_17], %27 {strides = array<i32>} : memref<1000x8xbf16, #tpu.memory_space<vmem>>, vector<1000x8xbf16>,
    return
  }
  func.func @transform_0(%arg0: i32) -> (i32, i32) {
    %c0_i32 = arith.constant 0 : i32
    %c0_i32_0 = arith.constant 0 : i32
    return %arg0, %c0_i32 : i32, i32
  }
  func.func @transform_1(%arg0: i32) -> (i32, i32) {
    %c0_i32 = arith.constant 0 : i32
    %c0_i32_0 = arith.constant 0 : i32
    return %arg0, %c0_i32 : i32, i32
  }
  func.func @transform_2(%arg0: i32) -> (i32, i32) {
    %c0_i32 = arith.constant 0 : i32
    %c0_i32_0 = arith.constant 0 : i32
    %c0_i32_1 = arith.constant 0 : i32
    return %c0_i32, %c0_i32_0 : i32, i32
  }
  func.func @transform_3(%arg0: i32) -> (i32, i32) {
    %c0_i32 = arith.constant 0 : i32
    %c0_i32_0 = arith.constant 0 : i32
    %c0_i32_1 = arith.constant 0 : i32
    return %c0_i32, %c0_i32_0 : i32, i32
  }
  func.func @transform_4(%arg0: i32) -> (i32, i32) {
    %c0_i32 = arith.constant 0 : i32
    %c0_i32_0 = arith.constant 0 : i32
    %c0_i32_1 = arith.constant 0 : i32
    return %c0_i32, %c0_i32_0 : i32, i32
  }
  func.func @transform_5(%arg0: i32) -> (i32, i32) {
    %c0_i32 = arith.constant 0 : i32
    %c0_i32_0 = arith.constant 0 : i32
    %c0_i32_1 = arith.constant 0 : i32
    return %c0_i32, %c0_i32_0 : i32, i32
  }
  func.func @transform_6(%arg0: i32) -> (i32, i32) {
    %c0_i32 = arith.constant 0 : i32
    %c0_i32_0 = arith.constant 0 : i32
    return %arg0, %c0_i32 : i32, i32
  }
}

</mosaic_0001>

<bundles_post_ra>
// kernel: tpu_custom_call.1
= control target key start
LH: loop header
LB: loop body
LE: loop exit
PB: predicated region body
PF: predicated region fallthrough
CT: control target
= control target key end

     0   :  { %v7829_v0 = vmov 0   ;;  %v11682_v5 = vmov 0.0   ;;  %vm7831_vm0 = vmmov 0   ;;  %vm1934_vm5 = vcmask 523264   ;;  %s11675_s1 = inlined_call_operand.vmem [shape: s32[1000,1], index: 1, kind: input, shape index: {}]   ;;  %s11676_s0 = inlined_call_operand.vmem [shape: s32[1000,1], index: 0, kind: input, shape index: {}]   ;;  %s11677_s2 = inlined_call_operand.vmem [shape: bf16[64,32], index: 2, kind: input, shape index: {}]   ;;  %s11678_s3 = inlined_call_operand.vmem [shape: bf16[32,8], index: 3, kind: input, shape index: {}]   ;;  %s11679_s4 = inlined_call_operand.vmem [shape: bf16[32,8], index: 4, kind: input, shape index: {}]   ;;  %s11680_s5 = inlined_call_operand.vmem [shape: f32[1,8], index: 5, kind: input, shape index: {}]   ;;  %s11681_s6 = inlined_call_operand.vmem [shape: bf16[1000,8], index: 6, kind: output, shape index: {}]  }
   0x1   :  { %7818 = vset.pattern.permute.xlu1 %v7829_v0  ;;  %7817 = vset.pattern.permute.xlu0 %v7829_v0  ;;  %v964_v1 = vld [vmem:[%s11675_s1] sm:$0xff]  ;;  %v965_v3 = vld [vmem:[%s11675_s1 + $0x8] sm:$0xff]  ;;  %v29_v6 = vld [vmem:[%s11676_s0 + $0x18] sm:$0xff] }
   0x2   :  { %v26_v2 = vld [vmem:[%s11676_s0] sm:$0xff]  ;;  %1090 = vperm.xlu1 %7818, %v964_v1   ;;  %v27_v4 = vld [vmem:[%s11676_s0 + $0x8] sm:$0xff]  ;;  %6782 = vmatprep.subr.bf16.mxu0 %v11682_v5  ;;  %v28_v7 = vld [vmem:[%s11676_s0 + $0x10] sm:$0xff] }
   0x3   :  { %152 = vperm.xlu0 %7817, %v26_v2   ;;  %7042 = vmatprep.subr.bf16.mxu1 %v11682_v5  ;;  %v967_v8 = vld [vmem:[%s11675_s1 + $0x18] sm:$0xff]  ;;  %v966_v9 = vld [vmem:[%s11675_s1 + $0x10] sm:$0xff]  ;;  %v31_v10 = vld [vmem:[%s11676_s0 + $0x28] sm:$0xff] }
   0x4   :  { %6790 = vmatprep.mubr.msk.bf16.mxu0 %vm7831_vm0, %v11682_v5  ;;  %7050 = vmatprep.mubr.msk.bf16.mxu1 %vm7831_vm0, %v11682_v5  ;;  %v30_v11 = vld [vmem:[%s11676_s0 + $0x20] sm:$0xff]  ;;  %v969_v12 = vld [vmem:[%s11675_s1 + $0x28] sm:$0xff]  ;;  %v7819_v14 = vld [vmem:[%s11677_s2 + $0x18] sm:$0xff]  }
   0x5   :  { %v968_v13 = vld [vmem:[%s11675_s1 + $0x20] sm:$0xff]  ;;  %v33_v15 = vld [vmem:[%s11676_s0 + $0x38] sm:$0xff]  ;;  %v32_v16 = vld [vmem:[%s11676_s0 + $0x30] sm:$0xff]  ;;  %6783 = vmatpush3.bf16.msra.mxu0 %v7819_v14  ;;  %7043 = vmatpush3.bf16.msra.mxu1 %v7819_v14 }
   0x6   :  { %1093 = vperm.xlu1 %7818, %v965_v3   ;;  %v7820_v17 = vld [vmem:[%s11677_s2 + $0x10] sm:$0xff]   ;;  %6784 = vmatprep.subr.bf16.mxu0 %v11682_v5  ;;  %v971_v18 = vld [vmem:[%s11675_s1 + $0x38] sm:$0xff]  ;;  %v7821_v20 = vld [vmem:[%s11677_s2 + $0x8] sm:$0xff]  }
   0x7   :  { %155 = vperm.xlu0 %7817, %v27_v4   ;;  %7044 = vmatprep.subr.bf16.mxu1 %v11682_v5  ;;  %v970_v19 = vld [vmem:[%s11675_s1 + $0x30] sm:$0xff]  ;;  %v35_v21 = vld [vmem:[%s11676_s0 + $0x48] sm:$0xff]  ;;  %v34_v22 = vld [vmem:[%s11676_s0 + $0x40] sm:$0xff]  ;;  %v24_v4 = vlaneseq }
   0x8   :  { %v7822_v23 = vld [vmem:[%s11677_s2] sm:$0xff]   ;;  %v973_v24 = vld [vmem:[%s11675_s1 + $0x48] sm:$0xff]  ;;  %v37_v26 = vld [vmem:[%s11676_s0 + $0x58] sm:$0xff] }
   0x9   :  { %6785 = vmatpush3.bf16.msra.mxu0 %v7820_v17  ;;  %7045 = vmatpush3.bf16.msra.mxu1 %v7820_v17  ;;  %v972_v25 = vld [vmem:[%s11675_s1 + $0x40] sm:$0xff]  ;;  %v36_v27 = vld [vmem:[%s11676_s0 + $0x50] sm:$0xff]  ;;  %v975_v28 = vld [vmem:[%s11675_s1 + $0x58] sm:$0xff] }
   0xa   :  { %161 = vperm.xlu1 %7818, %v29_v6   ;;  %6786 = vmatprep.subr.bf16.mxu0 %v11682_v5  ;;  %v974_v29 = vld [vmem:[%s11675_s1 + $0x50] sm:$0xff]  ;;  %v39_v30 = vld [vmem:[%s11676_s0 + $0x68] sm:$0xff]  ;;  %v38_v31 = vld [vmem:[%s11676_s0 + $0x60] sm:$0xff] }
   0xb   :  { %158 = vperm.xlu0 %7817, %v28_v7   ;;  %7046 = vmatprep.subr.bf16.mxu1 %v11682_v5  ;;  %v977_v32 = vld [vmem:[%s11675_s1 + $0x68] sm:$0xff]  ;;  %v976_v33 = vld [vmem:[%s11675_s1 + $0x60] sm:$0xff]  ;;  %v41_v34 = vld [vmem:[%s11676_s0 + $0x78] sm:$0xff] }
   0xc   :  { %v40_v35 = vld [vmem:[%s11676_s0 + $0x70] sm:$0xff]  ;;  %v979_v36 = vld [vmem:[%s11675_s1 + $0x78] sm:$0xff]  ;;  %v43_v38 = vld [vmem:[%s11676_s0 + $0x88] sm:$0xff] }
   0xd   :  { %6787 = vmatpush3.bf16.msra.mxu0 %v7821_v20  ;;  %7047 = vmatpush3.bf16.msra.mxu1 %v7821_v20  ;;  %v978_v37 = vld [vmem:[%s11675_s1 + $0x70] sm:$0xff]  ;;  %v42_v39 = vld [vmem:[%s11676_s0 + $0x80] sm:$0xff]  ;;  %v981_v40 = vld [vmem:[%s11675_s1 + $0x88] sm:$0xff] }
   0xe   :  { %1099 = vperm.xlu1 %7818, %v967_v8   ;;  %6788 = vmatprep.subr.bf16.mxu0 %v11682_v5  ;;  %v980_v41 = vld [vmem:[%s11675_s1 + $0x80] sm:$0xff]  ;;  %v45_v42 = vld [vmem:[%s11676_s0 + $0x98] sm:$0xff]  ;;  %v44_v43 = vld [vmem:[%s11676_s0 + $0x90] sm:$0xff]  ;;  %v8085_v8 = vand.u32 127, %v24_v4 }
   0xf   :  { %1096 = vperm.xlu0 %7817, %v966_v9   ;;  %7048 = vmatprep.subr.bf16.mxu1 %v11682_v5  ;;  %v983_v44 = vld [vmem:[%s11675_s1 + $0x98] sm:$0xff]  ;;  %v982_v45 = vld [vmem:[%s11675_s1 + $0x90] sm:$0xff]  ;;  %v47_v46 = vld [vmem:[%s11676_s0 + $0xa8] sm:$0xff] }
  0x10   :  { %v46_v47 = vld [vmem:[%s11676_s0 + $0xa0] sm:$0xff]  ;;  %v985_v48 = vld [vmem:[%s11675_s1 + $0xa8] sm:$0xff]  ;;  %v49_v50 = vld [vmem:[%s11676_s0 + $0xb8] sm:$0xff] }
  0x11   :  { %6789 = vmatpush3.bf16.msra.mxu0 %v7822_v23  ;;  %7049 = vmatpush3.bf16.msra.mxu1 %v7822_v23  ;;  %v984_v49 = vld [vmem:[%s11675_s1 + $0xa0] sm:$0xff]  ;;  %v48_v51 = vld [vmem:[%s11676_s0 + $0xb0] sm:$0xff]  ;;  %v987_v52 = vld [vmem:[%s11675_s1 + $0xb8] sm:$0xff] }
  0x12   :  { %167 = vperm.xlu1 %7818, %v31_v10   ;;  %7302 = vmatprep.subr.bf16.mxu0 %v11682_v5  ;;  %v986_v53 = vld [vmem:[%s11675_s1 + $0xb0] sm:$0xff]  ;;  %v51_v54 = vld [vmem:[%s11676_s0 + $0xc8] sm:$0xff]  ;;  %v50_v55 = vld [vmem:[%s11676_s0 + $0xc0] sm:$0xff] }
  0x13   :  { %164 = vperm.xlu0 %7817, %v30_v11   ;;  %7558 = vmatprep.subr.bf16.mxu1 %v11682_v5  ;;  %v989_v56 = vld [vmem:[%s11675_s1 + $0xc8] sm:$0xff]  ;;  %v988_v57 = vld [vmem:[%s11675_s1 + $0xc0] sm:$0xff]  ;;  %v53_v58 = vld [vmem:[%s11676_s0 + $0xd8] sm:$0xff] }
  0x14   :  { %v52_v59 = vld [vmem:[%s11676_s0 + $0xd0] sm:$0xff]  ;;  %v991_v60 = vld [vmem:[%s11675_s1 + $0xd8] sm:$0xff]  ;;  %v55_v62 = vld [vmem:[%s11676_s0 + $0xe8] sm:$0xff] }
  0x15   :  { %v990_v61 = vld [vmem:[%s11675_s1 + $0xd0] sm:$0xff]  ;;  %v54_v63 = vld [vmem:[%s11676_s0 + $0xe0] sm:$0xff]  ;;  %v993_v0 = vld [vmem:[%s11675_s1 + $0xe8] sm:$0xff] }
  0x16   :  { %1105 = vperm.xlu1 %7818, %v969_v12   ;;  %v992_v1 = vld [vmem:[%s11675_s1 + $0xe0] sm:$0xff]  ;;  %v57_v2 = vld [vmem:[%s11676_s0 + $0xf8] sm:$0xff]  ;;  %v56_v3 = vld [vmem:[%s11676_s0 + $0xf0] sm:$0xff] }
  0x17   :  { %1102 = vperm.xlu0 %7817, %v968_v13   ;;  %v995_v6 = vld [vmem:[%s11675_s1 + $0xf8] sm:$0xff]  ;;  %v994_v7 = vld [vmem:[%s11675_s1 + $0xf0] sm:$0xff]  ;;  %v59_v11 = vld [vmem:[%s11676_s0 + $0x108] sm:$0xff] }
  0x18   :  { %v58_v12 = vld [vmem:[%s11676_s0 + $0x100] sm:$0xff]  ;;  %v997_v20 = vld [vmem:[%s11675_s1 + $0x108] sm:$0xff] }
  0x19   :  { %v996_v23 = vld [vmem:[%s11675_s1 + $0x100] sm:$0xff] }
  0x1a   :  { %173 = vperm.xlu1 %7818, %v33_v15  }
  0x1b   :  { %170 = vperm.xlu0 %7817, %v32_v16  }
  0x1e   :  { %1111 = vperm.xlu1 %7818, %v971_v18  }
  0x1f   :  { %1108 = vperm.xlu0 %7817, %v970_v19   ;;  %v7823_v19 = vld [vmem:[%s11678_s3 + $0x8] sm:$0xff]  }
  0x22   :  { %179 = vperm.xlu1 %7818, %v35_v21  }
  0x23   :  { %176 = vperm.xlu0 %7817, %v34_v22  }
  0x26   :  { %1117 = vperm.xlu1 %7818, %v973_v24  }
  0x27   :  { %1114 = vperm.xlu0 %7817, %v972_v25  }
  0x2a   :  { %185 = vperm.xlu1 %7818, %v37_v26   ;;  %v7824_v26 = vld [vmem:[%s11679_s4 + $0x8] sm:$0xff]  }
  0x2b   :  { %182 = vperm.xlu0 %7817, %v36_v27   ;;  %v61_v27 = vld [vmem:[%s11676_s0 + $0x118] sm:$0xff] }
  0x2e   :  { %1123 = vperm.xlu1 %7818, %v975_v28   ;;  %v60_v28 = vld [vmem:[%s11676_s0 + $0x110] sm:$0xff] }
  0x2f   :  { %1120 = vperm.xlu0 %7817, %v974_v29  }
  0x32   :  { %191 = vperm.xlu1 %7818, %v39_v30  }
  0x33   :  { %188 = vperm.xlu0 %7817, %v38_v31  }
  0x36   :  { %1129 = vperm.xlu1 %7818, %v977_v32  }
  0x37   :  { %1126 = vperm.xlu0 %7817, %v976_v33  }
  0x3a   :  { %197 = vperm.xlu1 %7818, %v41_v34  }
  0x3b   :  { %194 = vperm.xlu0 %7817, %v40_v35   ;;  %v999_v35 = vld [vmem:[%s11675_s1 + $0x118] sm:$0xff] }
  0x3e   :  { %1135 = vperm.xlu1 %7818, %v979_v36  }
  0x3f   :  { %1132 = vperm.xlu0 %7817, %v978_v37   ;;  %v998_v37 = vld [vmem:[%s11675_s1 + $0x110] sm:$0xff] }
  0x42   :  { %203 = vperm.xlu1 %7818, %v43_v38  }
  0x43   :  { %200 = vperm.xlu0 %7817, %v42_v39  }
  0x46   :  { %1141 = vperm.xlu1 %7818, %v981_v40  }
  0x47   :  { %1138 = vperm.xlu0 %7817, %v980_v41   ;;  %v63_v41 = vld [vmem:[%s11676_s0 + $0x128] sm:$0xff] }
  0x4a   :  { %209 = vperm.xlu1 %7818, %v45_v42   ;;  %v62_v42 = vld [vmem:[%s11676_s0 + $0x120] sm:$0xff] }
  0x4b   :  { %206 = vperm.xlu0 %7817, %v44_v43  }
  0x4e   :  { %1147 = vperm.xlu1 %7818, %v983_v44  }
  0x4f   :  { %1144 = vperm.xlu0 %7817, %v982_v45  }
  0x52   :  { %215 = vperm.xlu1 %7818, %v47_v46  }
  0x53   :  { %212 = vperm.xlu0 %7817, %v46_v47  }
  0x56   :  { %1153 = vperm.xlu1 %7818, %v985_v48  }
  0x57   :  { %1150 = vperm.xlu0 %7817, %v984_v49   ;;  %v1001_v49 = vld [vmem:[%s11675_s1 + $0x128] sm:$0xff] }
  0x5a   :  { %221 = vperm.xlu1 %7818, %v49_v50  }
  0x5b   :  { %218 = vperm.xlu0 %7817, %v48_v51   ;;  %v1000_v51 = vld [vmem:[%s11675_s1 + $0x120] sm:$0xff] }
  0x5e   :  { %1159 = vperm.xlu1 %7818, %v987_v52  }
  0x5f   :  { %1156 = vperm.xlu0 %7817, %v986_v53  }
  0x62   :  { %227 = vperm.xlu1 %7818, %v51_v54  }
  0x63   :  { %224 = vperm.xlu0 %7817, %v50_v55   ;;  %v65_v55 = vld [vmem:[%s11676_s0 + $0x138] sm:$0xff] }
  0x66   :  { %1165 = vperm.xlu1 %7818, %v989_v56   ;;  %v64_v56 = vld [vmem:[%s11676_s0 + $0x130] sm:$0xff] }
  0x67   :  { %1162 = vperm.xlu0 %7817, %v988_v57  }
  0x6a   :  { %233 = vperm.xlu1 %7818, %v53_v58  }
  0x6b   :  { %230 = vperm.xlu0 %7817, %v52_v59  }
  0x6e   :  { %1171 = vperm.xlu1 %7818, %v991_v60  }
  0x6f   :  { %1168 = vperm.xlu0 %7817, %v990_v61  }
  0x72   :  { %239 = vperm.xlu1 %7818, %v55_v62  }
  0x73   :  { %236 = vperm.xlu0 %7817, %v54_v63   ;;  %v1003_v63 = vld [vmem:[%s11675_s1 + $0x138] sm:$0xff] }
  0x76   :  { %1177 = vperm.xlu1 %7818, %v993_v0  }
  0x77   :  { %1174 = vperm.xlu0 %7817, %v992_v1   ;;  %v1002_v1 = vld [vmem:[%s11675_s1 + $0x130] sm:$0xff] }
  0x7a   :  { %245 = vperm.xlu1 %7818, %v57_v2  }
  0x7b   :  { %242 = vperm.xlu0 %7817, %v56_v3  }
  0x7d   :  { %v1091_v9 = vpop.permute.xlu1 %1090 }
  0x7e   :  { %v153_v10 = vpop.permute.xlu0 %152  ;;  %1183 = vperm.xlu1 %7818, %v995_v6   ;;  %vm1464_vm1 = vcmp.eq.s32.totalorder %v8085_v8, %v1091_v9  ;;  %v67_v6 = vld [vmem:[%s11676_s0 + $0x148] sm:$0xff] }
  0x7f   :  { %1180 = vperm.xlu0 %7817, %v994_v7   ;;  %vm526_vm2 = vcmp.eq.s32.totalorder %v8085_v8, %v153_v10  ;;  %v5882_v15 = vsel %vm1464_vm1, 1.0, %v11682_v5  ;;  %v66_v7 = vld [vmem:[%s11676_s0 + $0x140] sm:$0xff] }
  0x80   :  { %v5757_v16 = vsel %vm526_vm2, 1.0, %v11682_v5 }
  0x81   :  { %v1094_v13 = vpop.permute.xlu1 %1093 }
  0x82   :  { %v156_v14 = vpop.permute.xlu0 %155  ;;  %vm1465_vm3 = vcmp.eq.s32.totalorder %v8085_v8, %v1094_v13  ;;  %251 = vperm.xlu1 %7818, %v59_v11  }
  0x83   :  { %vm527_vm4 = vcmp.eq.s32.totalorder %v8085_v8, %v156_v14  ;;  %248 = vperm.xlu0 %7817, %v58_v12   ;;  %v5883_v17 = vsel %vm1465_vm3, 1.0, %v11682_v5 }
  0x84   :  { %v5758_v18 = vsel %vm527_vm4, 1.0, %v11682_v5  ;;  %v1839_v21 = vpack.c.bf16 %v5883_v17, %v5882_v15  ;;  %v1005_v15 = vld [vmem:[%s11675_s1 + $0x148] sm:$0xff]  ;;  %v1004_v17 = vld [vmem:[%s11675_s1 + $0x140] sm:$0xff] }
  0x85   :  { %v901_v22 = vpack.c.bf16 %v5758_v18, %v5757_v16  ;;  %v162_v24 = vpop.permute.xlu1 %161 }
  0x86   :  { %v159_v25 = vpop.permute.xlu0 %158  ;;  %7051 = vmatmul.mubr.msk.bf16.vlgmr.msra.gmra.mxu1 %vm1934_vm5, %v1839_v21  ;;  %1189 = vperm.xlu1 %7818, %v997_v20   ;;  %vm529_vm6 = vcmp.eq.s32.totalorder %v8085_v8, %v162_v24  ;;  %v69_v21 = vld [vmem:[%s11676_s0 + $0x158] sm:$0xff] }
  0x87   :  { %7559 = vmatpush3.bf16.msra.mxu1 %v7823_v19  ;;  %1186 = vperm.xlu0 %7817, %v996_v23   ;;  %vm528_vm7 = vcmp.eq.s32.totalorder %v8085_v8, %v159_v25  ;;  %v5760_v31 = vsel %vm529_vm6, 1.0, %v11682_v5 }
  0x88   :  { %6791 = vmatmul.mubr.msk.bf16.vlgmr.msra.gmra.mxu0 %vm1934_vm5, %v901_v22  ;;  %7054 = vmatprep.mubr.msk.bf16.mxu1 %vm7831_vm0, %v11682_v5  ;;  %v5759_v32 = vsel %vm528_vm7, 1.0, %v11682_v5  ;;  %v68_v22 = vld [vmem:[%s11676_s0 + $0x150] sm:$0xff] }
  0x89   :  { %7303 = vmatpush3.bf16.msra.mxu0 %v7824_v26  ;;  %v1100_v29 = vpop.permute.xlu1 %1099  ;;  %6794 = vmatprep.mubr.msk.bf16.mxu0 %vm7831_vm0, %v11682_v5  ;;  %v902_v40 = vpack.c.bf16 %v5760_v31, %v5759_v32  ;;  %v1006_v31 = vld [vmem:[%s11675_s1 + $0x150] sm:$0xff] }
  0x8a   :  { %v1097_v30 = vpop.permute.xlu0 %1096  ;;  %vm1467_vm8 = vcmp.eq.s32.totalorder %v8085_v8, %v1100_v29  ;;  %257 = vperm.xlu1 %7818, %v61_v27   ;;  %7560 = vmatprep.subr.bf16.mxu1 %v11682_v5  ;;  %v1007_v29 = vld [vmem:[%s11675_s1 + $0x158] sm:$0xff] }
  0x8b   :  { %vm1466_vm9 = vcmp.eq.s32.totalorder %v8085_v8, %v1097_v30  ;;  %v5885_v33 = vsel %vm1467_vm8, 1.0, %v11682_v5  ;;  %254 = vperm.xlu0 %7817, %v60_v28   ;;  %7304 = vmatprep.subr.bf16.mxu0 %v11682_v5 }
  0x8c   :  { %v5884_v34 = vsel %vm1466_vm9, 1.0, %v11682_v5 }
  0x8d   :  { %v1840_v36 = vpack.c.bf16 %v5885_v33, %v5884_v34  ;;  %v168_v38 = vpop.permute.xlu1 %167 }
  0x8e   :  { %v165_v39 = vpop.permute.xlu0 %164  ;;  %1195 = vperm.xlu1 %7818, %v999_v35   ;;  %vm531_vm10 = vcmp.eq.s32.totalorder %v8085_v8, %v168_v38  ;;  %v71_v35 = vld [vmem:[%s11676_s0 + $0x168] sm:$0xff] }
  0x8f   :  { %7055 = vmatmul.mubr.msk.bf16.gmra.mxu1 %vm1934_vm5, %v1840_v36  ;;  %1192 = vperm.xlu0 %7817, %v998_v37   ;;  %vm530_vm11 = vcmp.eq.s32.totalorder %v8085_v8, %v165_v39  ;;  %v5762_v45 = vsel %vm531_vm10, 1.0, %v11682_v5  ;;  %v70_v36 = vld [vmem:[%s11676_s0 + $0x160] sm:$0xff] }
  0x90   :  { %7058 = vmatprep.mubr.msk.bf16.mxu1 %vm7831_vm0, %v11682_v5  ;;  %6795 = vmatmul.mubr.msk.bf16.gmra.mxu0 %vm1934_vm5, %v902_v40  ;;  %v5761_v46 = vsel %vm530_vm11, 1.0, %v11682_v5 }
  0x91   :  { %v1106_v43 = vpop.permute.xlu1 %1105  ;;  %6798 = vmatprep.mubr.msk.bf16.mxu0 %vm7831_vm0, %v11682_v5  ;;  %v903_v54 = vpack.c.bf16 %v5762_v45, %v5761_v46  ;;  %v1008_v45 = vld [vmem:[%s11675_s1 + $0x160] sm:$0xff] }
  0x92   :  { %v1103_v44 = vpop.permute.xlu0 %1102  ;;  %vm1469_vm12 = vcmp.eq.s32.totalorder %v8085_v8, %v1106_v43  ;;  %263 = vperm.xlu1 %7818, %v63_v41   ;;  %v1009_v43 = vld [vmem:[%s11675_s1 + $0x168] sm:$0xff] }
  0x93   :  { %vm1468_vm13 = vcmp.eq.s32.totalorder %v8085_v8, %v1103_v44  ;;  %v5887_v47 = vsel %vm1469_vm12, 1.0, %v11682_v5  ;;  %260 = vperm.xlu0 %7817, %v62_v42  }
  0x94   :  { %v5886_v48 = vsel %vm1468_vm13, 1.0, %v11682_v5 }
  0x95   :  { %v1841_v50 = vpack.c.bf16 %v5887_v47, %v5886_v48  ;;  %v174_v52 = vpop.permute.xlu1 %173 }
  0x96   :  { %v171_v53 = vpop.permute.xlu0 %170  ;;  %1201 = vperm.xlu1 %7818, %v1001_v49   ;;  %vm533_vm14 = vcmp.eq.s32.totalorder %v8085_v8, %v174_v52  ;;  %v73_v49 = vld [vmem:[%s11676_s0 + $0x178] sm:$0xff] }
  0x97   :  { %7059 = vmatmul.mubr.msk.bf16.gmra.mxu1 %vm1934_vm5, %v1841_v50  ;;  %1198 = vperm.xlu0 %7817, %v1000_v51   ;;  %vm532_vm15 = vcmp.eq.s32.totalorder %v8085_v8, %v171_v53  ;;  %v5764_v59 = vsel %vm533_vm14, 1.0, %v11682_v5  ;;  %v72_v50 = vld [vmem:[%s11676_s0 + $0x170] sm:$0xff] }
  0x98   :  { %7062 = vmatprep.mubr.msk.bf16.mxu1 %vm7831_vm0, %v11682_v5  ;;  %6799 = vmatmul.mubr.msk.bf16.gmra.mxu0 %vm1934_vm5, %v903_v54  ;;  %v5763_v60 = vsel %vm532_vm15, 1.0, %v11682_v5 }
  0x99   :  { %v1112_v57 = vpop.permute.xlu1 %1111  ;;  %6802 = vmatprep.mubr.msk.bf16.mxu0 %vm7831_vm0, %v11682_v5  ;;  %v904_v4 = vpack.c.bf16 %v5764_v59, %v5763_v60  ;;  %v1010_v59 = vld [vmem:[%s11675_s1 + $0x170] sm:$0xff] }
  0x9a   :  { %v1109_v58 = vpop.permute.xlu0 %1108  ;;  %vm1471_vm1 = vcmp.eq.s32.totalorder %v8085_v8, %v1112_v57  ;;  %269 = vperm.xlu1 %7818, %v65_v55   ;;  %v1011_v57 = vld [vmem:[%s11675_s1 + $0x178] sm:$0xff] }
  0x9b   :  { %vm1470_vm2 = vcmp.eq.s32.totalorder %v8085_v8, %v1109_v58  ;;  %v5889_v61 = vsel %vm1471_vm1, 1.0, %v11682_v5  ;;  %266 = vperm.xlu0 %7817, %v64_v56  }
  0x9c   :  { %v5888_v62 = vsel %vm1470_vm2, 1.0, %v11682_v5 }
  0x9d   :  { %v1842_v0 = vpack.c.bf16 %v5889_v61, %v5888_v62  ;;  %v180_v2 = vpop.permute.xlu1 %179 }
  0x9e   :  { %v177_v3 = vpop.permute.xlu0 %176  ;;  %1207 = vperm.xlu1 %7818, %v1003_v63   ;;  %vm535_vm3 = vcmp.eq.s32.totalorder %v8085_v8, %v180_v2  ;;  %v75_v63 = vld [vmem:[%s11676_s0 + $0x188] sm:$0xff] }
  0x9f   :  { %7063 = vmatmul.mubr.msk.bf16.gmra.mxu1 %vm1934_vm5, %v1842_v0  ;;  %1204 = vperm.xlu0 %7817, %v1002_v1   ;;  %vm534_vm4 = vcmp.eq.s32.totalorder %v8085_v8, %v177_v3  ;;  %v5766_v11 = vsel %vm535_vm3, 1.0, %v11682_v5  ;;  %v74_v0 = vld [vmem:[%s11676_s0 + $0x180] sm:$0xff] }
  0xa0   :  { %7066 = vmatprep.mubr.msk.bf16.mxu1 %vm7831_vm0, %v11682_v5  ;;  %6803 = vmatmul.mubr.msk.bf16.gmra.mxu0 %vm1934_vm5, %v904_v4  ;;  %v5765_v12 = vsel %vm534_vm4, 1.0, %v11682_v5 }
  0xa1   :  { %v1118_v9 = vpop.permute.xlu1 %1117  ;;  %6806 = vmatprep.mubr.msk.bf16.mxu0 %vm7831_vm0, %v11682_v5  ;;  %v905_v20 = vpack.c.bf16 %v5766_v11, %v5765_v12  ;;  %v1012_v11 = vld [vmem:[%s11675_s1 + $0x180] sm:$0xff] }
  0xa2   :  { %v1115_v10 = vpop.permute.xlu0 %1114  ;;  %vm1473_vm6 = vcmp.eq.s32.totalorder %v8085_v8, %v1118_v9  ;;  %275 = vperm.xlu1 %7818, %v67_v6   ;;  %v1013_v9 = vld [vmem:[%s11675_s1 + $0x188] sm:$0xff] }
  0xa3   :  { %vm1472_vm7 = vcmp.eq.s32.totalorder %v8085_v8, %v1115_v10  ;;  %v5891_v13 = vsel %vm1473_vm6, 1.0, %v11682_v5  ;;  %272 = vperm.xlu0 %7817, %v66_v7  }
  0xa4   :  { %v5890_v14 = vsel %vm1472_vm7, 1.0, %v11682_v5 }
  0xa5   :  { %v1843_v16 = vpack.c.bf16 %v5891_v13, %v5890_v14  ;;  %v186_v18 = vpop.permute.xlu1 %185 }
  0xa6   :  { %v183_v19 = vpop.permute.xlu0 %182  ;;  %1213 = vperm.xlu1 %7818, %v1005_v15   ;;  %vm537_vm8 = vcmp.eq.s32.totalorder %v8085_v8, %v186_v18  ;;  %v77_v15 = vld [vmem:[%s11676_s0 + $0x198] sm:$0xff] }
  0xa7   :  { %7067 = vmatmul.mubr.msk.bf16.gmra.mxu1 %vm1934_vm5, %v1843_v16  ;;  %1210 = vperm.xlu0 %7817, %v1004_v17   ;;  %vm536_vm9 = vcmp.eq.s32.totalorder %v8085_v8, %v183_v19  ;;  %v5768_v25 = vsel %vm537_vm8, 1.0, %v11682_v5  ;;  %v76_v16 = vld [vmem:[%s11676_s0 + $0x190] sm:$0xff] }
  0xa8   :  { %7070 = vmatprep.mubr.msk.bf16.mxu1 %vm7831_vm0, %v11682_v5  ;;  %6807 = vmatmul.mubr.msk.bf16.gmra.mxu0 %vm1934_vm5, %v905_v20  ;;  %v5767_v26 = vsel %vm536_vm9, 1.0, %v11682_v5 }
  0xa9   :  { %v1124_v23 = vpop.permute.xlu1 %1123  ;;  %6810 = vmatprep.mubr.msk.bf16.mxu0 %vm7831_vm0, %v11682_v5  ;;  %v906_v34 = vpack.c.bf16 %v5768_v25, %v5767_v26  ;;  %v1014_v25 = vld [vmem:[%s11675_s1 + $0x190] sm:$0xff] }
  0xaa   :  { %v1121_v24 = vpop.permute.xlu0 %1120  ;;  %vm1475_vm10 = vcmp.eq.s32.totalorder %v8085_v8, %v1124_v23  ;;  %281 = vperm.xlu1 %7818, %v69_v21   ;;  %v1015_v23 = vld [vmem:[%s11675_s1 + $0x198] sm:$0xff] }
  0xab   :  { %vm1474_vm11 = vcmp.eq.s32.totalorder %v8085_v8, %v1121_v24  ;;  %v5893_v27 = vsel %vm1475_vm10, 1.0, %v11682_v5  ;;  %278 = vperm.xlu0 %7817, %v68_v22  }
  0xac   :  { %v5892_v28 = vsel %vm1474_vm11, 1.0, %v11682_v5 }
  0xad   :  { %v1844_v30 = vpack.c.bf16 %v5893_v27, %v5892_v28  ;;  %v192_v32 = vpop.permute.xlu1 %191 }
  0xae   :  { %v189_v33 = vpop.permute.xlu0 %188  ;;  %1219 = vperm.xlu1 %7818, %v1007_v29   ;;  %vm539_vm12 = vcmp.eq.s32.totalorder %v8085_v8, %v192_v32  ;;  %v79_v29 = vld [vmem:[%s11676_s0 + $0x1a8] sm:$0xff] }
  0xaf   :  { %7071 = vmatmul.mubr.msk.bf16.gmra.mxu1 %vm1934_vm5, %v1844_v30  ;;  %1216 = vperm.xlu0 %7817, %v1006_v31   ;;  %vm538_vm13 = vcmp.eq.s32.totalorder %v8085_v8, %v189_v33  ;;  %v5770_v39 = vsel %vm539_vm12, 1.0, %v11682_v5  ;;  %v78_v30 = vld [vmem:[%s11676_s0 + $0x1a0] sm:$0xff] }
  0xb0   :  { %7074 = vmatprep.mubr.msk.bf16.mxu1 %vm7831_vm0, %v11682_v5  ;;  %6811 = vmatmul.mubr.msk.bf16.gmra.mxu0 %vm1934_vm5, %v906_v34  ;;  %v5769_v40 = vsel %vm538_vm13, 1.0, %v11682_v5 }
  0xb1   :  { %v1130_v37 = vpop.permute.xlu1 %1129  ;;  %6814 = vmatprep.mubr.msk.bf16.mxu0 %vm7831_vm0, %v11682_v5  ;;  %v907_v48 = vpack.c.bf16 %v5770_v39, %v5769_v40  ;;  %v1016_v39 = vld [vmem:[%s11675_s1 + $0x1a0] sm:$0xff] }
  0xb2   :  { %v1127_v38 = vpop.permute.xlu0 %1126  ;;  %vm1477_vm14 = vcmp.eq.s32.totalorder %v8085_v8, %v1130_v37  ;;  %287 = vperm.xlu1 %7818, %v71_v35   ;;  %v1017_v37 = vld [vmem:[%s11675_s1 + $0x1a8] sm:$0xff] }
  0xb3   :  { %vm1476_vm15 = vcmp.eq.s32.totalorder %v8085_v8, %v1127_v38  ;;  %v5895_v41 = vsel %vm1477_vm14, 1.0, %v11682_v5  ;;  %284 = vperm.xlu0 %7817, %v70_v36  }
  0xb4   :  { %v5894_v42 = vsel %vm1476_vm15, 1.0, %v11682_v5 }
  0xb5   :  { %v1845_v44 = vpack.c.bf16 %v5895_v41, %v5894_v42  ;;  %v198_v46 = vpop.permute.xlu1 %197 }
  0xb6   :  { %v195_v47 = vpop.permute.xlu0 %194  ;;  %1225 = vperm.xlu1 %7818, %v1009_v43   ;;  %vm541_vm1 = vcmp.eq.s32.totalorder %v8085_v8, %v198_v46  ;;  %v81_v43 = vld [vmem:[%s11676_s0 + $0x1b8] sm:$0xff] }
  0xb7   :  { %7075 = vmatmul.mubr.msk.bf16.gmra.mxu1 %vm1934_vm5, %v1845_v44  ;;  %1222 = vperm.xlu0 %7817, %v1008_v45   ;;  %vm540_vm2 = vcmp.eq.s32.totalorder %v8085_v8, %v195_v47  ;;  %v5772_v53 = vsel %vm541_vm1, 1.0, %v11682_v5  ;;  %v80_v44 = vld [vmem:[%s11676_s0 + $0x1b0] sm:$0xff] }
  0xb8   :  { %7078 = vmatprep.mubr.msk.bf16.mxu1 %vm7831_vm0, %v11682_v5  ;;  %6815 = vmatmul.mubr.msk.bf16.gmra.mxu0 %vm1934_vm5, %v907_v48  ;;  %v5771_v54 = vsel %vm540_vm2, 1.0, %v11682_v5 }
  0xb9   :  { %v1136_v51 = vpop.permute.xlu1 %1135  ;;  %6818 = vmatprep.mubr.msk.bf16.mxu0 %vm7831_vm0, %v11682_v5  ;;  %v908_v62 = vpack.c.bf16 %v5772_v53, %v5771_v54  ;;  %v1018_v53 = vld [vmem:[%s11675_s1 + $0x1b0] sm:$0xff] }
  0xba   :  { %v1133_v52 = vpop.permute.xlu0 %1132  ;;  %vm1479_vm3 = vcmp.eq.s32.totalorder %v8085_v8, %v1136_v51  ;;  %293 = vperm.xlu1 %7818, %v73_v49   ;;  %v1019_v51 = vld [vmem:[%s11675_s1 + $0x1b8] sm:$0xff] }
  0xbb   :  { %vm1478_vm4 = vcmp.eq.s32.totalorder %v8085_v8, %v1133_v52  ;;  %v5897_v55 = vsel %vm1479_vm3, 1.0, %v11682_v5  ;;  %290 = vperm.xlu0 %7817, %v72_v50  }
  0xbc   :  { %v5896_v56 = vsel %vm1478_vm4, 1.0, %v11682_v5 }
  0xbd   :  { %v1846_v58 = vpack.c.bf16 %v5897_v55, %v5896_v56  ;;  %v204_v60 = vpop.permute.xlu1 %203 }
  0xbe   :  { %v201_v61 = vpop.permute.xlu0 %200  ;;  %1231 = vperm.xlu1 %7818, %v1011_v57   ;;  %vm543_vm6 = vcmp.eq.s32.totalorder %v8085_v8, %v204_v60  ;;  %v83_v57 = vld [vmem:[%s11676_s0 + $0x1c8] sm:$0xff] }
  0xbf   :  { %7079 = vmatmul.mubr.msk.bf16.gmra.mxu1 %vm1934_vm5, %v1846_v58  ;;  %1228 = vperm.xlu0 %7817, %v1010_v59   ;;  %vm542_vm7 = vcmp.eq.s32.totalorder %v8085_v8, %v201_v61  ;;  %v5774_v3 = vsel %vm543_vm6, 1.0, %v11682_v5  ;;  %v82_v58 = vld [vmem:[%s11676_s0 + $0x1c0] sm:$0xff] }
  0xc0   :  { %7082 = vmatprep.mubr.msk.bf16.mxu1 %vm7831_vm0, %v11682_v5  ;;  %6819 = vmatmul.mubr.msk.bf16.gmra.mxu0 %vm1934_vm5, %v908_v62  ;;  %v5773_v4 = vsel %vm542_vm7, 1.0, %v11682_v5 }
  0xc1   :  { %v1142_v1 = vpop.permute.xlu1 %1141  ;;  %6822 = vmatprep.mubr.msk.bf16.mxu0 %vm7831_vm0, %v11682_v5  ;;  %v909_v14 = vpack.c.bf16 %v5774_v3, %v5773_v4  ;;  %v1020_v3 = vld [vmem:[%s11675_s1 + $0x1c0] sm:$0xff] }
  0xc2   :  { %v1139_v2 = vpop.permute.xlu0 %1138  ;;  %vm1481_vm8 = vcmp.eq.s32.totalorder %v8085_v8, %v1142_v1  ;;  %299 = vperm.xlu1 %7818, %v75_v63   ;;  %v1021_v1 = vld [vmem:[%s11675_s1 + $0x1c8] sm:$0xff] }
  0xc3   :  { %vm1480_vm9 = vcmp.eq.s32.totalorder %v8085_v8, %v1139_v2  ;;  %v5899_v6 = vsel %vm1481_vm8, 1.0, %v11682_v5  ;;  %296 = vperm.xlu0 %7817, %v74_v0  }
  0xc4   :  { %v5898_v7 = vsel %vm1480_vm9, 1.0, %v11682_v5 }
  0xc5   :  { %v1847_v10 = vpack.c.bf16 %v5899_v6, %v5898_v7  ;;  %v210_v12 = vpop.permute.xlu1 %209 }
  0xc6   :  { %v207_v13 = vpop.permute.xlu0 %206  ;;  %1237 = vperm.xlu1 %7818, %v1013_v9   ;;  %vm545_vm10 = vcmp.eq.s32.totalorder %v8085_v8, %v210_v12  ;;  %v85_v9 = vld [vmem:[%s11676_s0 + $0x1d8] sm:$0xff] }
  0xc7   :  { %7083 = vmatmul.mubr.msk.bf16.gmra.mxu1 %vm1934_vm5, %v1847_v10  ;;  %1234 = vperm.xlu0 %7817, %v1012_v11   ;;  %vm544_vm11 = vcmp.eq.s32.totalorder %v8085_v8, %v207_v13  ;;  %v5776_v19 = vsel %vm545_vm10, 1.0, %v11682_v5  ;;  %v84_v10 = vld [vmem:[%s11676_s0 + $0x1d0] sm:$0xff] }
  0xc8   :  { %7086 = vmatprep.mubr.msk.bf16.mxu1 %vm7831_vm0, %v11682_v5  ;;  %6823 = vmatmul.mubr.msk.bf16.gmra.mxu0 %vm1934_vm5, %v909_v14  ;;  %v5775_v20 = vsel %vm544_vm11, 1.0, %v11682_v5 }
  0xc9   :  { %v1148_v17 = vpop.permute.xlu1 %1147  ;;  %6826 = vmatprep.mubr.msk.bf16.mxu0 %vm7831_vm0, %v11682_v5  ;;  %v910_v28 = vpack.c.bf16 %v5776_v19, %v5775_v20  ;;  %v1022_v19 = vld [vmem:[%s11675_s1 + $0x1d0] sm:$0xff] }
  0xca   :  { %v1145_v18 = vpop.permute.xlu0 %1144  ;;  %vm1483_vm12 = vcmp.eq.s32.totalorder %v8085_v8, %v1148_v17  ;;  %305 = vperm.xlu1 %7818, %v77_v15   ;;  %v1023_v17 = vld [vmem:[%s11675_s1 + $0x1d8] sm:$0xff] }
  0xcb   :  { %vm1482_vm13 = vcmp.eq.s32.totalorder %v8085_v8, %v1145_v18  ;;  %v5901_v21 = vsel %vm1483_vm12, 1.0, %v11682_v5  ;;  %302 = vperm.xlu0 %7817, %v76_v16  }
  0xcc   :  { %v5900_v22 = vsel %vm1482_vm13, 1.0, %v11682_v5 }
  0xcd   :  { %v1848_v24 = vpack.c.bf16 %v5901_v21, %v5900_v22  ;;  %v216_v26 = vpop.permute.xlu1 %215 }
  0xce   :  { %v213_v27 = vpop.permute.xlu0 %212  ;;  %1243 = vperm.xlu1 %7818, %v1015_v23   ;;  %vm547_vm14 = vcmp.eq.s32.totalorder %v8085_v8, %v216_v26  ;;  %v87_v23 = vld [vmem:[%s11676_s0 + $0x1e8] sm:$0xff] }
  0xcf   :  { %7087 = vmatmul.mubr.msk.bf16.gmra.mxu1 %vm1934_vm5, %v1848_v24  ;;  %1240 = vperm.xlu0 %7817, %v1014_v25   ;;  %vm546_vm15 = vcmp.eq.s32.totalorder %v8085_v8, %v213_v27  ;;  %v5778_v33 = vsel %vm547_vm14, 1.0, %v11682_v5  ;;  %v86_v24 = vld [vmem:[%s11676_s0 + $0x1e0] sm:$0xff] }
  0xd0   :  { %7090 = vmatprep.mubr.msk.bf16.mxu1 %vm7831_vm0, %v11682_v5  ;;  %6827 = vmatmul.mubr.msk.bf16.gmra.mxu0 %vm1934_vm5, %v910_v28  ;;  %v5777_v34 = vsel %vm546_vm15, 1.0, %v11682_v5 }
  0xd1   :  { %v1154_v31 = vpop.permute.xlu1 %1153  ;;  %6830 = vmatprep.mubr.msk.bf16.mxu0 %vm7831_vm0, %v11682_v5  ;;  %v911_v42 = vpack.c.bf16 %v5778_v33, %v5777_v34  ;;  %v1024_v33 = vld [vmem:[%s11675_s1 + $0x1e0] sm:$0xff] }
  0xd2   :  { %v1151_v32 = vpop.permute.xlu0 %1150  ;;  %vm1485_vm1 = vcmp.eq.s32.totalorder %v8085_v8, %v1154_v31  ;;  %311 = vperm.xlu1 %7818, %v79_v29   ;;  %v1025_v31 = vld [vmem:[%s11675_s1 + $0x1e8] sm:$0xff] }
  0xd3   :  { %vm1484_vm2 = vcmp.eq.s32.totalorder %v8085_v8, %v1151_v32  ;;  %v5903_v35 = vsel %vm1485_vm1, 1.0, %v11682_v5  ;;  %308 = vperm.xlu0 %7817, %v78_v30  }
  0xd4   :  { %v5902_v36 = vsel %vm1484_vm2, 1.0, %v11682_v5 }
  0xd5   :  { %v1849_v38 = vpack.c.bf16 %v5903_v35, %v5902_v36  ;;  %v222_v40 = vpop.permute.xlu1 %221 }
  0xd6   :  { %v219_v41 = vpop.permute.xlu0 %218  ;;  %1249 = vperm.xlu1 %7818, %v1017_v37   ;;  %vm549_vm3 = vcmp.eq.s32.totalorder %v8085_v8, %v222_v40  ;;  %v89_v37 = vld [vmem:[%s11676_s0 + $0x1f8] sm:$0xff] }
  0xd7   :  { %7091 = vmatmul.mubr.msk.bf16.gmra.mxu1 %vm1934_vm5, %v1849_v38  ;;  %1246 = vperm.xlu0 %7817, %v1016_v39   ;;  %vm548_vm4 = vcmp.eq.s32.totalorder %v8085_v8, %v219_v41  ;;  %v5780_v47 = vsel %vm549_vm3, 1.0, %v11682_v5  ;;  %v88_v38 = vld [vmem:[%s11676_s0 + $0x1f0] sm:$0xff] }
  0xd8   :  { %7094 = vmatprep.mubr.msk.bf16.mxu1 %vm7831_vm0, %v11682_v5  ;;  %6831 = vmatmul.mubr.msk.bf16.gmra.mxu0 %vm1934_vm5, %v911_v42  ;;  %v5779_v48 = vsel %vm548_vm4, 1.0, %v11682_v5 }
  0xd9   :  { %v1160_v45 = vpop.permute.xlu1 %1159  ;;  %6834 = vmatprep.mubr.msk.bf16.mxu0 %vm7831_vm0, %v11682_v5  ;;  %v912_v56 = vpack.c.bf16 %v5780_v47, %v5779_v48  ;;  %v1026_v47 = vld [vmem:[%s11675_s1 + $0x1f0] sm:$0xff] }
  0xda   :  { %v1157_v46 = vpop.permute.xlu0 %1156  ;;  %vm1487_vm6 = vcmp.eq.s32.totalorder %v8085_v8, %v1160_v45  ;;  %317 = vperm.xlu1 %7818, %v81_v43   ;;  %v1027_v45 = vld [vmem:[%s11675_s1 + $0x1f8] sm:$0xff] }
  0xdb   :  { %vm1486_vm7 = vcmp.eq.s32.totalorder %v8085_v8, %v1157_v46  ;;  %v5905_v49 = vsel %vm1487_vm6, 1.0, %v11682_v5  ;;  %314 = vperm.xlu0 %7817, %v80_v44  }
  0xdc   :  { %v5904_v50 = vsel %vm1486_vm7, 1.0, %v11682_v5 }
  0xdd   :  { %v1850_v52 = vpack.c.bf16 %v5905_v49, %v5904_v50  ;;  %v228_v54 = vpop.permute.xlu1 %227 }
  0xde   :  { %v225_v55 = vpop.permute.xlu0 %224  ;;  %1255 = vperm.xlu1 %7818, %v1019_v51   ;;  %vm551_vm8 = vcmp.eq.s32.totalorder %v8085_v8, %v228_v54  ;;  %v91_v51 = vld [vmem:[%s11676_s0 + $0x208] sm:$0xff] }
  0xdf   :  { %7095 = vmatmul.mubr.msk.bf16.gmra.mxu1 %vm1934_vm5, %v1850_v52  ;;  %1252 = vperm.xlu0 %7817, %v1018_v53   ;;  %vm550_vm9 = vcmp.eq.s32.totalorder %v8085_v8, %v225_v55  ;;  %v5782_v61 = vsel %vm551_vm8, 1.0, %v11682_v5  ;;  %v90_v52 = vld [vmem:[%s11676_s0 + $0x200] sm:$0xff] }
  0xe0   :  { %7098 = vmatprep.mubr.msk.bf16.mxu1 %vm7831_vm0, %v11682_v5  ;;  %6835 = vmatmul.mubr.msk.bf16.gmra.mxu0 %vm1934_vm5, %v912_v56  ;;  %v5781_v62 = vsel %vm550_vm9, 1.0, %v11682_v5 }
  0xe1   :  { %v1166_v59 = vpop.permute.xlu1 %1165  ;;  %6838 = vmatprep.mubr.msk.bf16.mxu0 %vm7831_vm0, %v11682_v5  ;;  %v913_v7 = vpack.c.bf16 %v5782_v61, %v5781_v62 }
  0xe2   :  { %v1163_v60 = vpop.permute.xlu0 %1162  ;;  %vm1489_vm10 = vcmp.eq.s32.totalorder %v8085_v8, %v1166_v59  ;;  %323 = vperm.xlu1 %7818, %v83_v57  }
  0xe3   :  { %vm1488_vm11 = vcmp.eq.s32.totalorder %v8085_v8, %v1163_v60  ;;  %v5907_v63 = vsel %vm1489_vm10, 1.0, %v11682_v5  ;;  %320 = vperm.xlu0 %7817, %v82_v58   ;;  %v1029_v58 = vld [vmem:[%s11675_s1 + $0x208] sm:$0xff]  ;;  %v1028_v60 = vld [vmem:[%s11675_s1 + $0x200] sm:$0xff] }
  0xe4   :  { %v5906_v0 = vsel %vm1488_vm11, 1.0, %v11682_v5 }
  0xe5   :  { %v1851_v2 = vpack.c.bf16 %v5907_v63, %v5906_v0  ;;  %v234_v4 = vpop.permute.xlu1 %233  ;;  %v7825_v63 = vld [vmem:[%s11678_s3] sm:$0xff]  }
  0xe6   :  { %v231_v6 = vpop.permute.xlu0 %230  ;;  %1261 = vperm.xlu1 %7818, %v1021_v1   ;;  %vm553_vm12 = vcmp.eq.s32.totalorder %v8085_v8, %v234_v4  ;;  %v92_v4 = vld [vmem:[%s11676_s0 + $0x210] sm:$0xff]  ;;  %7561 = vmatpush3.bf16.msra.mxu1 %v7825_v63 }
  0xe7   :  { %7099 = vmatmul.mubr.msk.bf16.gmra.mxu1 %vm1934_vm5, %v1851_v2  ;;  %1258 = vperm.xlu0 %7817, %v1020_v3   ;;  %vm552_vm13 = vcmp.eq.s32.totalorder %v8085_v8, %v231_v6  ;;  %v5784_v13 = vsel %vm553_vm12, 1.0, %v11682_v5  ;;  %v7826_v2 = vld [vmem:[%s11679_s4] sm:$0xff]   ;;  %v93_v3 = vld [vmem:[%s11676_s0 + $0x218] sm:$0xff] }
  0xe8   :  { %7102 = vmatprep.mubr.msk.bf16.mxu1 %vm7831_vm0, %v11682_v5  ;;  %6839 = vmatmul.mubr.msk.bf16.gmra.mxu0 %vm1934_vm5, %v913_v7  ;;  %v5783_v14 = vsel %vm552_vm13, 1.0, %v11682_v5 }
  0xe9   :  { %v1172_v11 = vpop.permute.xlu1 %1171  ;;  %6842 = vmatprep.mubr.msk.bf16.mxu0 %vm7831_vm0, %v11682_v5  ;;  %v914_v22 = vpack.c.bf16 %v5784_v13, %v5783_v14  ;;  %7305 = vmatpush3.bf16.msra.mxu0 %v7826_v2  ;;  %v1030_v14 = vld [vmem:[%s11675_s1 + $0x210] sm:$0xff] }
  0xea   :  { %v1169_v12 = vpop.permute.xlu0 %1168  ;;  %vm1491_vm14 = vcmp.eq.s32.totalorder %v8085_v8, %v1172_v11  ;;  %329 = vperm.xlu1 %7818, %v85_v9  }
  0xeb   :  { %vm1490_vm15 = vcmp.eq.s32.totalorder %v8085_v8, %v1169_v12  ;;  %v5909_v15 = vsel %vm1491_vm14, 1.0, %v11682_v5  ;;  %326 = vperm.xlu0 %7817, %v84_v10   ;;  %v1031_v12 = vld [vmem:[%s11675_s1 + $0x218] sm:$0xff] }
  0xec   :  { %v5908_v16 = vsel %vm1490_vm15, 1.0, %v11682_v5 }
  0xed   :  { %v1852_v18 = vpack.c.bf16 %v5909_v15, %v5908_v16  ;;  %v240_v20 = vpop.permute.xlu1 %239 }
  0xee   :  { %v237_v21 = vpop.permute.xlu0 %236  ;;  %1267 = vperm.xlu1 %7818, %v1023_v17   ;;  %vm555_vm1 = vcmp.eq.s32.totalorder %v8085_v8, %v240_v20  ;;  %v94_v20 = vld [vmem:[%s11676_s0 + $0x220] sm:$0xff] }
  0xef   :  { %7103 = vmatmul.mubr.msk.bf16.gmra.mxu1 %vm1934_vm5, %v1852_v18  ;;  %1264 = vperm.xlu0 %7817, %v1022_v19   ;;  %vm554_vm2 = vcmp.eq.s32.totalorder %v8085_v8, %v237_v21  ;;  %v5786_v27 = vsel %vm555_vm1, 1.0, %v11682_v5  ;;  %v95_v19 = vld [vmem:[%s11676_s0 + $0x228] sm:$0xff] }
  0xf0   :  { %7106 = vmatprep.mubr.msk.bf16.mxu1 %vm7831_vm0, %v11682_v5  ;;  %6843 = vmatmul.mubr.msk.bf16.gmra.mxu0 %vm1934_vm5, %v914_v22  ;;  %v5785_v28 = vsel %vm554_vm2, 1.0, %v11682_v5 }
  0xf1   :  { %v1178_v25 = vpop.permute.xlu1 %1177  ;;  %6846 = vmatprep.mubr.msk.bf16.mxu0 %vm7831_vm0, %v11682_v5  ;;  %v915_v36 = vpack.c.bf16 %v5786_v27, %v5785_v28  ;;  %v1032_v28 = vld [vmem:[%s11675_s1 + $0x220] sm:$0xff] }
  0xf2   :  { %v1175_v26 = vpop.permute.xlu0 %1174  ;;  %vm1493_vm3 = vcmp.eq.s32.totalorder %v8085_v8, %v1178_v25  ;;  %335 = vperm.xlu1 %7818, %v87_v23  }
  0xf3   :  { %vm1492_vm4 = vcmp.eq.s32.totalorder %v8085_v8, %v1175_v26  ;;  %v5911_v29 = vsel %vm1493_vm3, 1.0, %v11682_v5  ;;  %332 = vperm.xlu0 %7817, %v86_v24   ;;  %v1033_v26 = vld [vmem:[%s11675_s1 + $0x228] sm:$0xff] }
  0xf4   :  { %v5910_v30 = vsel %vm1492_vm4, 1.0, %v11682_v5 }
  0xf5   :  { %v1853_v32 = vpack.c.bf16 %v5911_v29, %v5910_v30  ;;  %v246_v34 = vpop.permute.xlu1 %245 }
  0xf6   :  { %v243_v35 = vpop.permute.xlu0 %242  ;;  %1273 = vperm.xlu1 %7818, %v1025_v31   ;;  %vm557_vm6 = vcmp.eq.s32.totalorder %v8085_v8, %v246_v34  ;;  %v96_v34 = vld [vmem:[%s11676_s0 + $0x230] sm:$0xff] }
  0xf7   :  { %7107 = vmatmul.mubr.msk.bf16.gmra.mxu1 %vm1934_vm5, %v1853_v32  ;;  %1270 = vperm.xlu0 %7817, %v1024_v33   ;;  %vm556_vm7 = vcmp.eq.s32.totalorder %v8085_v8, %v243_v35  ;;  %v5788_v41 = vsel %vm557_vm6, 1.0, %v11682_v5  ;;  %v97_v33 = vld [vmem:[%s11676_s0 + $0x238] sm:$0xff] }
  0xf8   :  { %7110 = vmatprep.mubr.msk.bf16.mxu1 %vm7831_vm0, %v11682_v5  ;;  %6847 = vmatmul.mubr.msk.bf16.gmra.mxu0 %vm1934_vm5, %v915_v36  ;;  %v5787_v42 = vsel %vm556_vm7, 1.0, %v11682_v5 }
  0xf9   :  { %v1184_v39 = vpop.permute.xlu1 %1183  ;;  %6850 = vmatprep.mubr.msk.bf16.mxu0 %vm7831_vm0, %v11682_v5  ;;  %v916_v50 = vpack.c.bf16 %v5788_v41, %v5787_v42  ;;  %v1034_v42 = vld [vmem:[%s11675_s1 + $0x230] sm:$0xff] }
  0xfa   :  { %v1181_v40 = vpop.permute.xlu0 %1180  ;;  %vm1495_vm8 = vcmp.eq.s32.totalorder %v8085_v8, %v1184_v39  ;;  %341 = vperm.xlu1 %7818, %v89_v37  }
  0xfb   :  { %vm1494_vm9 = vcmp.eq.s32.totalorder %v8085_v8, %v1181_v40  ;;  %v5913_v43 = vsel %vm1495_vm8, 1.0, %v11682_v5  ;;  %338 = vperm.xlu0 %7817, %v88_v38   ;;  %v1035_v40 = vld [vmem:[%s11675_s1 + $0x238] sm:$0xff] }
  0xfc   :  { %v5912_v44 = vsel %vm1494_vm9, 1.0, %v11682_v5 }
  0xfd   :  { %v1854_v46 = vpack.c.bf16 %v5913_v43, %v5912_v44  ;;  %v252_v48 = vpop.permute.xlu1 %251 }
  0xfe   :  { %v249_v49 = vpop.permute.xlu0 %248  ;;  %1279 = vperm.xlu1 %7818, %v1027_v45   ;;  %vm559_vm10 = vcmp.eq.s32.totalorder %v8085_v8, %v252_v48  ;;  %v98_v48 = vld [vmem:[%s11676_s0 + $0x240] sm:$0xff] }
  0xff   :  { %7111 = vmatmul.mubr.msk.bf16.gmra.mxu1 %vm1934_vm5, %v1854_v46  ;;  %1276 = vperm.xlu0 %7817, %v1026_v47   ;;  %vm558_vm11 = vcmp.eq.s32.totalorder %v8085_v8, %v249_v49  ;;  %v5790_v55 = vsel %vm559_vm10, 1.0, %v11682_v5  ;;  %v99_v47 = vld [vmem:[%s11676_s0 + $0x248] sm:$0xff] }
 0x100   :  { %7114 = vmatprep.mubr.msk.bf16.mxu1 %vm7831_vm0, %v11682_v5  ;;  %6851 = vmatmul.mubr.msk.bf16.gmra.mxu0 %vm1934_vm5, %v916_v50  ;;  %v5789_v56 = vsel %vm558_vm11, 1.0, %v11682_v5 }
 0x101   :  { %v1190_v53 = vpop.permute.xlu1 %1189  ;;  %6854 = vmatprep.mubr.msk.bf16.mxu0 %vm7831_vm0, %v11682_v5  ;;  %v917_v0 = vpack.c.bf16 %v5790_v55, %v5789_v56  ;;  %v1036_v56 = vld [vmem:[%s11675_s1 + $0x240] sm:$0xff] }
 0x102   :  { %vm1497_vm12 = vcmp.eq.s32.totalorder %v8085_v8, %v1190_v53  ;;  %v1187_v54 = vpop.permute.xlu0 %1186  ;;  %347 = vperm.xlu1 %7818, %v91_v51  }
 0x103   :  { %v5915_v57 = vsel %vm1497_vm12, 1.0, %v11682_v5  ;;  %vm1496_vm13 = vcmp.eq.s32.totalorder %v8085_v8, %v1187_v54  ;;  %344 = vperm.xlu0 %7817, %v90_v52   ;;  %v1037_v54 = vld [vmem:[%s11675_s1 + $0x248] sm:$0xff] }
 0x104   :  { %v5914_v59 = vsel %vm1496_vm13, 1.0, %v11682_v5 }
 0x105   :  { %v1855_v61 = vpack.c.bf16 %v5915_v57, %v5914_v59  ;;  %v258_v62 = vpop.permute.xlu1 %257 }
 0x106   :  { %v255_v1 = vpop.permute.xlu0 %254  ;;  %1285 = vperm.xlu1 %7818, %v1029_v58   ;;  %vm561_vm14 = vcmp.eq.s32.totalorder %v8085_v8, %v258_v62  ;;  %v100_v62 = vld [vmem:[%s11676_s0 + $0x250] sm:$0xff] }
 0x107   :  { %1282 = vperm.xlu0 %7817, %v1028_v60   ;;  %7115 = vmatmul.mubr.msk.bf16.gmra.mxu1 %vm1934_vm5, %v1855_v61  ;;  %vm560_vm15 = vcmp.eq.s32.totalorder %v8085_v8, %v255_v1  ;;  %v5792_v9 = vsel %vm561_vm14, 1.0, %v11682_v5  ;;  %v101_v61 = vld [vmem:[%s11676_s0 + $0x258] sm:$0xff] }
 0x108   :  { %6855 = vmatmul.mubr.msk.bf16.gmra.mxu0 %vm1934_vm5, %v917_v0  ;;  %7118 = vmatprep.mubr.msk.bf16.mxu1 %vm7831_vm0, %v11682_v5  ;;  %v5791_v10 = vsel %vm560_vm15, 1.0, %v11682_v5 }
 0x109   :  { %v1196_v6 = vpop.permute.xlu1 %1195  ;;  %6858 = vmatprep.mubr.msk.bf16.mxu0 %vm7831_vm0, %v11682_v5  ;;  %v918_v17 = vpack.c.bf16 %v5792_v9, %v5791_v10 }
 0x10a   :  { %vm1499_vm1 = vcmp.eq.s32.totalorder %v8085_v8, %v1196_v6  ;;  %v1193_v7 = vpop.permute.xlu0 %1192  ;;  %353 = vperm.xlu1 %7818, %v93_v3  }
 0x10b   :  { %v5917_v11 = vsel %vm1499_vm1, 1.0, %v11682_v5  ;;  %vm1498_vm2 = vcmp.eq.s32.totalorder %v8085_v8, %v1193_v7  ;;  %350 = vperm.xlu0 %7817, %v92_v4   ;;  %v1039_v4 = vld [vmem:[%s11675_s1 + $0x258] sm:$0xff]  ;;  %v1038_v7 = vld [vmem:[%s11675_s1 + $0x250] sm:$0xff] }
 0x10c   :  { %v5916_v13 = vsel %vm1498_vm2, 1.0, %v11682_v5 }
 0x10d   :  { %v1856_v15 = vpack.c.bf16 %v5917_v11, %v5916_v13  ;;  %v264_v16 = vpop.permute.xlu1 %263  ;;  %v103_v13 = vld [vmem:[%s11676_s0 + $0x268] sm:$0xff] }
 0x10e   :  { %v261_v18 = vpop.permute.xlu0 %260  ;;  %1291 = vperm.xlu1 %7818, %v1031_v12   ;;  %vm563_vm3 = vcmp.eq.s32.totalorder %v8085_v8, %v264_v16 }
 0x10f   :  { %1288 = vperm.xlu0 %7817, %v1030_v14   ;;  %7119 = vmatmul.mubr.msk.bf16.gmra.mxu1 %vm1934_vm5, %v1856_v15  ;;  %vm562_vm4 = vcmp.eq.s32.totalorder %v8085_v8, %v261_v18  ;;  %v5794_v23 = vsel %vm563_vm3, 1.0, %v11682_v5  ;;  %v102_v14 = vld [vmem:[%s11676_s0 + $0x260] sm:$0xff] }
 0x110   :  { %6859 = vmatmul.mubr.msk.bf16.gmra.mxu0 %vm1934_vm5, %v918_v17  ;;  %7122 = vmatprep.mubr.msk.bf16.mxu1 %vm7831_vm0, %v11682_v5  ;;  %v5793_v24 = vsel %vm562_vm4, 1.0, %v11682_v5 }
 0x111   :  { %v1202_v21 = vpop.permute.xlu1 %1201  ;;  %6862 = vmatprep.mubr.msk.bf16.mxu0 %vm7831_vm0, %v11682_v5  ;;  %v919_v31 = vpack.c.bf16 %v5794_v23, %v5793_v24 }
 0x112   :  { %vm1501_vm6 = vcmp.eq.s32.totalorder %v8085_v8, %v1202_v21  ;;  %v1199_v22 = vpop.permute.xlu0 %1198  ;;  %359 = vperm.xlu1 %7818, %v95_v19  }
 0x113   :  { %v5919_v25 = vsel %vm1501_vm6, 1.0, %v11682_v5  ;;  %vm1500_vm7 = vcmp.eq.s32.totalorder %v8085_v8, %v1199_v22  ;;  %356 = vperm.xlu0 %7817, %v94_v20   ;;  %v1041_v20 = vld [vmem:[%s11675_s1 + $0x268] sm:$0xff]  ;;  %v1040_v22 = vld [vmem:[%s11675_s1 + $0x260] sm:$0xff] }
 0x114   :  { %v5918_v27 = vsel %vm1500_vm7, 1.0, %v11682_v5 }
 0x115   :  { %v1857_v29 = vpack.c.bf16 %v5919_v25, %v5918_v27  ;;  %v270_v30 = vpop.permute.xlu1 %269  ;;  %v105_v27 = vld [vmem:[%s11676_s0 + $0x278] sm:$0xff] }
 0x116   :  { %v267_v32 = vpop.permute.xlu0 %266  ;;  %1297 = vperm.xlu1 %7818, %v1033_v26   ;;  %vm565_vm8 = vcmp.eq.s32.totalorder %v8085_v8, %v270_v30 }
 0x117   :  { %1294 = vperm.xlu0 %7817, %v1032_v28   ;;  %7123 = vmatmul.mubr.msk.bf16.gmra.mxu1 %vm1934_vm5, %v1857_v29  ;;  %vm564_vm9 = vcmp.eq.s32.totalorder %v8085_v8, %v267_v32  ;;  %v5796_v37 = vsel %vm565_vm8, 1.0, %v11682_v5  ;;  %v104_v28 = vld [vmem:[%s11676_s0 + $0x270] sm:$0xff] }
 0x118   :  { %6863 = vmatmul.mubr.msk.bf16.gmra.mxu0 %vm1934_vm5, %v919_v31  ;;  %7126 = vmatprep.mubr.msk.bf16.mxu1 %vm7831_vm0, %v11682_v5  ;;  %v5795_v38 = vsel %vm564_vm9, 1.0, %v11682_v5 }
 0x119   :  { %v1208_v35 = vpop.permute.xlu1 %1207  ;;  %6866 = vmatprep.mubr.msk.bf16.mxu0 %vm7831_vm0, %v11682_v5  ;;  %v920_v45 = vpack.c.bf16 %v5796_v37, %v5795_v38 }
 0x11a   :  { %vm1503_vm10 = vcmp.eq.s32.totalorder %v8085_v8, %v1208_v35  ;;  %v1205_v36 = vpop.permute.xlu0 %1204  ;;  %365 = vperm.xlu1 %7818, %v97_v33  }
 0x11b   :  { %v5921_v39 = vsel %vm1503_vm10, 1.0, %v11682_v5  ;;  %vm1502_vm11 = vcmp.eq.s32.totalorder %v8085_v8, %v1205_v36  ;;  %362 = vperm.xlu0 %7817, %v96_v34   ;;  %v1043_v34 = vld [vmem:[%s11675_s1 + $0x278] sm:$0xff]  ;;  %v1042_v36 = vld [vmem:[%s11675_s1 + $0x270] sm:$0xff] }
 0x11c   :  { %v5920_v41 = vsel %vm1502_vm11, 1.0, %v11682_v5 }
 0x11d   :  { %v1858_v43 = vpack.c.bf16 %v5921_v39, %v5920_v41  ;;  %v276_v44 = vpop.permute.xlu1 %275  ;;  %v107_v41 = vld [vmem:[%s11676_s0 + $0x288] sm:$0xff] }
 0x11e   :  { %v273_v46 = vpop.permute.xlu0 %272  ;;  %1303 = vperm.xlu1 %7818, %v1035_v40   ;;  %vm567_vm12 = vcmp.eq.s32.totalorder %v8085_v8, %v276_v44 }
 0x11f   :  { %1300 = vperm.xlu0 %7817, %v1034_v42   ;;  %7127 = vmatmul.mubr.msk.bf16.gmra.mxu1 %vm1934_vm5, %v1858_v43  ;;  %vm566_vm13 = vcmp.eq.s32.totalorder %v8085_v8, %v273_v46  ;;  %v5798_v51 = vsel %vm567_vm12, 1.0, %v11682_v5  ;;  %v106_v42 = vld [vmem:[%s11676_s0 + $0x280] sm:$0xff] }
 0x120   :  { %6867 = vmatmul.mubr.msk.bf16.gmra.mxu0 %vm1934_vm5, %v920_v45  ;;  %7130 = vmatprep.mubr.msk.bf16.mxu1 %vm7831_vm0, %v11682_v5  ;;  %v5797_v52 = vsel %vm566_vm13, 1.0, %v11682_v5 }
 0x121   :  { %v1214_v49 = vpop.permute.xlu1 %1213  ;;  %6870 = vmatprep.mubr.msk.bf16.mxu0 %vm7831_vm0, %v11682_v5  ;;  %v921_v59 = vpack.c.bf16 %v5798_v51, %v5797_v52 }
 0x122   :  { %vm1505_vm14 = vcmp.eq.s32.totalorder %v8085_v8, %v1214_v49  ;;  %v1211_v50 = vpop.permute.xlu0 %1210  ;;  %371 = vperm.xlu1 %7818, %v99_v47  }
 0x123   :  { %v5923_v53 = vsel %vm1505_vm14, 1.0, %v11682_v5  ;;  %vm1504_vm15 = vcmp.eq.s32.totalorder %v8085_v8, %v1211_v50  ;;  %368 = vperm.xlu0 %7817, %v98_v48   ;;  %v1045_v48 = vld [vmem:[%s11675_s1 + $0x288] sm:$0xff]  ;;  %v1044_v50 = vld [vmem:[%s11675_s1 + $0x280] sm:$0xff] }
 0x124   :  { %v5922_v55 = vsel %vm1504_vm15, 1.0, %v11682_v5 }
 0x125   :  { %v1859_v57 = vpack.c.bf16 %v5923_v53, %v5922_v55  ;;  %v282_v58 = vpop.permute.xlu1 %281 }
 0x126   :  { %v279_v60 = vpop.permute.xlu0 %278  ;;  %1309 = vperm.xlu1 %7818, %v1037_v54   ;;  %vm569_vm1 = vcmp.eq.s32.totalorder %v8085_v8, %v282_v58 }
 0x127   :  { %1306 = vperm.xlu0 %7817, %v1036_v56   ;;  %7131 = vmatmul.mubr.msk.bf16.gmra.mxu1 %vm1934_vm5, %v1859_v57  ;;  %vm568_vm2 = vcmp.eq.s32.totalorder %v8085_v8, %v279_v60  ;;  %v5800_v1 = vsel %vm569_vm1, 1.0, %v11682_v5  ;;  %v109_v56 = vld [vmem:[%s11676_s0 + $0x298] sm:$0xff] }
 0x128   :  { %6871 = vmatmul.mubr.msk.bf16.gmra.mxu0 %vm1934_vm5, %v921_v59  ;;  %7134 = vmatprep.mubr.msk.bf16.mxu1 %vm7831_vm0, %v11682_v5  ;;  %v5799_v2 = vsel %vm568_vm2, 1.0, %v11682_v5  ;;  %v108_v59 = vld [vmem:[%s11676_s0 + $0x290] sm:$0xff] }
 0x129   :  { %v1220_v63 = vpop.permute.xlu1 %1219  ;;  %6874 = vmatprep.mubr.msk.bf16.mxu0 %vm7831_vm0, %v11682_v5  ;;  %v922_v11 = vpack.c.bf16 %v5800_v1, %v5799_v2 }
 0x12a   :  { %vm1507_vm3 = vcmp.eq.s32.totalorder %v8085_v8, %v1220_v63  ;;  %v1217_v0 = vpop.permute.xlu0 %1216  ;;  %377 = vperm.xlu1 %7818, %v101_v61  }
 0x12b   :  { %v5925_v3 = vsel %vm1507_vm3, 1.0, %v11682_v5  ;;  %vm1506_vm4 = vcmp.eq.s32.totalorder %v8085_v8, %v1217_v0  ;;  %374 = vperm.xlu0 %7817, %v100_v62  }
 0x12c   :  { %v5924_v6 = vsel %vm1506_vm4, 1.0, %v11682_v5 }
 0x12d   :  { %v1860_v9 = vpack.c.bf16 %v5925_v3, %v5924_v6  ;;  %v288_v10 = vpop.permute.xlu1 %287  ;;  %v1047_v3 = vld [vmem:[%s11675_s1 + $0x298] sm:$0xff] }
 0x12e   :  { %v285_v12 = vpop.permute.xlu0 %284  ;;  %1315 = vperm.xlu1 %7818, %v1039_v4   ;;  %vm571_vm6 = vcmp.eq.s32.totalorder %v8085_v8, %v288_v10 }
 0x12f   :  { %1312 = vperm.xlu0 %7817, %v1038_v7   ;;  %7135 = vmatmul.mubr.msk.bf16.gmra.mxu1 %vm1934_vm5, %v1860_v9  ;;  %vm570_vm7 = vcmp.eq.s32.totalorder %v8085_v8, %v285_v12  ;;  %v5802_v17 = vsel %vm571_vm6, 1.0, %v11682_v5  ;;  %v1046_v9 = vld [vmem:[%s11675_s1 + $0x290] sm:$0xff] }
 0x130   :  { %6875 = vmatmul.mubr.msk.bf16.gmra.mxu0 %vm1934_vm5, %v922_v11  ;;  %7138 = vmatprep.mubr.msk.bf16.mxu1 %vm7831_vm0, %v11682_v5  ;;  %v5801_v18 = vsel %vm570_vm7, 1.0, %v11682_v5 }
 0x131   :  { %v1226_v15 = vpop.permute.xlu1 %1225  ;;  %6878 = vmatprep.mubr.msk.bf16.mxu0 %vm7831_vm0, %v11682_v5  ;;  %v923_v25 = vpack.c.bf16 %v5802_v17, %v5801_v18  ;;  %v111_v18 = vld [vmem:[%s11676_s0 + $0x2a8] sm:$0xff] }
 0x132   :  { %vm1509_vm8 = vcmp.eq.s32.totalorder %v8085_v8, %v1226_v15  ;;  %v1223_v16 = vpop.permute.xlu0 %1222  ;;  %383 = vperm.xlu1 %7818, %v103_v13  }
 0x133   :  { %v5927_v19 = vsel %vm1509_vm8, 1.0, %v11682_v5  ;;  %vm1508_vm9 = vcmp.eq.s32.totalorder %v8085_v8, %v1223_v16  ;;  %380 = vperm.xlu0 %7817, %v102_v14  }
 0x134   :  { %v5926_v21 = vsel %vm1508_vm9, 1.0, %v11682_v5 }
 0x135   :  { %v1861_v23 = vpack.c.bf16 %v5927_v19, %v5926_v21  ;;  %v294_v24 = vpop.permute.xlu1 %293 }
 0x136   :  { %v291_v26 = vpop.permute.xlu0 %290  ;;  %1321 = vperm.xlu1 %7818, %v1041_v20   ;;  %vm573_vm10 = vcmp.eq.s32.totalorder %v8085_v8, %v294_v24  ;;  %v110_v20 = vld [vmem:[%s11676_s0 + $0x2a0] sm:$0xff] }
 0x137   :  { %1318 = vperm.xlu0 %7817, %v1040_v22   ;;  %7139 = vmatmul.mubr.msk.bf16.gmra.mxu1 %vm1934_vm5, %v1861_v23  ;;  %vm572_vm11 = vcmp.eq.s32.totalorder %v8085_v8, %v291_v26  ;;  %v5804_v31 = vsel %vm573_vm10, 1.0, %v11682_v5 }
 0x138   :  { %6879 = vmatmul.mubr.msk.bf16.gmra.mxu0 %vm1934_vm5, %v923_v25  ;;  %7142 = vmatprep.mubr.msk.bf16.mxu1 %vm7831_vm0, %v11682_v5  ;;  %v5803_v32 = vsel %vm572_vm11, 1.0, %v11682_v5 }
 0x139   :  { %v1232_v29 = vpop.permute.xlu1 %1231  ;;  %6882 = vmatprep.mubr.msk.bf16.mxu0 %vm7831_vm0, %v11682_v5  ;;  %v924_v39 = vpack.c.bf16 %v5804_v31, %v5803_v32 }
 0x13a   :  { %vm1511_vm12 = vcmp.eq.s32.totalorder %v8085_v8, %v1232_v29  ;;  %v1229_v30 = vpop.permute.xlu0 %1228  ;;  %389 = vperm.xlu1 %7818, %v105_v27   ;;  %v1049_v29 = vld [vmem:[%s11675_s1 + $0x2a8] sm:$0xff] }
 0x13b   :  { %v5929_v33 = vsel %vm1511_vm12, 1.0, %v11682_v5  ;;  %vm1510_vm13 = vcmp.eq.s32.totalorder %v8085_v8, %v1229_v30  ;;  %386 = vperm.xlu0 %7817, %v104_v28  }
 0x13c   :  { %v5928_v35 = vsel %vm1510_vm13, 1.0, %v11682_v5 }
 0x13d   :  { %v1862_v37 = vpack.c.bf16 %v5929_v33, %v5928_v35  ;;  %v300_v38 = vpop.permute.xlu1 %299  ;;  %v1048_v33 = vld [vmem:[%s11675_s1 + $0x2a0] sm:$0xff] }
 0x13e   :  { %v297_v40 = vpop.permute.xlu0 %296  ;;  %1327 = vperm.xlu1 %7818, %v1043_v34   ;;  %vm575_vm14 = vcmp.eq.s32.totalorder %v8085_v8, %v300_v38 }
 0x13f   :  { %1324 = vperm.xlu0 %7817, %v1042_v36   ;;  %7143 = vmatmul.mubr.msk.bf16.gmra.mxu1 %vm1934_vm5, %v1862_v37  ;;  %vm574_vm15 = vcmp.eq.s32.totalorder %v8085_v8, %v297_v40  ;;  %v5806_v45 = vsel %vm575_vm14, 1.0, %v11682_v5 }
 0x140   :  { %6883 = vmatmul.mubr.msk.bf16.gmra.mxu0 %vm1934_vm5, %v924_v39  ;;  %7146 = vmatprep.mubr.msk.bf16.mxu1 %vm7831_vm0, %v11682_v5  ;;  %v5805_v46 = vsel %vm574_vm15, 1.0, %v11682_v5 }
 0x141   :  { %v1238_v43 = vpop.permute.xlu1 %1237  ;;  %6886 = vmatprep.mubr.msk.bf16.mxu0 %vm7831_vm0, %v11682_v5  ;;  %v925_v53 = vpack.c.bf16 %v5806_v45, %v5805_v46 }
 0x142   :  { %vm1513_vm1 = vcmp.eq.s32.totalorder %v8085_v8, %v1238_v43  ;;  %v1235_v44 = vpop.permute.xlu0 %1234  ;;  %395 = vperm.xlu1 %7818, %v107_v41  }
 0x143   :  { %v5931_v47 = vsel %vm1513_vm1, 1.0, %v11682_v5  ;;  %vm1512_vm2 = vcmp.eq.s32.totalorder %v8085_v8, %v1235_v44  ;;  %392 = vperm.xlu0 %7817, %v106_v42   ;;  %v113_v42 = vld [vmem:[%s11676_s0 + $0x2b8] sm:$0xff]  ;;  %v112_v44 = vld [vmem:[%s11676_s0 + $0x2b0] sm:$0xff] }
 0x144   :  { %v5930_v49 = vsel %vm1512_vm2, 1.0, %v11682_v5 }
 0x145   :  { %v1863_v51 = vpack.c.bf16 %v5931_v47, %v5930_v49  ;;  %v306_v52 = vpop.permute.xlu1 %305 }
 0x146   :  { %v303_v54 = vpop.permute.xlu0 %302  ;;  %v8745_v55 = vpop.f32.mrf.mxu1  ;;  %1333 = vperm.xlu1 %7818, %v1045_v48   ;;  %vm577_vm3 = vcmp.eq.s32.totalorder %v8085_v8, %v306_v52 }
 0x147   :  { %1330 = vperm.xlu0 %7817, %v1044_v50   ;;  %7147 = vmatmul.mubr.msk.bf16.gmra.mxu1 %vm1934_vm5, %v1863_v51  ;;  %vm576_vm4 = vcmp.eq.s32.totalorder %v8085_v8, %v303_v54  ;;  %v5808_v63 = vsel %vm577_vm3, 1.0, %v11682_v5 }
 0x148   :  { %v8753_v57 = vpop.f32.mrf.mxu0  ;;  %6887 = vmatmul.mubr.msk.bf16.gmra.mxu0 %vm1934_vm5, %v925_v53  ;;  %v7052_v58 = vpop.f32.mrf.mxu1  ;;  %7150 = vmatprep.mubr.msk.bf16.mxu1 %vm7831_vm0, %v11682_v5  ;;  %v5807_v0 = vsel %vm576_vm4, 1.0, %v11682_v5  ;;  %v1051_v53 = vld [vmem:[%s11675_s1 + $0x2b8] sm:$0xff] }
 0x149   :  { %v1244_v60 = vpop.permute.xlu1 %1243  ;;  %6890 = vmatprep.mubr.msk.bf16.mxu0 %vm7831_vm0, %v11682_v5  ;;  %v926_v14 = vpack.c.bf16 %v5808_v63, %v5807_v0 }
 0x14a   :  { %v6792_v61 = vpop.f32.mrf.mxu0  ;;  %vm1515_vm6 = vcmp.eq.s32.totalorder %v8085_v8, %v1244_v60  ;;  %v1241_v62 = vpop.permute.xlu0 %1240  ;;  %401 = vperm.xlu1 %7818, %v109_v56  }
 0x14b   :  { %v5933_v1 = vsel %vm1515_vm6, 1.0, %v11682_v5  ;;  %vm1514_vm7 = vcmp.eq.s32.totalorder %v8085_v8, %v1241_v62  ;;  %v8768_v2 = vpop.f32.mrf.mxu1  ;;  %398 = vperm.xlu0 %7817, %v108_v59   ;;  %v1050_v59 = vld [vmem:[%s11675_s1 + $0x2b0] sm:$0xff] }
 0x14c   :  { %v5932_v4 = vsel %vm1514_vm7, 1.0, %v11682_v5  ;;  %v8776_v7 = vpop.f32.mrf.mxu0 }
 0x14d   :  { %v1864_v10 = vpack.c.bf16 %v5933_v1, %v5932_v4  ;;  %v7053_v12 = vpop.f32.mrf.mxu1  ;;  %v312_v13 = vpop.permute.xlu1 %311 }
 0x14e   :  { %v6793_v15 = vpop.f32.mrf.mxu0  ;;  %v309_v16 = vpop.permute.xlu0 %308  ;;  %1339 = vperm.xlu1 %7818, %v1047_v3   ;;  %vm579_vm8 = vcmp.eq.s32.totalorder %v8085_v8, %v312_v13  ;;  %v114_v12 = vld [vmem:[%s11676_s0 + $0x2c0] sm:$0xff] }
 0x14f   :  { %v8783_v17 = vpop.f32.mrf.mxu1  ;;  %1336 = vperm.xlu0 %7817, %v1046_v9   ;;  %7151 = vmatmul.mubr.msk.bf16.gmra.mxu1 %vm1934_vm5, %v1864_v10  ;;  %vm578_vm9 = vcmp.eq.s32.totalorder %v8085_v8, %v309_v16  ;;  %v5810_v25 = vsel %vm579_vm8, 1.0, %v11682_v5  ;;  %v115_v9 = vld [vmem:[%s11676_s0 + $0x2c8] sm:$0xff] }
 0x150   :  { %v8791_v19 = vpop.f32.mrf.mxu0  ;;  %6891 = vmatmul.mubr.msk.bf16.gmra.mxu0 %vm1934_vm5, %v926_v14  ;;  %7154 = vmatprep.mubr.msk.bf16.mxu1 %vm7831_vm0, %v11682_v5  ;;  %v5809_v26 = vsel %vm578_vm9, 1.0, %v11682_v5 }
 0x151   :  { %v7056_v21 = vpop.f32.mrf.mxu1  ;;  %v1250_v22 = vpop.permute.xlu1 %1249  ;;  %6894 = vmatprep.mubr.msk.bf16.mxu0 %vm7831_vm0, %v11682_v5  ;;  %v927_v38 = vpack.c.bf16 %v5810_v25, %v5809_v26 }
 0x152   :  { %v6796_v23 = vpop.f32.mrf.mxu0  ;;  %vm1517_vm10 = vcmp.eq.s32.totalorder %v8085_v8, %v1250_v22  ;;  %v1247_v24 = vpop.permute.xlu0 %1246  ;;  %407 = vperm.xlu1 %7818, %v111_v18  }
 0x153   :  { %v5935_v27 = vsel %vm1517_vm10, 1.0, %v11682_v5  ;;  %vm1516_vm11 = vcmp.eq.s32.totalorder %v8085_v8, %v1247_v24  ;;  %v8806_v28 = vpop.f32.mrf.mxu1  ;;  %404 = vperm.xlu0 %7817, %v110_v20   ;;  %v1053_v23 = vld [vmem:[%s11675_s1 + $0x2c8] sm:$0xff] }
 0x154   :  { %v5934_v30 = vsel %vm1516_vm11, 1.0, %v11682_v5  ;;  %v8812_v31 = vpop.f32.mrf.mxu0 }
 0x155   :  { %v1865_v34 = vpack.c.bf16 %v5935_v27, %v5934_v30  ;;  %v7057_v36 = vpop.f32.mrf.mxu1  ;;  %v318_v37 = vpop.permute.xlu1 %317  ;;  %v1052_v27 = vld [vmem:[%s11675_s1 + $0x2c0] sm:$0xff] }
 0x156   :  { %v6797_v39 = vpop.f32.mrf.mxu0  ;;  %v315_v40 = vpop.permute.xlu0 %314  ;;  %1345 = vperm.xlu1 %7818, %v1049_v29   ;;  %vm581_vm12 = vcmp.eq.s32.totalorder %v8085_v8, %v318_v37 }
 0x157   :  { %v8821_v41 = vpop.f32.mrf.mxu1  ;;  %1342 = vperm.xlu0 %7817, %v1048_v33   ;;  %7155 = vmatmul.mubr.msk.bf16.gmra.mxu1 %vm1934_vm5, %v1865_v34  ;;  %vm580_vm13 = vcmp.eq.s32.totalorder %v8085_v8, %v315_v40  ;;  %v5812_v49 = vsel %vm581_vm12, 1.0, %v11682_v5  ;;  %v117_v40 = vld [vmem:[%s11676_s0 + $0x2d8] sm:$0xff] }
 0x158   :  { %v8829_v43 = vpop.f32.mrf.mxu0  ;;  %6895 = vmatmul.mubr.msk.bf16.gmra.mxu0 %vm1934_vm5, %v927_v38  ;;  %7158 = vmatprep.mubr.msk.bf16.mxu1 %vm7831_vm0, %v11682_v5  ;;  %v5811_v50 = vsel %vm580_vm13, 1.0, %v11682_v5 }
 0x159   :  { %v7060_v45 = vpop.f32.mrf.mxu1  ;;  %v1256_v46 = vpop.permute.xlu1 %1255  ;;  %6898 = vmatprep.mubr.msk.bf16.mxu0 %vm7831_vm0, %v11682_v5  ;;  %v928_v0 = vpack.c.bf16 %v5812_v49, %v5811_v50 }
 0x15a   :  { %v6800_v47 = vpop.f32.mrf.mxu0  ;;  %vm1519_vm14 = vcmp.eq.s32.totalorder %v8085_v8, %v1256_v46  ;;  %v1253_v48 = vpop.permute.xlu0 %1252  ;;  %413 = vperm.xlu1 %7818, %v113_v42  }
 0x15b   :  { %v5937_v51 = vsel %vm1519_vm14, 1.0, %v11682_v5  ;;  %vm1518_vm15 = vcmp.eq.s32.totalorder %v8085_v8, %v1253_v48  ;;  %v8844_v52 = vpop.f32.mrf.mxu1  ;;  %410 = vperm.xlu0 %7817, %v112_v44   ;;  %v116_v44 = vld [vmem:[%s11676_s0 + $0x2d0] sm:$0xff] }
 0x15c   :  { %v5936_v54 = vsel %vm1518_vm15, 1.0, %v11682_v5  ;;  %v8850_v56 = vpop.f32.mrf.mxu0 }
 0x15d   :  { %v1866_v60 = vpack.c.bf16 %v5937_v51, %v5936_v54  ;;  %v7061_v62 = vpop.f32.mrf.mxu1  ;;  %v324_v63 = vpop.permute.xlu1 %323  ;;  %v1055_v54 = vld [vmem:[%s11675_s1 + $0x2d8] sm:$0xff] }
 0x15e   :  { %v6801_v1 = vpop.f32.mrf.mxu0  ;;  %v321_v3 = vpop.permute.xlu0 %320  ;;  %1351 = vperm.xlu1 %7818, %v1051_v53   ;;  %vm583_vm1 = vcmp.eq.s32.totalorder %v8085_v8, %v324_v63  ;;  %v1054_v63 = vld [vmem:[%s11675_s1 + $0x2d0] sm:$0xff] }
 0x15f   :  { %v8859_v4 = vpop.f32.mrf.mxu1  ;;  %1348 = vperm.xlu0 %7817, %v1050_v59   ;;  %7159 = vmatmul.mubr.msk.bf16.gmra.mxu1 %vm1934_vm5, %v1866_v60  ;;  %vm582_vm2 = vcmp.eq.s32.totalorder %v8085_v8, %v321_v3  ;;  %v5814_v18 = vsel %vm583_vm1, 1.0, %v11682_v5 }
 0x160   :  { %v8867_v10 = vpop.f32.mrf.mxu0  ;;  %6899 = vmatmul.mubr.msk.bf16.gmra.mxu0 %vm1934_vm5, %v928_v0  ;;  %7162 = vmatprep.mubr.msk.bf16.mxu1 %vm7831_vm0, %v11682_v5  ;;  %v5813_v20 = vsel %vm582_vm2, 1.0, %v11682_v5 }
 0x161   :  { %v7064_v13 = vpop.f32.mrf.mxu1  ;;  %v1262_v14 = vpop.permute.xlu1 %1261  ;;  %6902 = vmatprep.mubr.msk.bf16.mxu0 %vm7831_vm0, %v11682_v5  ;;  %v929_v36 = vpack.c.bf16 %v5814_v18, %v5813_v20  ;;  %v118_v20 = vld [vmem:[%s11676_s0 + $0x2e0] sm:$0xff] }
 0x162   :  { %v6804_v15 = vpop.f32.mrf.mxu0  ;;  %vm1521_vm3 = vcmp.eq.s32.totalorder %v8085_v8, %v1262_v14  ;;  %v1259_v16 = vpop.permute.xlu0 %1258  ;;  %419 = vperm.xlu1 %7818, %v115_v9  }
 0x163   :  { %v5939_v21 = vsel %vm1521_vm3, 1.0, %v11682_v5  ;;  %vm1520_vm4 = vcmp.eq.s32.totalorder %v8085_v8, %v1259_v16  ;;  %v8882_v22 = vpop.f32.mrf.mxu1  ;;  %416 = vperm.xlu0 %7817, %v114_v12   ;;  %v119_v16 = vld [vmem:[%s11676_s0 + $0x2e8] sm:$0xff] }
 0x164   :  { %v5938_v24 = vsel %vm1520_vm4, 1.0, %v11682_v5  ;;  %v8888_v25 = vpop.f32.mrf.mxu0 }
 0x165   :  { %v1867_v29 = vpack.c.bf16 %v5939_v21, %v5938_v24  ;;  %v7065_v33 = vpop.f32.mrf.mxu1  ;;  %v330_v34 = vpop.permute.xlu1 %329 }
 0x166   :  { %v6805_v37 = vpop.f32.mrf.mxu0  ;;  %v327_v38 = vpop.permute.xlu0 %326  ;;  %1357 = vperm.xlu1 %7818, %v1053_v23   ;;  %vm585_vm6 = vcmp.eq.s32.totalorder %v8085_v8, %v330_v34 }
 0x167   :  { %v8897_v39 = vpop.f32.mrf.mxu1  ;;  %1354 = vperm.xlu0 %7817, %v1052_v27   ;;  %7163 = vmatmul.mubr.msk.bf16.gmra.mxu1 %vm1934_vm5, %v1867_v29  ;;  %vm584_vm7 = vcmp.eq.s32.totalorder %v8085_v8, %v327_v38  ;;  %v5816_v49 = vsel %vm585_vm6, 1.0, %v11682_v5  ;;  %v1057_v37 = vld [vmem:[%s11675_s1 + $0x2e8] sm:$0xff] }
 0x168   :  { %v8905_v42 = vpop.f32.mrf.mxu0  ;;  %6903 = vmatmul.mubr.msk.bf16.gmra.mxu0 %vm1934_vm5, %v929_v36  ;;  %7166 = vmatprep.mubr.msk.bf16.mxu1 %vm7831_vm0, %v11682_v5  ;;  %v5815_v50 = vsel %vm584_vm7, 1.0, %v11682_v5 }
 0x169   :  { %v7068_v45 = vpop.f32.mrf.mxu1  ;;  %v1268_v46 = vpop.permute.xlu1 %1267  ;;  %6906 = vmatprep.mubr.msk.bf16.mxu0 %vm7831_vm0, %v11682_v5  ;;  %v930_v12 = vpack.c.bf16 %v5816_v49, %v5815_v50 }
 0x16a   :  { %v6808_v47 = vpop.f32.mrf.mxu0  ;;  %vm1523_vm8 = vcmp.eq.s32.totalorder %v8085_v8, %v1268_v46  ;;  %v1265_v48 = vpop.permute.xlu0 %1264  ;;  %425 = vperm.xlu1 %7818, %v117_v40   ;;  %v1056_v45 = vld [vmem:[%s11675_s1 + $0x2e0] sm:$0xff] }
 0x16b   :  { %v5941_v51 = vsel %vm1523_vm8, 1.0, %v11682_v5  ;;  %vm1522_vm9 = vcmp.eq.s32.totalorder %v8085_v8, %v1265_v48  ;;  %v8920_v53 = vpop.f32.mrf.mxu1  ;;  %422 = vperm.xlu0 %7817, %v116_v44  }
 0x16c   :  { %v5940_v59 = vsel %vm1522_vm9, 1.0, %v11682_v5  ;;  %v8926_v60 = vpop.f32.mrf.mxu0 }
 0x16d   :  { %v1868_v0 = vpack.c.bf16 %v5941_v51, %v5940_v59  ;;  %v7069_v3 = vpop.f32.mrf.mxu1  ;;  %v336_v9 = vpop.permute.xlu1 %335 }
 0x16e   :  { %v6809_v13 = vpop.f32.mrf.mxu0  ;;  %v333_v14 = vpop.permute.xlu0 %332  ;;  %1363 = vperm.xlu1 %7818, %v1055_v54   ;;  %vm587_vm10 = vcmp.eq.s32.totalorder %v8085_v8, %v336_v9  ;;  %v120_v3 = vld [vmem:[%s11676_s0 + $0x2f0] sm:$0xff] }
 0x16f   :  { %v8935_v15 = vpop.f32.mrf.mxu1  ;;  %1360 = vperm.xlu0 %7817, %v1054_v63   ;;  %7167 = vmatmul.mubr.msk.bf16.gmra.mxu1 %vm1934_vm5, %v1868_v0  ;;  %vm586_vm11 = vcmp.eq.s32.totalorder %v8085_v8, %v333_v14  ;;  %v5818_v29 = vsel %vm587_vm10, 1.0, %v11682_v5  ;;  %v121_v63 = vld [vmem:[%s11676_s0 + $0x2f8] sm:$0xff] }
 0x170   :  { %v8943_v18 = vpop.f32.mrf.mxu0  ;;  %6907 = vmatmul.mubr.msk.bf16.gmra.mxu0 %vm1934_vm5, %v930_v12  ;;  %7170 = vmatprep.mubr.msk.bf16.mxu1 %vm7831_vm0, %v11682_v5  ;;  %v5817_v33 = vsel %vm586_vm11, 1.0, %v11682_v5 }
 0x171   :  { %v7072_v21 = vpop.f32.mrf.mxu1  ;;  %v1274_v23 = vpop.permute.xlu1 %1273  ;;  %6910 = vmatprep.mubr.msk.bf16.mxu0 %vm7831_vm0, %v11682_v5  ;;  %v931_v50 = vpack.c.bf16 %v5818_v29, %v5817_v33 }
 0x172   :  { %v6812_v24 = vpop.f32.mrf.mxu0  ;;  %vm1525_vm12 = vcmp.eq.s32.totalorder %v8085_v8, %v1274_v23  ;;  %v1271_v27 = vpop.permute.xlu0 %1270  ;;  %431 = vperm.xlu1 %7818, %v119_v16  }
 0x173   :  { %v5943_v34 = vsel %vm1525_vm12, 1.0, %v11682_v5  ;;  %vm1524_vm13 = vcmp.eq.s32.totalorder %v8085_v8, %v1271_v27  ;;  %v8958_v36 = vpop.f32.mrf.mxu1  ;;  %428 = vperm.xlu0 %7817, %v118_v20   ;;  %v1059_v24 = vld [vmem:[%s11675_s1 + $0x2f8] sm:$0xff] }
 0x174   :  { %v5942_v38 = vsel %vm1524_vm13, 1.0, %v11682_v5  ;;  %v8964_v40 = vpop.f32.mrf.mxu0 }
 0x175   :  { %v1869_v46 = vpack.c.bf16 %v5943_v34, %v5942_v38  ;;  %v7073_v48 = vpop.f32.mrf.mxu1  ;;  %v342_v49 = vpop.permute.xlu1 %341  ;;  %v1058_v34 = vld [vmem:[%s11675_s1 + $0x2f0] sm:$0xff] }
 0x176   :  { %v6813_v51 = vpop.f32.mrf.mxu0  ;;  %v339_v54 = vpop.permute.xlu0 %338  ;;  %1369 = vperm.xlu1 %7818, %v1057_v37   ;;  %vm589_vm14 = vcmp.eq.s32.totalorder %v8085_v8, %v342_v49 }
 0x177   :  { %v8973_v59 = vpop.f32.mrf.mxu1  ;;  %1366 = vperm.xlu0 %7817, %v1056_v45   ;;  %7171 = vmatmul.mubr.msk.bf16.gmra.mxu1 %vm1934_vm5, %v1869_v46  ;;  %vm588_vm15 = vcmp.eq.s32.totalorder %v8085_v8, %v339_v54  ;;  %v5820_v16 = vsel %vm589_vm14, 1.0, %v11682_v5  ;;  %v123_v54 = vld [vmem:[%s11676_s0 + $0x308] sm:$0xff] }
 0x178   :  { %v8981_v0 = vpop.f32.mrf.mxu0  ;;  %6911 = vmatmul.mubr.msk.bf16.gmra.mxu0 %vm1934_vm5, %v931_v50  ;;  %7174 = vmatprep.mubr.msk.bf16.mxu1 %vm7831_vm0, %v11682_v5  ;;  %v5819_v20 = vsel %vm588_vm15, 1.0, %v11682_v5 }
 0x179   :  { %v7076_v9 = vpop.f32.mrf.mxu1  ;;  %v1280_v12 = vpop.permute.xlu1 %1279  ;;  %6914 = vmatprep.mubr.msk.bf16.mxu0 %vm7831_vm0, %v11682_v5  ;;  %v932_v48 = vpack.c.bf16 %v5820_v16, %v5819_v20 }
 0x17a   :  { %v6816_v13 = vpop.f32.mrf.mxu0  ;;  %vm1527_vm1 = vcmp.eq.s32.totalorder %v8085_v8, %v1280_v12  ;;  %v1277_v14 = vpop.permute.xlu0 %1276  ;;  %437 = vperm.xlu1 %7818, %v121_v63  }
 0x17b   :  { %v5945_v21 = vsel %vm1527_vm1, 1.0, %v11682_v5  ;;  %vm1526_vm2 = vcmp.eq.s32.totalorder %v8085_v8, %v1277_v14  ;;  %v8996_v23 = vpop.f32.mrf.mxu1  ;;  %434 = vperm.xlu0 %7817, %v120_v3   ;;  %v122_v3 = vld [vmem:[%s11676_s0 + $0x300] sm:$0xff] }
 0x17c   :  { %v5944_v27 = vsel %vm1526_vm2, 1.0, %v11682_v5  ;;  %v9002_v29 = vpop.f32.mrf.mxu0 }
 0x17d   :  { %v1870_v37 = vpack.c.bf16 %v5945_v21, %v5944_v27  ;;  %v7077_v45 = vpop.f32.mrf.mxu1  ;;  %v348_v46 = vpop.permute.xlu1 %347  ;;  %v1061_v27 = vld [vmem:[%s11675_s1 + $0x308] sm:$0xff] }
 0x17e   :  { %v6817_v49 = vpop.f32.mrf.mxu0  ;;  %v345_v50 = vpop.permute.xlu0 %344  ;;  %1375 = vperm.xlu1 %7818, %v1059_v24   ;;  %vm591_vm3 = vcmp.eq.s32.totalorder %v8085_v8, %v348_v46  ;;  %v1060_v46 = vld [vmem:[%s11675_s1 + $0x300] sm:$0xff] }
 0x17f   :  { %v9011_v51 = vpop.f32.mrf.mxu1  ;;  %1372 = vperm.xlu0 %7817, %v1058_v34   ;;  %7175 = vmatmul.mubr.msk.bf16.gmra.mxu1 %vm1934_vm5, %v1870_v37  ;;  %vm590_vm4 = vcmp.eq.s32.totalorder %v8085_v8, %v345_v50  ;;  %v5822_v16 = vsel %vm591_vm3, 1.0, %v11682_v5 }
 0x180   :  { %v9019_v63 = vpop.f32.mrf.mxu0  ;;  %6915 = vmatmul.mubr.msk.bf16.gmra.mxu0 %vm1934_vm5, %v932_v48  ;;  %7178 = vmatprep.mubr.msk.bf16.mxu1 %vm7831_vm0, %v11682_v5  ;;  %v5821_v20 = vsel %vm590_vm4, 1.0, %v11682_v5 }
 0x181   :  { %v7080_v9 = vpop.f32.mrf.mxu1  ;;  %v1286_v12 = vpop.permute.xlu1 %1285  ;;  %6918 = vmatprep.mubr.msk.bf16.mxu0 %vm7831_vm0, %v11682_v5 }
 0x182   :  { %v6820_v13 = vpop.f32.mrf.mxu0  ;;  %vm1529_vm6 = vcmp.eq.s32.totalorder %v8085_v8, %v1286_v12  ;;  %v1283_v14 = vpop.permute.xlu0 %1282  ;;  %443 = vperm.xlu1 %7818, %v123_v54  }
 0x183   :  { %v5947_v21 = vsel %vm1529_vm6, 1.0, %v11682_v5  ;;  %vm1528_vm7 = vcmp.eq.s32.totalorder %v8085_v8, %v1283_v14  ;;  %v9034_v24 = vpop.f32.mrf.mxu1  ;;  %440 = vperm.xlu0 %7817, %v122_v3   ;;  %v933_v3 = vpack.c.bf16 %v5822_v16, %v5821_v20  ;;  %v125_v14 = vld [vmem:[%s11676_s0 + $0x318] sm:$0xff]  ;;  %v124_v16 = vld [vmem:[%s11676_s0 + $0x310] sm:$0xff] }
 0x184   :  { %v5946_v34 = vsel %vm1528_vm7, 1.0, %v11682_v5  ;;  %v9040_v37 = vpop.f32.mrf.mxu0 }
 0x185   :  { %v1871_v48 = vpack.c.bf16 %v5947_v21, %v5946_v34  ;;  %v7081_v50 = vpop.f32.mrf.mxu1  ;;  %v354_v54 = vpop.permute.xlu1 %353 }
 0x186   :  { %v6821_v9 = vpop.f32.mrf.mxu0  ;;  %v351_v12 = vpop.permute.xlu0 %350  ;;  %1381 = vperm.xlu1 %7818, %v1061_v27   ;;  %vm593_vm8 = vcmp.eq.s32.totalorder %v8085_v8, %v354_v54 }
 0x187   :  { %v9049_v13 = vpop.f32.mrf.mxu1  ;;  %1378 = vperm.xlu0 %7817, %v1060_v46   ;;  %7179 = vmatmul.mubr.msk.bf16.gmra.mxu1 %vm1934_vm5, %v1871_v48  ;;  %vm592_vm9 = vcmp.eq.s32.totalorder %v8085_v8, %v351_v12  ;;  %v5824_v48 = vsel %vm593_vm8, 1.0, %v11682_v5  ;;  %v1063_v9 = vld [vmem:[%s11675_s1 + $0x318] sm:$0xff] }
 0x188   :  { %v9057_v21 = vpop.f32.mrf.mxu0  ;;  %6919 = vmatmul.mubr.msk.bf16.gmra.mxu0 %vm1934_vm5, %v933_v3  ;;  %7182 = vmatprep.mubr.msk.bf16.mxu1 %vm7831_vm0, %v11682_v5  ;;  %v5823_v50 = vsel %vm592_vm9, 1.0, %v11682_v5 }
 0x189   :  { %v7084_v20 = vpop.f32.mrf.mxu1  ;;  %v1292_v27 = vpop.permute.xlu1 %1291  ;;  %6922 = vmatprep.mubr.msk.bf16.mxu0 %vm7831_vm0, %v11682_v5  ;;  %v934_v49 = vpack.c.bf16 %v5824_v48, %v5823_v50 }
 0x18a   :  { %v6824_v34 = vpop.f32.mrf.mxu0  ;;  %vm1531_vm10 = vcmp.eq.s32.totalorder %v8085_v8, %v1292_v27  ;;  %v1289_v46 = vpop.permute.xlu0 %1288  ;;  %449 = vperm.xlu1 %7818, %v125_v14   ;;  %v1062_v27 = vld [vmem:[%s11675_s1 + $0x310] sm:$0xff]  ;;  %v127_v14 = vld [vmem:[%s11676_s0 + $0x328] sm:$0xff] }
 0x18b   :  { %v5949_v54 = vsel %vm1531_vm10, 1.0, %v11682_v5  ;;  %vm1530_vm11 = vcmp.eq.s32.totalorder %v8085_v8, %v1289_v46  ;;  %v9072_v3 = vpop.f32.mrf.mxu1  ;;  %446 = vperm.xlu0 %7817, %v124_v16  }
 0x18c   :  { %v5948_v12 = vsel %vm1530_vm11, 1.0, %v11682_v5  ;;  %v9078_v20 = vpop.f32.mrf.mxu0 }
 0x18d   :  { %v1872_v34 = vpack.c.bf16 %v5949_v54, %v5948_v12  ;;  %v7085_v16 = vpop.f32.mrf.mxu1  ;;  %v360_v45 = vpop.permute.xlu1 %359 }
 0x18e   :  { %v6825_v33 = vpop.f32.mrf.mxu0  ;;  %v357_v38 = vpop.permute.xlu0 %356  ;;  %1387 = vperm.xlu1 %7818, %v1063_v9   ;;  %vm595_vm12 = vcmp.eq.s32.totalorder %v8085_v8, %v360_v45 }
 0x18f   :  { %v9087_v44 = vpop.f32.mrf.mxu1  ;;  %1384 = vperm.xlu0 %7817, %v1062_v27   ;;  %7183 = vmatmul.mubr.msk.bf16.gmra.mxu1 %vm1934_vm5, %v1872_v34  ;;  %vm594_vm13 = vcmp.eq.s32.totalorder %v8085_v8, %v357_v38  ;;  %v126_v33 = vld [vmem:[%s11676_s0 + $0x320] sm:$0xff]  ;;  %v5826_v45 = vsel %vm595_vm12, 1.0, %v11682_v5  ;;  %v1065_v34 = vld [vmem:[%s11675_s1 + $0x328] sm:$0xff] }
 0x190   :  { %v9095_v54 = vpop.f32.mrf.mxu0  ;;  %6923 = vmatmul.mubr.msk.bf16.gmra.mxu0 %vm1934_vm5, %v934_v49  ;;  %7186 = vmatprep.mubr.msk.bf16.mxu1 %vm7831_vm0, %v11682_v5  ;;  %v5825_v49 = vsel %vm594_vm13, 1.0, %v11682_v5 }
 0x191   :  { %v7088_v48 = vpop.f32.mrf.mxu1  ;;  %v1298_v50 = vpop.permute.xlu1 %1297  ;;  %6926 = vmatprep.mubr.msk.bf16.mxu0 %vm7831_vm0, %v11682_v5  ;;  %v935_v47 = vpack.c.bf16 %v5826_v45, %v5825_v49 }
 0x192   :  { %v6828_v9 = vpop.f32.mrf.mxu0  ;;  %vm1533_vm14 = vcmp.eq.s32.totalorder %v8085_v8, %v1298_v50  ;;  %v1295_v38 = vpop.permute.xlu0 %1294  ;;  %455 = vperm.xlu1 %7818, %v127_v14   ;;  %v1064_v50 = vld [vmem:[%s11675_s1 + $0x320] sm:$0xff]  ;;  %v129_v14 = vld [vmem:[%s11676_s0 + $0x338] sm:$0xff] }
 0x193   :  { %v5951_v12 = vsel %vm1533_vm14, 1.0, %v11682_v5  ;;  %vm1532_vm15 = vcmp.eq.s32.totalorder %v8085_v8, %v1295_v38  ;;  %v9110_v27 = vpop.f32.mrf.mxu1  ;;  %452 = vperm.xlu0 %7817, %v126_v33  }
 0x194   :  { %v5950_v16 = vsel %vm1532_vm15, 1.0, %v11682_v5  ;;  %v9116_v48 = vpop.f32.mrf.mxu0 }
 0x195   :  { %v1873_v9 = vpack.c.bf16 %v5951_v12, %v5950_v16  ;;  %v7089_v33 = vpop.f32.mrf.mxu1  ;;  %v366_v46 = vpop.permute.xlu1 %365 }
 0x196   :  { %v6829_v62 = vpop.f32.mrf.mxu0  ;;  %v363_v1 = vpop.permute.xlu0 %362  ;;  %1393 = vperm.xlu1 %7818, %v1065_v34   ;;  %vm597_vm1 = vcmp.eq.s32.totalorder %v8085_v8, %v366_v46 }
 0x197   :  { %v9125_v26 = vpop.f32.mrf.mxu1  ;;  %1390 = vperm.xlu0 %7817, %v1064_v50   ;;  %7187 = vmatmul.mubr.msk.bf16.gmra.mxu1 %vm1934_vm5, %v1873_v9  ;;  %vm596_vm2 = vcmp.eq.s32.totalorder %v8085_v8, %v363_v1  ;;  %v128_v62 = vld [vmem:[%s11676_s0 + $0x330] sm:$0xff]  ;;  %v5828_v46 = vsel %vm597_vm1, 1.0, %v11682_v5  ;;  %v1067_v9 = vld [vmem:[%s11675_s1 + $0x338] sm:$0xff] }
 0x198   :  { %11841 = vst [vmem:[#allocation2_spill] sm:$0xff] %v9125_v26  ;;  %v9133_v12 = vpop.f32.mrf.mxu0  ;;  %6927 = vmatmul.mubr.msk.bf16.gmra.mxu0 %vm1934_vm5, %v935_v47  ;;  %7190 = vmatprep.mubr.msk.bf16.mxu1 %vm7831_vm0, %v11682_v5  ;;  %v5827_v47 = vsel %vm596_vm2, 1.0, %v11682_v5 }
 0x199   :  { %v7092_v45 = vpop.f32.mrf.mxu1  ;;  %v1304_v49 = vpop.permute.xlu1 %1303  ;;  %6930 = vmatprep.mubr.msk.bf16.mxu0 %vm7831_vm0, %v11682_v5  ;;  %v936_v30 = vpack.c.bf16 %v5828_v46, %v5827_v47 }
 0x19a   :  { %v6832_v34 = vpop.f32.mrf.mxu0  ;;  %vm1535_vm3 = vcmp.eq.s32.totalorder %v8085_v8, %v1304_v49  ;;  %v1301_v1 = vpop.permute.xlu0 %1300  ;;  %461 = vperm.xlu1 %7818, %v129_v14   ;;  %v1066_v49 = vld [vmem:[%s11675_s1 + $0x330] sm:$0xff]  ;;  %v131_v14 = vld [vmem:[%s11676_s0 + $0x348] sm:$0xff] }
 0x19b   :  { %v5953_v16 = vsel %vm1535_vm3, 1.0, %v11682_v5  ;;  %vm1534_vm4 = vcmp.eq.s32.totalorder %v8085_v8, %v1301_v1  ;;  %v9148_v50 = vpop.f32.mrf.mxu1  ;;  %458 = vperm.xlu0 %7817, %v128_v62  }
 0x19c   :  { %v5952_v33 = vsel %vm1534_vm4, 1.0, %v11682_v5  ;;  %v9154_v45 = vpop.f32.mrf.mxu0 }
 0x19d   :  { %v1874_v34 = vpack.c.bf16 %v5953_v16, %v5952_v33  ;;  %v7093_v62 = vpop.f32.mrf.mxu1  ;;  %v372_v38 = vpop.permute.xlu1 %371 }
 0x19e   :  { %v6833_v58 = vpop.f32.mrf.mxu0  ;;  %v369_v61 = vpop.permute.xlu0 %368  ;;  %1399 = vperm.xlu1 %7818, %v1067_v9   ;;  %vm599_vm6 = vcmp.eq.s32.totalorder %v8085_v8, %v372_v38 }
 0x19f   :  { %v9163_v32 = vpop.f32.mrf.mxu1  ;;  %1396 = vperm.xlu0 %7817, %v1066_v49   ;;  %7191 = vmatmul.mubr.msk.bf16.gmra.mxu1 %vm1934_vm5, %v1874_v34  ;;  %vm598_vm7 = vcmp.eq.s32.totalorder %v8085_v8, %v369_v61  ;;  %v130_v58 = vld [vmem:[%s11676_s0 + $0x340] sm:$0xff]  ;;  %v5830_v38 = vsel %vm599_vm6, 1.0, %v11682_v5  ;;  %v1069_v34 = vld [vmem:[%s11675_s1 + $0x348] sm:$0xff] }
 0x1a0   :  { %11842 = vst [vmem:[#allocation3_spill] sm:$0xff] %v9163_v32  ;;  %v9171_v16 = vpop.f32.mrf.mxu0  ;;  %6931 = vmatmul.mubr.msk.bf16.gmra.mxu0 %vm1934_vm5, %v936_v30  ;;  %7194 = vmatprep.mubr.msk.bf16.mxu1 %vm7831_vm0, %v11682_v5  ;;  %v5829_v30 = vsel %vm598_vm7, 1.0, %v11682_v5 }
 0x1a1   :  { %11843 = vst [vmem:[#allocation4_spill] sm:$0xff] %v9171_v16  ;;  %v7096_v46 = vpop.f32.mrf.mxu1  ;;  %v1310_v47 = vpop.permute.xlu1 %1309  ;;  %6934 = vmatprep.mubr.msk.bf16.mxu0 %vm7831_vm0, %v11682_v5  ;;  %v937_v35 = vpack.c.bf16 %v5830_v38, %v5829_v30  ;;  %v11848_v38 = vmov 0.0  }
 0x1a2   :  { %v6836_v9 = vpop.f32.mrf.mxu0  ;;  %vm1537_vm8 = vcmp.eq.s32.totalorder %v8085_v8, %v1310_v47  ;;  %v1307_v61 = vpop.permute.xlu0 %1306  ;;  %467 = vperm.xlu1 %7818, %v131_v14   ;;  %v1068_v47 = vld [vmem:[%s11675_s1 + $0x340] sm:$0xff]  ;;  %v133_v14 = vld [vmem:[%s11676_s0 + $0x358] sm:$0xff] }
 0x1a3   :  { %v5955_v33 = vsel %vm1537_vm8, 1.0, %v11682_v5  ;;  %vm1536_vm9 = vcmp.eq.s32.totalorder %v8085_v8, %v1307_v61  ;;  %v9186_v49 = vpop.f32.mrf.mxu1  ;;  %464 = vperm.xlu0 %7817, %v130_v58  }
 0x1a4   :  { %11844 = vst [vmem:[#allocation5_spill] sm:$0xff] %v9186_v49  ;;  %v5954_v62 = vsel %vm1536_vm9, 1.0, %v11682_v5  ;;  %v9192_v46 = vpop.f32.mrf.mxu0 }
 0x1a5   :  { %11845 = vst [vmem:[#allocation6_spill] sm:$0xff] %v9192_v46  ;;  %v1875_v9 = vpack.c.bf16 %v5955_v33, %v5954_v62  ;;  %v7097_v58 = vpop.f32.mrf.mxu1  ;;  %v378_v1 = vpop.permute.xlu1 %377 }
 0x1a6   :  { %v6837_v6 = vpop.f32.mrf.mxu0  ;;  %v375_v11 = vpop.permute.xlu0 %374  ;;  %1405 = vperm.xlu1 %7818, %v1069_v34   ;;  %vm601_vm10 = vcmp.eq.s32.totalorder %v8085_v8, %v378_v1  ;;  %v1071_v58 = vld [vmem:[%s11675_s1 + $0x358] sm:$0xff] }
 0x1a7   :  { %v9201_v5 = vpop.f32.mrf.mxu1  ;;  %1402 = vperm.xlu0 %7817, %v1068_v47   ;;  %7195 = vmatmul.mubr.msk.bf16.gmra.mxu1 %vm1934_vm5, %v1875_v9  ;;  %vm600_vm11 = vcmp.eq.s32.totalorder %v8085_v8, %v375_v11  ;;  %v132_v6 = vld [vmem:[%s11676_s0 + $0x350] sm:$0xff]  ;;  %v5832_v1 = vsel %vm601_vm10, 1.0, %v11848_v38 }
 0x1a8   :  { %11846 = vst [vmem:[#allocation7_spill] sm:$0xff] %v9201_v5  ;;  %v9209_v33 = vpop.f32.mrf.mxu0  ;;  %6935 = vmatmul.mubr.msk.bf16.gmra.mxu0 %vm1934_vm5, %v937_v35  ;;  %7198 = vmatprep.mubr.msk.bf16.mxu1 %vm7831_vm0, %v11848_v38  ;;  %v5831_v35 = vsel %vm600_vm11, 1.0, %v11848_v38 }
 0x1a9   :  { %11847 = vst [vmem:[#allocation8_spill] sm:$0xff] %v9209_v33  ;;  %v7100_v30 = vpop.f32.mrf.mxu1  ;;  %v1316_v34 = vpop.permute.xlu1 %1315  ;;  %6938 = vmatprep.mubr.msk.bf16.mxu0 %vm7831_vm0, %v11848_v38  ;;  %v938_v49 = vpack.c.bf16 %v5832_v1, %v5831_v35 }
 0x1aa   :  { %v6840_v62 = vpop.f32.mrf.mxu0  ;;  %vm1539_vm12 = vcmp.eq.s32.totalorder %v8085_v8, %v1316_v34  ;;  %v1313_v11 = vpop.permute.xlu0 %1312  ;;  %473 = vperm.xlu1 %7818, %v133_v14   ;;  %v135_v14 = vld [vmem:[%s11676_s0 + $0x368] sm:$0xff] }
 0x1ab   :  { %v5957_v47 = vsel %vm1539_vm12, 1.0, %v11848_v38  ;;  %vm1538_vm13 = vcmp.eq.s32.totalorder %v8085_v8, %v1313_v11  ;;  %v9224_v9 = vpop.f32.mrf.mxu1  ;;  %470 = vperm.xlu0 %7817, %v132_v6   ;;  %v1070_v62 = vld [vmem:[%s11675_s1 + $0x350] sm:$0xff] }
 0x1ac   :  { %11849 = vst [vmem:[#allocation9_spill] sm:$0xff] %v9224_v9  ;;  %v5956_v30 = vsel %vm1538_vm13, 1.0, %v11848_v38  ;;  %v9230_v34 = vpop.f32.mrf.mxu0 }
 0x1ad   :  { %11850 = vst [vmem:[#allocation10_spill] sm:$0xff] %v9230_v34  ;;  %v1876_v61 = vpack.c.bf16 %v5957_v47, %v5956_v30  ;;  %v7101_v6 = vpop.f32.mrf.mxu1  ;;  %v384_v32 = vpop.permute.xlu1 %383 }
 0x1ae   :  { %v6841_v16 = vpop.f32.mrf.mxu0  ;;  %v381_v46 = vpop.permute.xlu0 %380  ;;  %1411 = vperm.xlu1 %7818, %v1071_v58   ;;  %vm603_vm14 = vcmp.eq.s32.totalorder %v8085_v8, %v384_v32 }
 0x1af   :  { %v9239_v26 = vpop.f32.mrf.mxu1  ;;  %1408 = vperm.xlu0 %7817, %v1070_v62   ;;  %7199 = vmatmul.mubr.msk.bf16.gmra.mxu1 %vm1934_vm5, %v1876_v61  ;;  %vm602_vm15 = vcmp.eq.s32.totalorder %v8085_v8, %v381_v46  ;;  %v134_v16 = vld [vmem:[%s11676_s0 + $0x360] sm:$0xff]  ;;  %v5834_v46 = vsel %vm603_vm14, 1.0, %v11848_v38  ;;  %v1073_v62 = vld [vmem:[%s11675_s1 + $0x368] sm:$0xff] }
 0x1b0   :  { %11851 = vst [vmem:[#allocation11_spill] sm:$0xff] %v9239_v26  ;;  %v9247_v47 = vpop.f32.mrf.mxu0  ;;  %6939 = vmatmul.mubr.msk.bf16.gmra.mxu0 %vm1934_vm5, %v938_v49  ;;  %7202 = vmatprep.mubr.msk.bf16.mxu1 %vm7831_vm0, %v11848_v38  ;;  %v5833_v49 = vsel %vm602_vm15, 1.0, %v11848_v38 }
 0x1b1   :  { %11852 = vst [vmem:[#allocation12_spill] sm:$0xff] %v9247_v47  ;;  %v7104_v61 = vpop.f32.mrf.mxu1  ;;  %v1322_v1 = vpop.permute.xlu1 %1321  ;;  %6942 = vmatprep.mubr.msk.bf16.mxu0 %vm7831_vm0, %v11848_v38  ;;  %v939_v5 = vpack.c.bf16 %v5834_v46, %v5833_v49 }
 0x1b2   :  { %v6844_v35 = vpop.f32.mrf.mxu0  ;;  %vm1541_vm1 = vcmp.eq.s32.totalorder %v8085_v8, %v1322_v1  ;;  %v1319_v32 = vpop.permute.xlu0 %1318  ;;  %479 = vperm.xlu1 %7818, %v135_v14   ;;  %v1072_v1 = vld [vmem:[%s11675_s1 + $0x360] sm:$0xff]  ;;  %v137_v14 = vld [vmem:[%s11676_s0 + $0x378] sm:$0xff] }
 0x1b3   :  { %v5959_v58 = vsel %vm1541_vm1, 1.0, %v11848_v38  ;;  %vm1540_vm2 = vcmp.eq.s32.totalorder %v8085_v8, %v1319_v32  ;;  %v9262_v30 = vpop.f32.mrf.mxu1  ;;  %476 = vperm.xlu0 %7817, %v134_v16  }
 0x1b4   :  { %11853 = vst [vmem:[#allocation13_spill] sm:$0xff] %v9262_v30  ;;  %v5958_v6 = vsel %vm1540_vm2, 1.0, %v11848_v38  ;;  %v9268_v61 = vpop.f32.mrf.mxu0 }
 0x1b5   :  { %11854 = vst [vmem:[#allocation14_spill] sm:$0xff] %v9268_v61  ;;  %v1877_v35 = vpack.c.bf16 %v5959_v58, %v5958_v6  ;;  %v7105_v16 = vpop.f32.mrf.mxu1  ;;  %v390_v11 = vpop.permute.xlu1 %389 }
 0x1b6   :  { %v6845_v9 = vpop.f32.mrf.mxu0  ;;  %v387_v33 = vpop.permute.xlu0 %386  ;;  %1417 = vperm.xlu1 %7818, %v1073_v62   ;;  %vm605_vm3 = vcmp.eq.s32.totalorder %v8085_v8, %v390_v11 }
 0x1b7   :  { %v9277_v34 = vpop.f32.mrf.mxu1  ;;  %1414 = vperm.xlu0 %7817, %v1072_v1   ;;  %7203 = vmatmul.mubr.msk.bf16.gmra.mxu1 %vm1934_vm5, %v1877_v35  ;;  %vm604_vm4 = vcmp.eq.s32.totalorder %v8085_v8, %v387_v33  ;;  %v136_v9 = vld [vmem:[%s11676_s0 + $0x370] sm:$0xff]  ;;  %v5836_v11 = vsel %vm605_vm3, 1.0, %v11848_v38  ;;  %v1075_v35 = vld [vmem:[%s11675_s1 + $0x378] sm:$0xff] }
 0x1b8   :  { %11855 = vst [vmem:[#allocation15_spill] sm:$0xff] %v9277_v34  ;;  %v9285_v58 = vpop.f32.mrf.mxu0  ;;  %6943 = vmatmul.mubr.msk.bf16.gmra.mxu0 %vm1934_vm5, %v939_v5  ;;  %7206 = vmatprep.mubr.msk.bf16.mxu1 %vm7831_vm0, %v11848_v38  ;;  %v5835_v5 = vsel %vm604_vm4, 1.0, %v11848_v38 }
 0x1b9   :  { %11856 = vst [vmem:[#allocation16_spill] sm:$0xff] %v9285_v58  ;;  %v7108_v46 = vpop.f32.mrf.mxu1  ;;  %v1328_v49 = vpop.permute.xlu1 %1327  ;;  %6946 = vmatprep.mubr.msk.bf16.mxu0 %vm7831_vm0, %v11848_v38  ;;  %v940_v26 = vpack.c.bf16 %v5836_v11, %v5835_v5 }
 0x1ba   :  { %v6848_v62 = vpop.f32.mrf.mxu0  ;;  %vm1543_vm6 = vcmp.eq.s32.totalorder %v8085_v8, %v1328_v49  ;;  %v1325_v33 = vpop.permute.xlu0 %1324  ;;  %485 = vperm.xlu1 %7818, %v137_v14   ;;  %v1074_v49 = vld [vmem:[%s11675_s1 + $0x370] sm:$0xff]  ;;  %v139_v14 = vld [vmem:[%s11676_s0 + $0x388] sm:$0xff] }
 0x1bb   :  { %v5961_v6 = vsel %vm1543_vm6, 1.0, %v11848_v38  ;;  %vm1542_vm7 = vcmp.eq.s32.totalorder %v8085_v8, %v1325_v33  ;;  %v9300_v1 = vpop.f32.mrf.mxu1  ;;  %482 = vperm.xlu0 %7817, %v136_v9  }
 0x1bc   :  { %11857 = vst [vmem:[#allocation17_spill] sm:$0xff] %v9300_v1  ;;  %v5960_v16 = vsel %vm1542_vm7, 1.0, %v11848_v38  ;;  %v9306_v46 = vpop.f32.mrf.mxu0 }
 0x1bd   :  { %11858 = vst [vmem:[#allocation18_spill] sm:$0xff] %v9306_v46  ;;  %v1878_v62 = vpack.c.bf16 %v5961_v6, %v5960_v16  ;;  %v7109_v9 = vpop.f32.mrf.mxu1  ;;  %v396_v32 = vpop.permute.xlu1 %395 }
 0x1be   :  { %v6849_v30 = vpop.f32.mrf.mxu0  ;;  %v393_v47 = vpop.permute.xlu0 %392  ;;  %1423 = vperm.xlu1 %7818, %v1075_v35   ;;  %vm607_vm8 = vcmp.eq.s32.totalorder %v8085_v8, %v396_v32 }
 0x1bf   :  { %v9315_v61 = vpop.f32.mrf.mxu1  ;;  %1420 = vperm.xlu0 %7817, %v1074_v49   ;;  %7207 = vmatmul.mubr.msk.bf16.gmra.mxu1 %vm1934_vm5, %v1878_v62  ;;  %vm606_vm9 = vcmp.eq.s32.totalorder %v8085_v8, %v393_v47  ;;  %v138_v30 = vld [vmem:[%s11676_s0 + $0x380] sm:$0xff]  ;;  %v5838_v32 = vsel %vm607_vm8, 1.0, %v11848_v38  ;;  %v1077_v62 = vld [vmem:[%s11675_s1 + $0x388] sm:$0xff] }
 0x1c0   :  { %11859 = vst [vmem:[#allocation19_spill] sm:$0xff] %v9315_v61  ;;  %v9323_v6 = vpop.f32.mrf.mxu0  ;;  %6947 = vmatmul.mubr.msk.bf16.gmra.mxu0 %vm1934_vm5, %v940_v26  ;;  %7210 = vmatprep.mubr.msk.bf16.mxu1 %vm7831_vm0, %v11848_v38  ;;  %v5837_v26 = vsel %vm606_vm9, 1.0, %v11848_v38 }
 0x1c1   :  { %11860 = vst [vmem:[#allocation20_spill] sm:$0xff] %v9323_v6  ;;  %v7112_v11 = vpop.f32.mrf.mxu1  ;;  %v1334_v5 = vpop.permute.xlu1 %1333  ;;  %6950 = vmatprep.mubr.msk.bf16.mxu0 %vm7831_vm0, %v11848_v38  ;;  %v941_v34 = vpack.c.bf16 %v5838_v32, %v5837_v26 }
 0x1c2   :  { %v6852_v35 = vpop.f32.mrf.mxu0  ;;  %vm1545_vm10 = vcmp.eq.s32.totalorder %v8085_v8, %v1334_v5  ;;  %v1331_v47 = vpop.permute.xlu0 %1330  ;;  %491 = vperm.xlu1 %7818, %v139_v14   ;;  %v1076_v5 = vld [vmem:[%s11675_s1 + $0x380] sm:$0xff]  ;;  %v141_v14 = vld [vmem:[%s11676_s0 + $0x398] sm:$0xff] }
 0x1c3   :  { %v5963_v16 = vsel %vm1545_vm10, 1.0, %v11848_v38  ;;  %vm1544_vm11 = vcmp.eq.s32.totalorder %v8085_v8, %v1331_v47  ;;  %v9338_v49 = vpop.f32.mrf.mxu1  ;;  %488 = vperm.xlu0 %7817, %v138_v30  }
 0x1c4   :  { %11861 = vst [vmem:[#allocation21_spill] sm:$0xff] %v9338_v49  ;;  %v5962_v9 = vsel %vm1544_vm11, 1.0, %v11848_v38  ;;  %v9344_v11 = vpop.f32.mrf.mxu0 }
 0x1c5   :  { %11862 = vst [vmem:[#allocation22_spill] sm:$0xff] %v9344_v11  ;;  %v1879_v35 = vpack.c.bf16 %v5963_v16, %v5962_v9  ;;  %v7113_v30 = vpop.f32.mrf.mxu1  ;;  %v402_v33 = vpop.permute.xlu1 %401 }
 0x1c6   :  { %v6853_v1 = vpop.f32.mrf.mxu0  ;;  %v399_v58 = vpop.permute.xlu0 %398  ;;  %1429 = vperm.xlu1 %7818, %v1077_v62   ;;  %vm609_vm12 = vcmp.eq.s32.totalorder %v8085_v8, %v402_v33 }
 0x1c7   :  { %v9353_v46 = vpop.f32.mrf.mxu1  ;;  %1426 = vperm.xlu0 %7817, %v1076_v5   ;;  %7211 = vmatmul.mubr.msk.bf16.gmra.mxu1 %vm1934_vm5, %v1879_v35  ;;  %vm608_vm13 = vcmp.eq.s32.totalorder %v8085_v8, %v399_v58  ;;  %v140_v1 = vld [vmem:[%s11676_s0 + $0x390] sm:$0xff]  ;;  %v5840_v33 = vsel %vm609_vm12, 1.0, %v11848_v38  ;;  %v1079_v35 = vld [vmem:[%s11675_s1 + $0x398] sm:$0xff] }
 0x1c8   :  { %11863 = vst [vmem:[#allocation23_spill] sm:$0xff] %v9353_v46  ;;  %v9361_v16 = vpop.f32.mrf.mxu0  ;;  %6951 = vmatmul.mubr.msk.bf16.gmra.mxu0 %vm1934_vm5, %v941_v34  ;;  %7214 = vmatprep.mubr.msk.bf16.mxu1 %vm7831_vm0, %v11848_v38  ;;  %v5839_v34 = vsel %vm608_vm13, 1.0, %v11848_v38 }
 0x1c9   :  { %11864 = vst [vmem:[#allocation24_spill] sm:$0xff] %v9361_v16  ;;  %v7116_v32 = vpop.f32.mrf.mxu1  ;;  %v1340_v26 = vpop.permute.xlu1 %1339  ;;  %6954 = vmatprep.mubr.msk.bf16.mxu0 %vm7831_vm0, %v11848_v38  ;;  %v942_v61 = vpack.c.bf16 %v5840_v33, %v5839_v34 }
 0x1ca   :  { %v6856_v62 = vpop.f32.mrf.mxu0  ;;  %vm1547_vm14 = vcmp.eq.s32.totalorder %v8085_v8, %v1340_v26  ;;  %v1337_v58 = vpop.permute.xlu0 %1336  ;;  %497 = vperm.xlu1 %7818, %v141_v14   ;;  %v1078_v26 = vld [vmem:[%s11675_s1 + $0x390] sm:$0xff]  ;;  %v143_v14 = vld [vmem:[%s11676_s0 + $0x3a8] sm:$0xff] }
 0x1cb   :  { %v5965_v9 = vsel %vm1547_vm14, 1.0, %v11848_v38  ;;  %vm1546_vm15 = vcmp.eq.s32.totalorder %v8085_v8, %v1337_v58  ;;  %v9376_v5 = vpop.f32.mrf.mxu1  ;;  %494 = vperm.xlu0 %7817, %v140_v1  }
 0x1cc   :  { %11865 = vst [vmem:[#allocation25_spill] sm:$0xff] %v9376_v5  ;;  %v5964_v30 = vsel %vm1546_vm15, 1.0, %v11848_v38  ;;  %v9382_v32 = vpop.f32.mrf.mxu0 }
 0x1cd   :  { %11866 = vst [vmem:[#allocation26_spill] sm:$0xff] %v9382_v32  ;;  %v1880_v62 = vpack.c.bf16 %v5965_v9, %v5964_v30  ;;  %v7117_v1 = vpop.f32.mrf.mxu1  ;;  %v408_v47 = vpop.permute.xlu1 %407 }
 0x1ce   :  { %v6857_v49 = vpop.f32.mrf.mxu0  ;;  %v405_v6 = vpop.permute.xlu0 %404  ;;  %1435 = vperm.xlu1 %7818, %v1079_v35   ;;  %vm611_vm1 = vcmp.eq.s32.totalorder %v8085_v8, %v408_v47 }
 0x1cf   :  { %v9391_v11 = vpop.f32.mrf.mxu1  ;;  %1432 = vperm.xlu0 %7817, %v1078_v26   ;;  %7215 = vmatmul.mubr.msk.bf16.gmra.mxu1 %vm1934_vm5, %v1880_v62  ;;  %vm610_vm2 = vcmp.eq.s32.totalorder %v8085_v8, %v405_v6  ;;  %v142_v49 = vld [vmem:[%s11676_s0 + $0x3a0] sm:$0xff]  ;;  %v5842_v47 = vsel %vm611_vm1, 1.0, %v11848_v38  ;;  %v1081_v62 = vld [vmem:[%s11675_s1 + $0x3a8] sm:$0xff] }
 0x1d0   :  { %11867 = vst [vmem:[#allocation27_spill] sm:$0xff] %v9391_v11  ;;  %v9399_v9 = vpop.f32.mrf.mxu0  ;;  %6955 = vmatmul.mubr.msk.bf16.gmra.mxu0 %vm1934_vm5, %v942_v61  ;;  %7218 = vmatprep.mubr.msk.bf16.mxu1 %vm7831_vm0, %v11848_v38  ;;  %v5841_v61 = vsel %vm610_vm2, 1.0, %v11848_v38 }
 0x1d1   :  { %11868 = vst [vmem:[#allocation28_spill] sm:$0xff] %v9399_v9  ;;  %v7120_v33 = vpop.f32.mrf.mxu1  ;;  %v1346_v34 = vpop.permute.xlu1 %1345  ;;  %6958 = vmatprep.mubr.msk.bf16.mxu0 %vm7831_vm0, %v11848_v38  ;;  %v943_v46 = vpack.c.bf16 %v5842_v47, %v5841_v61 }
 0x1d2   :  { %v6860_v35 = vpop.f32.mrf.mxu0  ;;  %vm1549_vm3 = vcmp.eq.s32.totalorder %v8085_v8, %v1346_v34  ;;  %v1343_v6 = vpop.permute.xlu0 %1342  ;;  %503 = vperm.xlu1 %7818, %v143_v14   ;;  %v1080_v34 = vld [vmem:[%s11675_s1 + $0x3a0] sm:$0xff]  ;;  %v145_v14 = vld [vmem:[%s11676_s0 + $0x3b8] sm:$0xff] }
 0x1d3   :  { %v5967_v30 = vsel %vm1549_vm3, 1.0, %v11848_v38  ;;  %vm1548_vm4 = vcmp.eq.s32.totalorder %v8085_v8, %v1343_v6  ;;  %v9414_v26 = vpop.f32.mrf.mxu1  ;;  %500 = vperm.xlu0 %7817, %v142_v49  }
 0x1d4   :  { %11869 = vst [vmem:[#allocation29_spill] sm:$0xff] %v9414_v26  ;;  %v5966_v1 = vsel %vm1548_vm4, 1.0, %v11848_v38  ;;  %v9420_v33 = vpop.f32.mrf.mxu0 }
 0x1d5   :  { %11870 = vst [vmem:[#allocation30_spill] sm:$0xff] %v9420_v33  ;;  %v1881_v35 = vpack.c.bf16 %v5967_v30, %v5966_v1  ;;  %v7121_v49 = vpop.f32.mrf.mxu1  ;;  %v414_v58 = vpop.permute.xlu1 %413 }
 0x1d6   :  { %v6861_v5 = vpop.f32.mrf.mxu0  ;;  %v411_v16 = vpop.permute.xlu0 %410  ;;  %1441 = vperm.xlu1 %7818, %v1081_v62   ;;  %vm613_vm6 = vcmp.eq.s32.totalorder %v8085_v8, %v414_v58 }
 0x1d7   :  { %v9429_v32 = vpop.f32.mrf.mxu1  ;;  %1438 = vperm.xlu0 %7817, %v1080_v34   ;;  %7219 = vmatmul.mubr.msk.bf16.gmra.mxu1 %vm1934_vm5, %v1881_v35  ;;  %vm612_vm7 = vcmp.eq.s32.totalorder %v8085_v8, %v411_v16  ;;  %v144_v5 = vld [vmem:[%s11676_s0 + $0x3b0] sm:$0xff]  ;;  %v5844_v58 = vsel %vm613_vm6, 1.0, %v11848_v38  ;;  %v1083_v35 = vld [vmem:[%s11675_s1 + $0x3b8] sm:$0xff] }
 0x1d8   :  { %11871 = vst [vmem:[#allocation31_spill] sm:$0xff] %v9429_v32  ;;  %v9437_v30 = vpop.f32.mrf.mxu0  ;;  %6959 = vmatmul.mubr.msk.bf16.gmra.mxu0 %vm1934_vm5, %v943_v46  ;;  %7222 = vmatprep.mubr.msk.bf16.mxu1 %vm7831_vm0, %v11848_v38  ;;  %v5843_v46 = vsel %vm612_vm7, 1.0, %v11848_v38 }
 0x1d9   :  { %11872 = vst [vmem:[#allocation32_spill] sm:$0xff] %v9437_v30  ;;  %v7124_v47 = vpop.f32.mrf.mxu1  ;;  %v1352_v61 = vpop.permute.xlu1 %1351  ;;  %6962 = vmatprep.mubr.msk.bf16.mxu0 %vm7831_vm0, %v11848_v38  ;;  %v944_v11 = vpack.c.bf16 %v5844_v58, %v5843_v46 }
 0x1da   :  { %v6864_v62 = vpop.f32.mrf.mxu0  ;;  %vm1551_vm8 = vcmp.eq.s32.totalorder %v8085_v8, %v1352_v61  ;;  %v1349_v16 = vpop.permute.xlu0 %1348  ;;  %509 = vperm.xlu1 %7818, %v145_v14   ;;  %v1082_v61 = vld [vmem:[%s11675_s1 + $0x3b0] sm:$0xff]  ;;  %v147_v14 = vld [vmem:[%s11676_s0 + $0x3c8] sm:$0xff] }
 0x1db   :  { %v5969_v1 = vsel %vm1551_vm8, 1.0, %v11848_v38  ;;  %vm1550_vm9 = vcmp.eq.s32.totalorder %v8085_v8, %v1349_v16  ;;  %v9452_v34 = vpop.f32.mrf.mxu1  ;;  %506 = vperm.xlu0 %7817, %v144_v5  }
 0x1dc   :  { %11873 = vst [vmem:[#allocation33_spill] sm:$0xff] %v9452_v34  ;;  %v5968_v49 = vsel %vm1550_vm9, 1.0, %v11848_v38  ;;  %v9458_v47 = vpop.f32.mrf.mxu0 }
 0x1dd   :  { %11874 = vst [vmem:[#allocation34_spill] sm:$0xff] %v9458_v47  ;;  %v1882_v62 = vpack.c.bf16 %v5969_v1, %v5968_v49  ;;  %v7125_v5 = vpop.f32.mrf.mxu1  ;;  %v420_v6 = vpop.permute.xlu1 %419 }
 0x1de   :  { %v6865_v26 = vpop.f32.mrf.mxu0  ;;  %v417_v9 = vpop.permute.xlu0 %416  ;;  %1447 = vperm.xlu1 %7818, %v1083_v35   ;;  %vm615_vm10 = vcmp.eq.s32.totalorder %v8085_v8, %v420_v6 }
 0x1df   :  { %v9467_v33 = vpop.f32.mrf.mxu1  ;;  %1444 = vperm.xlu0 %7817, %v1082_v61   ;;  %7223 = vmatmul.mubr.msk.bf16.gmra.mxu1 %vm1934_vm5, %v1882_v62  ;;  %vm614_vm11 = vcmp.eq.s32.totalorder %v8085_v8, %v417_v9  ;;  %v146_v26 = vld [vmem:[%s11676_s0 + $0x3c0] sm:$0xff]  ;;  %v5846_v6 = vsel %vm615_vm10, 1.0, %v11848_v38  ;;  %v1085_v62 = vld [vmem:[%s11675_s1 + $0x3c8] sm:$0xff] }
 0x1e0   :  { %11875 = vst [vmem:[#allocation35_spill] sm:$0xff] %v9467_v33  ;;  %v9475_v1 = vpop.f32.mrf.mxu0  ;;  %6963 = vmatmul.mubr.msk.bf16.gmra.mxu0 %vm1934_vm5, %v944_v11  ;;  %7226 = vmatprep.mubr.msk.bf16.mxu1 %vm7831_vm0, %v11848_v38  ;;  %v5845_v11 = vsel %vm614_vm11, 1.0, %v11848_v38 }
 0x1e1   :  { %11876 = vst [vmem:[#allocation36_spill] sm:$0xff] %v9475_v1  ;;  %v7128_v58 = vpop.f32.mrf.mxu1  ;;  %v1358_v46 = vpop.permute.xlu1 %1357  ;;  %6966 = vmatprep.mubr.msk.bf16.mxu0 %vm7831_vm0, %v11848_v38  ;;  %v945_v32 = vpack.c.bf16 %v5846_v6, %v5845_v11 }
 0x1e2   :  { %v6868_v35 = vpop.f32.mrf.mxu0  ;;  %vm1553_vm12 = vcmp.eq.s32.totalorder %v8085_v8, %v1358_v46  ;;  %v1355_v9 = vpop.permute.xlu0 %1354  ;;  %515 = vperm.xlu1 %7818, %v147_v14   ;;  %v1084_v46 = vld [vmem:[%s11675_s1 + $0x3c0] sm:$0xff]  ;;  %v149_v14 = vld [vmem:[%s11676_s0 + $0x3d8] sm:$0xff] }
 0x1e3   :  { %v5971_v49 = vsel %vm1553_vm12, 1.0, %v11848_v38  ;;  %vm1552_vm13 = vcmp.eq.s32.totalorder %v8085_v8, %v1355_v9  ;;  %v9490_v61 = vpop.f32.mrf.mxu1  ;;  %512 = vperm.xlu0 %7817, %v146_v26  }
 0x1e4   :  { %11877 = vst [vmem:[#allocation37_spill] sm:$0xff] %v9490_v61  ;;  %v5970_v5 = vsel %vm1552_vm13, 1.0, %v11848_v38  ;;  %v9496_v58 = vpop.f32.mrf.mxu0 }
 0x1e5   :  { %11878 = vst [vmem:[#allocation38_spill] sm:$0xff] %v9496_v58  ;;  %v1883_v35 = vpack.c.bf16 %v5971_v49, %v5970_v5  ;;  %v7129_v26 = vpop.f32.mrf.mxu1  ;;  %v426_v16 = vpop.permute.xlu1 %425 }
 0x1e6   :  { %v6869_v34 = vpop.f32.mrf.mxu0  ;;  %v423_v30 = vpop.permute.xlu0 %422  ;;  %1453 = vperm.xlu1 %7818, %v1085_v62   ;;  %vm617_vm14 = vcmp.eq.s32.totalorder %v8085_v8, %v426_v16 }
 0x1e7   :  { %v9505_v47 = vpop.f32.mrf.mxu1  ;;  %1450 = vperm.xlu0 %7817, %v1084_v46   ;;  %7227 = vmatmul.mubr.msk.bf16.gmra.mxu1 %vm1934_vm5, %v1883_v35  ;;  %vm616_vm15 = vcmp.eq.s32.totalorder %v8085_v8, %v423_v30  ;;  %v148_v34 = vld [vmem:[%s11676_s0 + $0x3d0] sm:$0xff]  ;;  %v5848_v16 = vsel %vm617_vm14, 1.0, %v11848_v38  ;;  %v1087_v35 = vld [vmem:[%s11675_s1 + $0x3d8] sm:$0xff] }
 0x1e8   :  { %11879 = vst [vmem:[#allocation39_spill] sm:$0xff] %v9505_v47  ;;  %v9513_v49 = vpop.f32.mrf.mxu0  ;;  %6967 = vmatmul.mubr.msk.bf16.gmra.mxu0 %vm1934_vm5, %v945_v32  ;;  %7230 = vmatprep.mubr.msk.bf16.mxu1 %vm7831_vm0, %v11848_v38  ;;  %v5847_v32 = vsel %vm616_vm15, 1.0, %v11848_v38 }
 0x1e9   :  { %11880 = vst [vmem:[#allocation40_spill] sm:$0xff] %v9513_v49  ;;  %v7132_v6 = vpop.f32.mrf.mxu1  ;;  %v1364_v11 = vpop.permute.xlu1 %1363  ;;  %6970 = vmatprep.mubr.msk.bf16.mxu0 %vm7831_vm0, %v11848_v38  ;;  %v946_v33 = vpack.c.bf16 %v5848_v16, %v5847_v32 }
 0x1ea   :  { %v6872_v62 = vpop.f32.mrf.mxu0  ;;  %vm1555_vm1 = vcmp.eq.s32.totalorder %v8085_v8, %v1364_v11  ;;  %v1361_v30 = vpop.permute.xlu0 %1360  ;;  %521 = vperm.xlu1 %7818, %v149_v14   ;;  %v1086_v11 = vld [vmem:[%s11675_s1 + $0x3d0] sm:$0xff]  ;;  %v1088_v14 = vld [vmem:[%s11675_s1 + $0x3e0] sm:$0xff] }
 0x1eb   :  { %v5973_v5 = vsel %vm1555_vm1, 1.0, %v11848_v38  ;;  %vm1554_vm2 = vcmp.eq.s32.totalorder %v8085_v8, %v1361_v30  ;;  %v9528_v46 = vpop.f32.mrf.mxu1  ;;  %518 = vperm.xlu0 %7817, %v148_v34  }
 0x1ec   :  { %11881 = vst [vmem:[#allocation41_spill] sm:$0xff] %v9528_v46  ;;  %v5972_v26 = vsel %vm1554_vm2, 1.0, %v11848_v38  ;;  %v9534_v6 = vpop.f32.mrf.mxu0 }
 0x1ed   :  { %v1884_v62 = vpack.c.bf16 %v5973_v5, %v5972_v26  ;;  %v7133_v34 = vpop.f32.mrf.mxu1  ;;  %v432_v9 = vpop.permute.xlu1 %431 }
 0x1ee   :  { %v6873_v61 = vpop.f32.mrf.mxu0  ;;  %v429_v1 = vpop.permute.xlu0 %428  ;;  %1459 = vperm.xlu1 %7818, %v1087_v35   ;;  %vm619_vm3 = vcmp.eq.s32.totalorder %v8085_v8, %v432_v9 }
 0x1ef   :  { %v9543_v58 = vpop.f32.mrf.mxu1  ;;  %1456 = vperm.xlu0 %7817, %v1086_v11   ;;  %7231 = vmatmul.mubr.msk.bf16.gmra.mxu1 %vm1934_vm5, %v1884_v62  ;;  %vm618_vm4 = vcmp.eq.s32.totalorder %v8085_v8, %v429_v1  ;;  %v150_v61 = vld [vmem:[%s11676_s0 + $0x3e0] sm:$0xff]  ;;  %v5850_v9 = vsel %vm619_vm3, 1.0, %v11848_v38 }
 0x1f0   :  { %11882 = vst [vmem:[#allocation42_spill] sm:$0xff] %v9543_v58  ;;  %v9551_v5 = vpop.f32.mrf.mxu0  ;;  %6971 = vmatmul.mubr.msk.bf16.gmra.mxu0 %vm1934_vm5, %v946_v33  ;;  %7234 = vmatprep.mubr.msk.bf16.mxu1 %vm7831_vm0, %v11848_v38  ;;  %v5849_v33 = vsel %vm618_vm4, 1.0, %v11848_v38 }
 0x1f1   :  { %11883 = vst [vmem:[#allocation43_spill] sm:$0xff] %v9551_v5  ;;  %v7136_v16 = vpop.f32.mrf.mxu1  ;;  %v1370_v32 = vpop.permute.xlu1 %1369  ;;  %6974 = vmatprep.mubr.msk.bf16.mxu0 %vm7831_vm0, %v11848_v38  ;;  %v947_v47 = vpack.c.bf16 %v5850_v9, %v5849_v33 }
 0x1f2   :  { %v6876_v35 = vpop.f32.mrf.mxu0  ;;  %vm1557_vm6 = vcmp.eq.s32.totalorder %v8085_v8, %v1370_v32  ;;  %v1367_v1 = vpop.permute.xlu0 %1366  ;;  %1462 = vperm.xlu1 %7818, %v1088_v14  }
 0x1f3   :  { %v5975_v26 = vsel %vm1557_vm6, 1.0, %v11848_v38  ;;  %vm1556_vm7 = vcmp.eq.s32.totalorder %v8085_v8, %v1367_v1  ;;  %v9566_v11 = vpop.f32.mrf.mxu1  ;;  %524 = vperm.xlu0 %7817, %v150_v61  }
 0x1f4   :  { %11884 = vst [vmem:[#allocation44_spill] sm:$0xff] %v9566_v11  ;;  %v5974_v62 = vsel %vm1556_vm7, 1.0, %v11848_v38  ;;  %v9569_v34 = vpop.f32.mrf.mxu0 }
 0x1f5   :  { %11885 = vst [vmem:[#allocation45_spill] sm:$0xff] %v9569_v34  ;;  %v1885_v32 = vpack.c.bf16 %v5975_v26, %v5974_v62  ;;  %v7137_v35 = vpop.f32.mrf.mxu1  ;;  %v438_v30 = vpop.permute.xlu1 %437 }
 0x1f6   :  { %v6877_v46 = vpop.f32.mrf.mxu0  ;;  %v435_v49 = vpop.permute.xlu0 %434  ;;  %vm621_vm8 = vcmp.eq.s32.totalorder %v8085_v8, %v438_v30 }
 0x1f7   :  { %v9575_v1 = vpop.f32.mrf.mxu1  ;;  %7235 = vmatmul.mubr.msk.bf16.gmra.mxu1 %vm1934_vm5, %v1885_v32  ;;  %vm620_vm9 = vcmp.eq.s32.totalorder %v8085_v8, %v435_v49  ;;  %v5852_v30 = vsel %vm621_vm8, 1.0, %v11848_v38 }
 0x1f8   :  { %11886 = vst [vmem:[#allocation46_spill] sm:$0xff] %v9575_v1  ;;  %v9580_v61 = vpop.f32.mrf.mxu0  ;;  %6975 = vmatmul.mubr.msk.bf16.gmra.mxu0 %vm1934_vm5, %v947_v47  ;;  %7238 = vmatprep.mubr.msk.bf16.mxu1 %vm7831_vm0, %v11848_v38  ;;  %v5851_v49 = vsel %vm620_vm9, 1.0, %v11848_v38 }
 0x1f9   :  { %11887 = vst [vmem:[#allocation47_spill] sm:$0xff] %v9580_v61  ;;  %v7140_v26 = vpop.f32.mrf.mxu1  ;;  %v1376_v62 = vpop.permute.xlu1 %1375  ;;  %6978 = vmatprep.mubr.msk.bf16.mxu0 %vm7831_vm0, %v11848_v38  ;;  %v948_v58 = vpack.c.bf16 %v5852_v30, %v5851_v49 }
 0x1fa   :  { %v6880_v46 = vpop.f32.mrf.mxu0  ;;  %vm1559_vm10 = vcmp.eq.s32.totalorder %v8085_v8, %v1376_v62  ;;  %v1373_v9 = vpop.permute.xlu0 %1372 }
 0x1fb   :  { %v5977_v33 = vsel %vm1559_vm10, 1.0, %v11848_v38  ;;  %vm1558_vm11 = vcmp.eq.s32.totalorder %v8085_v8, %v1373_v9  ;;  %v9592_v47 = vpop.f32.mrf.mxu1 }
 0x1fc   :  { %11888 = vst [vmem:[#allocation48_spill] sm:$0xff] %v9592_v47  ;;  %v5976_v32 = vsel %vm1558_vm11, 1.0, %v11848_v38  ;;  %v9595_v35 = vpop.f32.mrf.mxu0 }
 0x1fd   :  { %11889 = vst [vmem:[#allocation49_spill] sm:$0xff] %v9595_v35  ;;  %v1886_v46 = vpack.c.bf16 %v5977_v33, %v5976_v32  ;;  %v7141_v16 = vpop.f32.mrf.mxu1  ;;  %v444_v14 = vpop.permute.xlu1 %443 }
 0x1fe   :  { %v6881_v11 = vpop.f32.mrf.mxu0  ;;  %v441_v5 = vpop.permute.xlu0 %440  ;;  %vm623_vm12 = vcmp.eq.s32.totalorder %v8085_v8, %v444_v14 }
 0x1ff   :  { %v9601_v34 = vpop.f32.mrf.mxu1  ;;  %7239 = vmatmul.mubr.msk.bf16.gmra.mxu1 %vm1934_vm5, %v1886_v46  ;;  %vm622_vm13 = vcmp.eq.s32.totalorder %v8085_v8, %v441_v5  ;;  %v5854_v14 = vsel %vm623_vm12, 1.0, %v11848_v38 }
 0x200   :  { %11890 = vst [vmem:[#allocation50_spill] sm:$0xff] %v9601_v34  ;;  %v9606_v9 = vpop.f32.mrf.mxu0  ;;  %6979 = vmatmul.mubr.msk.bf16.gmra.mxu0 %vm1934_vm5, %v948_v58  ;;  %7242 = vmatprep.mubr.msk.bf16.mxu1 %vm7831_vm0, %v11848_v38  ;;  %v5853_v5 = vsel %vm622_vm13, 1.0, %v11848_v38 }
 0x201   :  { %11891 = vst [vmem:[#allocation51_spill] sm:$0xff] %v9606_v9  ;;  %v7144_v16 = vpop.f32.mrf.mxu1  ;;  %v1382_v33 = vpop.permute.xlu1 %1381  ;;  %6982 = vmatprep.mubr.msk.bf16.mxu0 %vm7831_vm0, %v11848_v38  ;;  %v949_v1 = vpack.c.bf16 %v5854_v14, %v5853_v5 }
 0x202   :  { %v6884_v11 = vpop.f32.mrf.mxu0  ;;  %vm1561_vm14 = vcmp.eq.s32.totalorder %v8085_v8, %v1382_v33  ;;  %v1379_v30 = vpop.permute.xlu0 %1378 }
 0x203   :  { %v5979_v49 = vsel %vm1561_vm14, 1.0, %v11848_v38  ;;  %vm1560_vm15 = vcmp.eq.s32.totalorder %v8085_v8, %v1379_v30  ;;  %v9618_v58 = vpop.f32.mrf.mxu1 }
 0x204   :  { %11892 = vst [vmem:[#allocation52_spill] sm:$0xff] %v9618_v58  ;;  %v5978_v32 = vsel %vm1560_vm15, 1.0, %v11848_v38  ;;  %v9621_v46 = vpop.f32.mrf.mxu0 }
 0x205   :  { %11893 = vst [vmem:[#allocation53_spill] sm:$0xff] %v9621_v46  ;;  %v1887_v11 = vpack.c.bf16 %v5979_v49, %v5978_v32  ;;  %v7145_v26 = vpop.f32.mrf.mxu1  ;;  %v450_v62 = vpop.permute.xlu1 %449 }
 0x206   :  { %v6885_v47 = vpop.f32.mrf.mxu0  ;;  %v447_v61 = vpop.permute.xlu0 %446  ;;  %vm625_vm1 = vcmp.eq.s32.totalorder %v8085_v8, %v450_v62 }
 0x207   :  { %v9627_v35 = vpop.f32.mrf.mxu1  ;;  %7243 = vmatmul.mubr.msk.bf16.gmra.mxu1 %vm1934_vm5, %v1887_v11  ;;  %vm624_vm2 = vcmp.eq.s32.totalorder %v8085_v8, %v447_v61  ;;  %v5856_v62 = vsel %vm625_vm1, 1.0, %v11848_v38 }
 0x208   :  { %11894 = vst [vmem:[#allocation54_spill] sm:$0xff] %v9627_v35  ;;  %v9632_v30 = vpop.f32.mrf.mxu0  ;;  %6983 = vmatmul.mubr.msk.bf16.gmra.mxu0 %vm1934_vm5, %v949_v1  ;;  %7246 = vmatprep.mubr.msk.bf16.mxu1 %vm7831_vm0, %v11848_v38  ;;  %v5855_v61 = vsel %vm624_vm2, 1.0, %v11848_v38 }
 0x209   :  { %11895 = vst [vmem:[#allocation55_spill] sm:$0xff] %v9632_v30  ;;  %v7148_v26 = vpop.f32.mrf.mxu1  ;;  %v1388_v49 = vpop.permute.xlu1 %1387  ;;  %6986 = vmatprep.mubr.msk.bf16.mxu0 %vm7831_vm0, %v11848_v38  ;;  %v950_v34 = vpack.c.bf16 %v5856_v62, %v5855_v61 }
 0x20a   :  { %v6888_v47 = vpop.f32.mrf.mxu0  ;;  %vm1563_vm3 = vcmp.eq.s32.totalorder %v8085_v8, %v1388_v49  ;;  %v1385_v14 = vpop.permute.xlu0 %1384 }
 0x20b   :  { %v5981_v5 = vsel %vm1563_vm3, 1.0, %v11848_v38  ;;  %vm1562_vm4 = vcmp.eq.s32.totalorder %v8085_v8, %v1385_v14  ;;  %v9644_v1 = vpop.f32.mrf.mxu1 }
 0x20c   :  { %11896 = vst [vmem:[#allocation56_spill] sm:$0xff] %v9644_v1  ;;  %v5980_v32 = vsel %vm1562_vm4, 1.0, %v11848_v38  ;;  %v9647_v11 = vpop.f32.mrf.mxu0 }
 0x20d   :  { %11897 = vst [vmem:[#allocation57_spill] sm:$0xff] %v9647_v11  ;;  %v1888_v47 = vpack.c.bf16 %v5981_v5, %v5980_v32  ;;  %v7149_v16 = vpop.f32.mrf.mxu1  ;;  %v456_v33 = vpop.permute.xlu1 %455 }
 0x20e   :  { %v6889_v58 = vpop.f32.mrf.mxu0  ;;  %v453_v9 = vpop.permute.xlu0 %452  ;;  %vm627_vm6 = vcmp.eq.s32.totalorder %v8085_v8, %v456_v33 }
 0x20f   :  { %v9653_v46 = vpop.f32.mrf.mxu1  ;;  %7247 = vmatmul.mubr.msk.bf16.gmra.mxu1 %vm1934_vm5, %v1888_v47  ;;  %vm626_vm7 = vcmp.eq.s32.totalorder %v8085_v8, %v453_v9  ;;  %v5858_v33 = vsel %vm627_vm6, 1.0, %v11848_v38 }
 0x210   :  { %11898 = vst [vmem:[#allocation58_spill] sm:$0xff] %v9653_v46  ;;  %v9658_v14 = vpop.f32.mrf.mxu0  ;;  %6987 = vmatmul.mubr.msk.bf16.gmra.mxu0 %vm1934_vm5, %v950_v34  ;;  %7250 = vmatprep.mubr.msk.bf16.mxu1 %vm7831_vm0, %v11848_v38  ;;  %v5857_v9 = vsel %vm626_vm7, 1.0, %v11848_v38 }
 0x211   :  { %11899 = vst [vmem:[#allocation59_spill] sm:$0xff] %v9658_v14  ;;  %v7152_v16 = vpop.f32.mrf.mxu1  ;;  %v1394_v5 = vpop.permute.xlu1 %1393  ;;  %6990 = vmatprep.mubr.msk.bf16.mxu0 %vm7831_vm0, %v11848_v38  ;;  %v951_v35 = vpack.c.bf16 %v5858_v33, %v5857_v9 }
 0x212   :  { %v6892_v58 = vpop.f32.mrf.mxu0  ;;  %vm1565_vm8 = vcmp.eq.s32.totalorder %v8085_v8, %v1394_v5  ;;  %v1391_v62 = vpop.permute.xlu0 %1390 }
 0x213   :  { %v5983_v61 = vsel %vm1565_vm8, 1.0, %v11848_v38  ;;  %vm1564_vm9 = vcmp.eq.s32.totalorder %v8085_v8, %v1391_v62  ;;  %v9670_v34 = vpop.f32.mrf.mxu1 }
 0x214   :  { %11900 = vst [vmem:[#allocation60_spill] sm:$0xff] %v9670_v34  ;;  %v5982_v32 = vsel %vm1564_vm9, 1.0, %v11848_v38  ;;  %v9673_v47 = vpop.f32.mrf.mxu0 }
 0x215   :  { %11901 = vst [vmem:[#allocation61_spill] sm:$0xff] %v9673_v47  ;;  %v1889_v58 = vpack.c.bf16 %v5983_v61, %v5982_v32  ;;  %v7153_v26 = vpop.f32.mrf.mxu1  ;;  %v462_v49 = vpop.permute.xlu1 %461 }
 0x216   :  { %v6893_v1 = vpop.f32.mrf.mxu0  ;;  %v459_v30 = vpop.permute.xlu0 %458  ;;  %vm629_vm10 = vcmp.eq.s32.totalorder %v8085_v8, %v462_v49 }
 0x217   :  { %v9679_v11 = vpop.f32.mrf.mxu1  ;;  %7251 = vmatmul.mubr.msk.bf16.gmra.mxu1 %vm1934_vm5, %v1889_v58  ;;  %vm628_vm11 = vcmp.eq.s32.totalorder %v8085_v8, %v459_v30  ;;  %v5860_v49 = vsel %vm629_vm10, 1.0, %v11848_v38 }
 0x218   :  { %11902 = vst [vmem:[#allocation62_spill] sm:$0xff] %v9679_v11  ;;  %v9684_v62 = vpop.f32.mrf.mxu0  ;;  %6991 = vmatmul.mubr.msk.bf16.gmra.mxu0 %vm1934_vm5, %v951_v35  ;;  %7254 = vmatprep.mubr.msk.bf16.mxu1 %vm7831_vm0, %v11848_v38  ;;  %v5859_v30 = vsel %vm628_vm11, 1.0, %v11848_v38 }
 0x219   :  { %11903 = vst [vmem:[#allocation63_spill] sm:$0xff] %v9684_v62  ;;  %v7156_v26 = vpop.f32.mrf.mxu1  ;;  %v1400_v61 = vpop.permute.xlu1 %1399  ;;  %6994 = vmatprep.mubr.msk.bf16.mxu0 %vm7831_vm0, %v11848_v38  ;;  %v952_v46 = vpack.c.bf16 %v5860_v49, %v5859_v30 }
 0x21a   :  { %v6896_v1 = vpop.f32.mrf.mxu0  ;;  %vm1567_vm12 = vcmp.eq.s32.totalorder %v8085_v8, %v1400_v61  ;;  %v1397_v33 = vpop.permute.xlu0 %1396 }
 0x21b   :  { %v5985_v9 = vsel %vm1567_vm12, 1.0, %v11848_v38  ;;  %vm1566_vm13 = vcmp.eq.s32.totalorder %v8085_v8, %v1397_v33  ;;  %v9696_v35 = vpop.f32.mrf.mxu1 }
 0x21c   :  { %11904 = vst [vmem:[#allocation64_spill] sm:$0xff] %v9696_v35  ;;  %v5984_v32 = vsel %vm1566_vm13, 1.0, %v11848_v38  ;;  %v9699_v58 = vpop.f32.mrf.mxu0 }
 0x21d   :  { %11905 = vst [vmem:[#allocation65_spill] sm:$0xff] %v9699_v58  ;;  %v1890_v1 = vpack.c.bf16 %v5985_v9, %v5984_v32  ;;  %v7157_v16 = vpop.f32.mrf.mxu1  ;;  %v468_v5 = vpop.permute.xlu1 %467 }
 0x21e   :  { %v6897_v34 = vpop.f32.mrf.mxu0  ;;  %v465_v14 = vpop.permute.xlu0 %464  ;;  %vm631_vm14 = vcmp.eq.s32.totalorder %v8085_v8, %v468_v5 }
 0x21f   :  { %v9705_v47 = vpop.f32.mrf.mxu1  ;;  %7255 = vmatmul.mubr.msk.bf16.gmra.mxu1 %vm1934_vm5, %v1890_v1  ;;  %vm630_vm15 = vcmp.eq.s32.totalorder %v8085_v8, %v465_v14  ;;  %v5862_v5 = vsel %vm631_vm14, 1.0, %v11848_v38 }
 0x220   :  { %11906 = vst [vmem:[#allocation66_spill] sm:$0xff] %v9705_v47  ;;  %v9710_v33 = vpop.f32.mrf.mxu0  ;;  %6995 = vmatmul.mubr.msk.bf16.gmra.mxu0 %vm1934_vm5, %v952_v46  ;;  %7258 = vmatprep.mubr.msk.bf16.mxu1 %vm7831_vm0, %v11848_v38  ;;  %v5861_v14 = vsel %vm630_vm15, 1.0, %v11848_v38 }
 0x221   :  { %11907 = vst [vmem:[#allocation67_spill] sm:$0xff] %v9710_v33  ;;  %v7160_v16 = vpop.f32.mrf.mxu1  ;;  %v1406_v9 = vpop.permute.xlu1 %1405  ;;  %6998 = vmatprep.mubr.msk.bf16.mxu0 %vm7831_vm0, %v11848_v38  ;;  %v953_v11 = vpack.c.bf16 %v5862_v5, %v5861_v14 }
 0x222   :  { %v6900_v34 = vpop.f32.mrf.mxu0  ;;  %vm1569_vm1 = vcmp.eq.s32.totalorder %v8085_v8, %v1406_v9  ;;  %v1403_v49 = vpop.permute.xlu0 %1402 }
 0x223   :  { %v5987_v30 = vsel %vm1569_vm1, 1.0, %v11848_v38  ;;  %vm1568_vm2 = vcmp.eq.s32.totalorder %v8085_v8, %v1403_v49  ;;  %v9722_v46 = vpop.f32.mrf.mxu1 }
 0x224   :  { %11908 = vst [vmem:[#allocation68_spill] sm:$0xff] %v9722_v46  ;;  %v5986_v32 = vsel %vm1568_vm2, 1.0, %v11848_v38  ;;  %v9725_v1 = vpop.f32.mrf.mxu0 }
 0x225   :  { %11909 = vst [vmem:[#allocation69_spill] sm:$0xff] %v9725_v1  ;;  %v1891_v34 = vpack.c.bf16 %v5987_v30, %v5986_v32  ;;  %v7161_v26 = vpop.f32.mrf.mxu1  ;;  %v474_v61 = vpop.permute.xlu1 %473 }
 0x226   :  { %v6901_v35 = vpop.f32.mrf.mxu0  ;;  %v471_v62 = vpop.permute.xlu0 %470  ;;  %vm633_vm3 = vcmp.eq.s32.totalorder %v8085_v8, %v474_v61 }
 0x227   :  { %v9731_v58 = vpop.f32.mrf.mxu1  ;;  %7259 = vmatmul.mubr.msk.bf16.gmra.mxu1 %vm1934_vm5, %v1891_v34  ;;  %vm632_vm4 = vcmp.eq.s32.totalorder %v8085_v8, %v471_v62  ;;  %v5864_v61 = vsel %vm633_vm3, 1.0, %v11848_v38 }
 0x228   :  { %11910 = vst [vmem:[#allocation70_spill] sm:$0xff] %v9731_v58  ;;  %v9736_v49 = vpop.f32.mrf.mxu0  ;;  %6999 = vmatmul.mubr.msk.bf16.gmra.mxu0 %vm1934_vm5, %v953_v11  ;;  %7262 = vmatprep.mubr.msk.bf16.mxu1 %vm7831_vm0, %v11848_v38  ;;  %v5863_v62 = vsel %vm632_vm4, 1.0, %v11848_v38 }
 0x229   :  { %11911 = vst [vmem:[#allocation71_spill] sm:$0xff] %v9736_v49  ;;  %v7164_v26 = vpop.f32.mrf.mxu1  ;;  %v1412_v30 = vpop.permute.xlu1 %1411  ;;  %7002 = vmatprep.mubr.msk.bf16.mxu0 %vm7831_vm0, %v11848_v38  ;;  %v954_v47 = vpack.c.bf16 %v5864_v61, %v5863_v62 }
 0x22a   :  { %v6904_v35 = vpop.f32.mrf.mxu0  ;;  %vm1571_vm6 = vcmp.eq.s32.totalorder %v8085_v8, %v1412_v30  ;;  %v1409_v5 = vpop.permute.xlu0 %1408 }
 0x22b   :  { %v5989_v14 = vsel %vm1571_vm6, 1.0, %v11848_v38  ;;  %vm1570_vm7 = vcmp.eq.s32.totalorder %v8085_v8, %v1409_v5  ;;  %v9748_v11 = vpop.f32.mrf.mxu1 }
 0x22c   :  { %11912 = vst [vmem:[#allocation72_spill] sm:$0xff] %v9748_v11  ;;  %v5988_v32 = vsel %vm1570_vm7, 1.0, %v11848_v38  ;;  %v9751_v34 = vpop.f32.mrf.mxu0 }
 0x22d   :  { %11913 = vst [vmem:[#allocation73_spill] sm:$0xff] %v9751_v34  ;;  %v1892_v35 = vpack.c.bf16 %v5989_v14, %v5988_v32  ;;  %v7165_v16 = vpop.f32.mrf.mxu1  ;;  %v480_v9 = vpop.permute.xlu1 %479 }
 0x22e   :  { %v6905_v46 = vpop.f32.mrf.mxu0  ;;  %v477_v33 = vpop.permute.xlu0 %476  ;;  %vm635_vm8 = vcmp.eq.s32.totalorder %v8085_v8, %v480_v9 }
 0x22f   :  { %v9757_v1 = vpop.f32.mrf.mxu1  ;;  %7263 = vmatmul.mubr.msk.bf16.gmra.mxu1 %vm1934_vm5, %v1892_v35  ;;  %vm634_vm9 = vcmp.eq.s32.totalorder %v8085_v8, %v477_v33  ;;  %v5866_v9 = vsel %vm635_vm8, 1.0, %v11848_v38 }
 0x230   :  { %11914 = vst [vmem:[#allocation74_spill] sm:$0xff] %v9757_v1  ;;  %v9762_v5 = vpop.f32.mrf.mxu0  ;;  %7003 = vmatmul.mubr.msk.bf16.gmra.mxu0 %vm1934_vm5, %v954_v47  ;;  %7266 = vmatprep.mubr.msk.bf16.mxu1 %vm7831_vm0, %v11848_v38  ;;  %v5865_v33 = vsel %vm634_vm9, 1.0, %v11848_v38 }
 0x231   :  { %11915 = vst [vmem:[#allocation75_spill] sm:$0xff] %v9762_v5  ;;  %v7168_v16 = vpop.f32.mrf.mxu1  ;;  %v1418_v14 = vpop.permute.xlu1 %1417  ;;  %7006 = vmatprep.mubr.msk.bf16.mxu0 %vm7831_vm0, %v11848_v38  ;;  %v955_v58 = vpack.c.bf16 %v5866_v9, %v5865_v33 }
 0x232   :  { %v6908_v46 = vpop.f32.mrf.mxu0  ;;  %vm1573_vm10 = vcmp.eq.s32.totalorder %v8085_v8, %v1418_v14  ;;  %v1415_v61 = vpop.permute.xlu0 %1414 }
 0x233   :  { %v5991_v62 = vsel %vm1573_vm10, 1.0, %v11848_v38  ;;  %vm1572_vm11 = vcmp.eq.s32.totalorder %v8085_v8, %v1415_v61  ;;  %v9774_v47 = vpop.f32.mrf.mxu1 }
 0x234   :  { %11916 = vst [vmem:[#allocation76_spill] sm:$0xff] %v9774_v47  ;;  %v5990_v32 = vsel %vm1572_vm11, 1.0, %v11848_v38  ;;  %v9777_v35 = vpop.f32.mrf.mxu0 }
 0x235   :  { %11917 = vst [vmem:[#allocation77_spill] sm:$0xff] %v9777_v35  ;;  %v1893_v46 = vpack.c.bf16 %v5991_v62, %v5990_v32  ;;  %v7169_v26 = vpop.f32.mrf.mxu1  ;;  %v486_v30 = vpop.permute.xlu1 %485 }
 0x236   :  { %v6909_v11 = vpop.f32.mrf.mxu0  ;;  %v483_v49 = vpop.permute.xlu0 %482  ;;  %vm637_vm12 = vcmp.eq.s32.totalorder %v8085_v8, %v486_v30 }
 0x237   :  { %v9783_v34 = vpop.f32.mrf.mxu1  ;;  %7267 = vmatmul.mubr.msk.bf16.gmra.mxu1 %vm1934_vm5, %v1893_v46  ;;  %vm636_vm13 = vcmp.eq.s32.totalorder %v8085_v8, %v483_v49  ;;  %v5868_v30 = vsel %vm637_vm12, 1.0, %v11848_v38 }
 0x238   :  { %11918 = vst [vmem:[#allocation78_spill] sm:$0xff] %v9783_v34  ;;  %v9788_v61 = vpop.f32.mrf.mxu0  ;;  %7007 = vmatmul.mubr.msk.bf16.gmra.mxu0 %vm1934_vm5, %v955_v58  ;;  %7270 = vmatprep.mubr.msk.bf16.mxu1 %vm7831_vm0, %v11848_v38  ;;  %v5867_v49 = vsel %vm636_vm13, 1.0, %v11848_v38 }
 0x239   :  { %11919 = vst [vmem:[#allocation79_spill] sm:$0xff] %v9788_v61  ;;  %v7172_v26 = vpop.f32.mrf.mxu1  ;;  %v1424_v62 = vpop.permute.xlu1 %1423  ;;  %7010 = vmatprep.mubr.msk.bf16.mxu0 %vm7831_vm0, %v11848_v38  ;;  %v956_v1 = vpack.c.bf16 %v5868_v30, %v5867_v49 }
 0x23a   :  { %v6912_v11 = vpop.f32.mrf.mxu0  ;;  %vm1575_vm14 = vcmp.eq.s32.totalorder %v8085_v8, %v1424_v62  ;;  %v1421_v9 = vpop.permute.xlu0 %1420 }
 0x23b   :  { %v5993_v33 = vsel %vm1575_vm14, 1.0, %v11848_v38  ;;  %vm1574_vm15 = vcmp.eq.s32.totalorder %v8085_v8, %v1421_v9  ;;  %v9800_v58 = vpop.f32.mrf.mxu1 }
 0x23c   :  { %11920 = vst [vmem:[#allocation80_spill] sm:$0xff] %v9800_v58  ;;  %v5992_v32 = vsel %vm1574_vm15, 1.0, %v11848_v38  ;;  %v9803_v46 = vpop.f32.mrf.mxu0 }
 0x23d   :  { %11921 = vst [vmem:[#allocation81_spill] sm:$0xff] %v9803_v46  ;;  %v1894_v11 = vpack.c.bf16 %v5993_v33, %v5992_v32  ;;  %v7173_v16 = vpop.f32.mrf.mxu1  ;;  %v492_v14 = vpop.permute.xlu1 %491 }
 0x23e   :  { %v6913_v47 = vpop.f32.mrf.mxu0  ;;  %v489_v5 = vpop.permute.xlu0 %488  ;;  %vm639_vm1 = vcmp.eq.s32.totalorder %v8085_v8, %v492_v14 }
 0x23f   :  { %v9809_v35 = vpop.f32.mrf.mxu1  ;;  %7271 = vmatmul.mubr.msk.bf16.gmra.mxu1 %vm1934_vm5, %v1894_v11  ;;  %vm638_vm2 = vcmp.eq.s32.totalorder %v8085_v8, %v489_v5  ;;  %v5870_v14 = vsel %vm639_vm1, 1.0, %v11848_v38 }
 0x240   :  { %11922 = vst [vmem:[#allocation82_spill] sm:$0xff] %v9809_v35  ;;  %v9814_v9 = vpop.f32.mrf.mxu0  ;;  %7011 = vmatmul.mubr.msk.bf16.gmra.mxu0 %vm1934_vm5, %v956_v1  ;;  %7274 = vmatprep.mubr.msk.bf16.mxu1 %vm7831_vm0, %v11848_v38  ;;  %v5869_v5 = vsel %vm638_vm2, 1.0, %v11848_v38 }
 0x241   :  { %11923 = vst [vmem:[#allocation83_spill] sm:$0xff] %v9814_v9  ;;  %v7176_v16 = vpop.f32.mrf.mxu1  ;;  %v1430_v33 = vpop.permute.xlu1 %1429  ;;  %7014 = vmatprep.mubr.msk.bf16.mxu0 %vm7831_vm0, %v11848_v38  ;;  %v957_v34 = vpack.c.bf16 %v5870_v14, %v5869_v5 }
 0x242   :  { %v6916_v47 = vpop.f32.mrf.mxu0  ;;  %vm1577_vm3 = vcmp.eq.s32.totalorder %v8085_v8, %v1430_v33  ;;  %v1427_v30 = vpop.permute.xlu0 %1426 }
 0x243   :  { %v5995_v49 = vsel %vm1577_vm3, 1.0, %v11848_v38  ;;  %vm1576_vm4 = vcmp.eq.s32.totalorder %v8085_v8, %v1427_v30  ;;  %v9826_v1 = vpop.f32.mrf.mxu1 }
 0x244   :  { %11924 = vst [vmem:[#allocation84_spill] sm:$0xff] %v9826_v1  ;;  %v5994_v32 = vsel %vm1576_vm4, 1.0, %v11848_v38  ;;  %v9829_v11 = vpop.f32.mrf.mxu0 }
 0x245   :  { %11925 = vst [vmem:[#allocation85_spill] sm:$0xff] %v9829_v11  ;;  %v1895_v47 = vpack.c.bf16 %v5995_v49, %v5994_v32  ;;  %v7177_v26 = vpop.f32.mrf.mxu1  ;;  %v498_v62 = vpop.permute.xlu1 %497 }
 0x246   :  { %v6917_v58 = vpop.f32.mrf.mxu0  ;;  %v495_v61 = vpop.permute.xlu0 %494  ;;  %vm641_vm6 = vcmp.eq.s32.totalorder %v8085_v8, %v498_v62 }
 0x247   :  { %v9835_v46 = vpop.f32.mrf.mxu1  ;;  %7275 = vmatmul.mubr.msk.bf16.gmra.mxu1 %vm1934_vm5, %v1895_v47  ;;  %vm640_vm7 = vcmp.eq.s32.totalorder %v8085_v8, %v495_v61  ;;  %v5872_v62 = vsel %vm641_vm6, 1.0, %v11848_v38 }
 0x248   :  { %11926 = vst [vmem:[#allocation86_spill] sm:$0xff] %v9835_v46  ;;  %v9840_v30 = vpop.f32.mrf.mxu0  ;;  %7015 = vmatmul.mubr.msk.bf16.gmra.mxu0 %vm1934_vm5, %v957_v34  ;;  %7278 = vmatprep.mubr.msk.bf16.mxu1 %vm7831_vm0, %v11848_v38  ;;  %v5871_v61 = vsel %vm640_vm7, 1.0, %v11848_v38 }
 0x249   :  { %11927 = vst [vmem:[#allocation87_spill] sm:$0xff] %v9840_v30  ;;  %v7180_v26 = vpop.f32.mrf.mxu1  ;;  %v1436_v49 = vpop.permute.xlu1 %1435  ;;  %7018 = vmatprep.mubr.msk.bf16.mxu0 %vm7831_vm0, %v11848_v38  ;;  %v958_v35 = vpack.c.bf16 %v5872_v62, %v5871_v61 }
 0x24a   :  { %v6920_v58 = vpop.f32.mrf.mxu0  ;;  %vm1579_vm8 = vcmp.eq.s32.totalorder %v8085_v8, %v1436_v49  ;;  %v1433_v14 = vpop.permute.xlu0 %1432 }
 0x24b   :  { %v5997_v5 = vsel %vm1579_vm8, 1.0, %v11848_v38  ;;  %vm1578_vm9 = vcmp.eq.s32.totalorder %v8085_v8, %v1433_v14  ;;  %v9852_v34 = vpop.f32.mrf.mxu1 }
 0x24c   :  { %11928 = vst [vmem:[#allocation88_spill] sm:$0xff] %v9852_v34  ;;  %v5996_v32 = vsel %vm1578_vm9, 1.0, %v11848_v38  ;;  %v9855_v47 = vpop.f32.mrf.mxu0 }
 0x24d   :  { %11929 = vst [vmem:[#allocation89_spill] sm:$0xff] %v9855_v47  ;;  %v1896_v58 = vpack.c.bf16 %v5997_v5, %v5996_v32  ;;  %v7181_v16 = vpop.f32.mrf.mxu1  ;;  %v504_v33 = vpop.permute.xlu1 %503 }
 0x24e   :  { %v6921_v1 = vpop.f32.mrf.mxu0  ;;  %v501_v9 = vpop.permute.xlu0 %500  ;;  %vm643_vm10 = vcmp.eq.s32.totalorder %v8085_v8, %v504_v33 }
 0x24f   :  { %v9861_v11 = vpop.f32.mrf.mxu1  ;;  %7279 = vmatmul.mubr.msk.bf16.gmra.mxu1 %vm1934_vm5, %v1896_v58  ;;  %vm642_vm11 = vcmp.eq.s32.totalorder %v8085_v8, %v501_v9  ;;  %v5874_v33 = vsel %vm643_vm10, 1.0, %v11848_v38 }
 0x250   :  { %11930 = vst [vmem:[#allocation90_spill] sm:$0xff] %v9861_v11  ;;  %v9866_v14 = vpop.f32.mrf.mxu0  ;;  %7019 = vmatmul.mubr.msk.bf16.gmra.mxu0 %vm1934_vm5, %v958_v35  ;;  %7282 = vmatprep.mubr.msk.bf16.mxu1 %vm7831_vm0, %v11848_v38  ;;  %v5873_v9 = vsel %vm642_vm11, 1.0, %v11848_v38 }
 0x251   :  { %11931 = vst [vmem:[#allocation91_spill] sm:$0xff] %v9866_v14  ;;  %v7184_v16 = vpop.f32.mrf.mxu1  ;;  %v1442_v5 = vpop.permute.xlu1 %1441  ;;  %7022 = vmatprep.mubr.msk.bf16.mxu0 %vm7831_vm0, %v11848_v38  ;;  %v959_v46 = vpack.c.bf16 %v5874_v33, %v5873_v9 }
 0x252   :  { %v6924_v1 = vpop.f32.mrf.mxu0  ;;  %vm1581_vm12 = vcmp.eq.s32.totalorder %v8085_v8, %v1442_v5  ;;  %v1439_v62 = vpop.permute.xlu0 %1438 }
 0x253   :  { %v5999_v61 = vsel %vm1581_vm12, 1.0, %v11848_v38  ;;  %vm1580_vm13 = vcmp.eq.s32.totalorder %v8085_v8, %v1439_v62  ;;  %v9878_v35 = vpop.f32.mrf.mxu1 }
 0x254   :  { %11932 = vst [vmem:[#allocation92_spill] sm:$0xff] %v9878_v35  ;;  %v5998_v32 = vsel %vm1580_vm13, 1.0, %v11848_v38  ;;  %v9881_v58 = vpop.f32.mrf.mxu0 }
 0x255   :  { %11933 = vst [vmem:[#allocation93_spill] sm:$0xff] %v9881_v58  ;;  %v1897_v1 = vpack.c.bf16 %v5999_v61, %v5998_v32  ;;  %v7185_v26 = vpop.f32.mrf.mxu1  ;;  %v510_v49 = vpop.permute.xlu1 %509 }
 0x256   :  { %v6925_v34 = vpop.f32.mrf.mxu0  ;;  %v507_v30 = vpop.permute.xlu0 %506  ;;  %vm645_vm14 = vcmp.eq.s32.totalorder %v8085_v8, %v510_v49 }
 0x257   :  { %v9887_v47 = vpop.f32.mrf.mxu1  ;;  %7283 = vmatmul.mubr.msk.bf16.gmra.mxu1 %vm1934_vm5, %v1897_v1  ;;  %vm644_vm15 = vcmp.eq.s32.totalorder %v8085_v8, %v507_v30  ;;  %v5876_v49 = vsel %vm645_vm14, 1.0, %v11848_v38  ;;  %vm3531_vm14 = vcmask 261120  }
 0x258   :  { %11934 = vst [vmem:[#allocation94_spill] sm:$0xff] %v9887_v47  ;;  %v9892_v62 = vpop.f32.mrf.mxu0  ;;  %7023 = vmatmul.mubr.msk.bf16.gmra.mxu0 %vm1934_vm5, %v959_v46  ;;  %7286 = vmatprep.mubr.msk.bf16.mxu1 %vm7831_vm0, %v11848_v38  ;;  %v5875_v30 = vsel %vm644_vm15, 1.0, %v11848_v38 }
 0x259   :  { %11935 = vst [vmem:[#allocation95_spill] sm:$0xff] %v9892_v62  ;;  %v7188_v26 = vpop.f32.mrf.mxu1  ;;  %v1448_v61 = vpop.permute.xlu1 %1447  ;;  %7026 = vmatprep.mubr.msk.bf16.mxu0 %vm7831_vm0, %v11848_v38  ;;  %v960_v11 = vpack.c.bf16 %v5876_v49, %v5875_v30 }
 0x25a   :  { %v6928_v34 = vpop.f32.mrf.mxu0  ;;  %vm1583_vm1 = vcmp.eq.s32.totalorder %v8085_v8, %v1448_v61  ;;  %v1445_v33 = vpop.permute.xlu0 %1444 }
 0x25b   :  { %v6001_v9 = vsel %vm1583_vm1, 1.0, %v11848_v38  ;;  %vm1582_vm2 = vcmp.eq.s32.totalorder %v8085_v8, %v1445_v33  ;;  %v9904_v46 = vpop.f32.mrf.mxu1 }
 0x25c   :  { %11936 = vst [vmem:[#allocation96_spill] sm:$0xff] %v9904_v46  ;;  %v6000_v32 = vsel %vm1582_vm2, 1.0, %v11848_v38  ;;  %v9907_v1 = vpop.f32.mrf.mxu0 }
 0x25d   :  { %11937 = vst [vmem:[#allocation97_spill] sm:$0xff] %v9907_v1  ;;  %v1898_v34 = vpack.c.bf16 %v6001_v9, %v6000_v32  ;;  %v7189_v16 = vpop.f32.mrf.mxu1  ;;  %v516_v5 = vpop.permute.xlu1 %515 }
 0x25e   :  { %v6929_v35 = vpop.f32.mrf.mxu0  ;;  %v513_v14 = vpop.permute.xlu0 %512  ;;  %vm647_vm3 = vcmp.eq.s32.totalorder %v8085_v8, %v516_v5 }
 0x25f   :  { %v9913_v58 = vpop.f32.mrf.mxu1  ;;  %7287 = vmatmul.mubr.msk.bf16.gmra.mxu1 %vm1934_vm5, %v1898_v34  ;;  %vm646_vm4 = vcmp.eq.s32.totalorder %v8085_v8, %v513_v14  ;;  %v5878_v5 = vsel %vm647_vm3, 1.0, %v11848_v38 }
 0x260   :  { %11938 = vst [vmem:[#allocation98_spill] sm:$0xff] %v9913_v58  ;;  %v9918_v33 = vpop.f32.mrf.mxu0  ;;  %7027 = vmatmul.mubr.msk.bf16.gmra.mxu0 %vm1934_vm5, %v960_v11  ;;  %7290 = vmatprep.mubr.msk.bf16.mxu1 %vm7831_vm0, %v11848_v38  ;;  %v5877_v14 = vsel %vm646_vm4, 1.0, %v11848_v38 }
 0x261   :  { %11939 = vst [vmem:[#allocation99_spill] sm:$0xff] %v9918_v33  ;;  %v7192_v16 = vpop.f32.mrf.mxu1  ;;  %v1454_v9 = vpop.permute.xlu1 %1453  ;;  %7030 = vmatprep.mubr.msk.bf16.mxu0 %vm7831_vm0, %v11848_v38  ;;  %v961_v47 = vpack.c.bf16 %v5878_v5, %v5877_v14 }
 0x262   :  { %v6932_v35 = vpop.f32.mrf.mxu0  ;;  %vm1585_vm6 = vcmp.eq.s32.totalorder %v8085_v8, %v1454_v9  ;;  %v1451_v49 = vpop.permute.xlu0 %1450 }
 0x263   :  { %v6003_v30 = vsel %vm1585_vm6, 1.0, %v11848_v38  ;;  %vm1584_vm7 = vcmp.eq.s32.totalorder %v8085_v8, %v1451_v49  ;;  %v9930_v11 = vpop.f32.mrf.mxu1 }
 0x264   :  { %11940 = vst [vmem:[#allocation100_spill] sm:$0xff] %v9930_v11  ;;  %v6002_v32 = vsel %vm1584_vm7, 1.0, %v11848_v38  ;;  %v9933_v34 = vpop.f32.mrf.mxu0 }
 0x265   :  { %11941 = vst [vmem:[#allocation101_spill] sm:$0xff] %v9933_v34  ;;  %v1899_v35 = vpack.c.bf16 %v6003_v30, %v6002_v32  ;;  %v7193_v26 = vpop.f32.mrf.mxu1  ;;  %v522_v61 = vpop.permute.xlu1 %521 }
 0x266   :  { %v6933_v46 = vpop.f32.mrf.mxu0  ;;  %v519_v62 = vpop.permute.xlu0 %518  ;;  %vm649_vm8 = vcmp.eq.s32.totalorder %v8085_v8, %v522_v61 }
 0x267   :  { %v9939_v1 = vpop.f32.mrf.mxu1  ;;  %7291 = vmatmul.mubr.msk.bf16.gmra.mxu1 %vm1934_vm5, %v1899_v35  ;;  %vm648_vm9 = vcmp.eq.s32.totalorder %v8085_v8, %v519_v62  ;;  %v5880_v61 = vsel %vm649_vm8, 1.0, %v11848_v38 }
 0x268   :  { %v9944_v49 = vpop.f32.mrf.mxu0  ;;  %7031 = vmatmul.mubr.msk.bf16.gmra.mxu0 %vm1934_vm5, %v961_v47  ;;  %7294 = vmatprep.mubr.msk.bf16.mxu1 %vm7831_vm0, %v11848_v38  ;;  %v5879_v62 = vsel %vm648_vm9, 1.0, %v11848_v38 }
 0x269   :  { %v7196_v26 = vpop.f32.mrf.mxu1  ;;  %v1460_v30 = vpop.permute.xlu1 %1459  ;;  %7034 = vmatprep.mubr.msk.bf16.mxu0 %vm7831_vm0, %v11848_v38  ;;  %v962_v58 = vpack.c.bf16 %v5880_v61, %v5879_v62 }
 0x26a   :  { %v6936_v46 = vpop.f32.mrf.mxu0  ;;  %vm1587_vm10 = vcmp.eq.s32.totalorder %v8085_v8, %v1460_v30  ;;  %v1457_v5 = vpop.permute.xlu0 %1456 }
 0x26b   :  { %v6005_v14 = vsel %vm1587_vm10, 1.0, %v11848_v38  ;;  %vm1586_vm11 = vcmp.eq.s32.totalorder %v8085_v8, %v1457_v5  ;;  %v9956_v47 = vpop.f32.mrf.mxu1 }
 0x26c   :  { %v6004_v32 = vsel %vm1586_vm11, 1.0, %v11848_v38  ;;  %v9959_v35 = vpop.f32.mrf.mxu0 }
 0x26d   :  { %v1900_v46 = vpack.c.bf16 %v6005_v14, %v6004_v32  ;;  %v7197_v16 = vpop.f32.mrf.mxu1  ;;  %v1463_v9 = vpop.permute.xlu1 %1462 }
 0x26e   :  { %v6937_v11 = vpop.f32.mrf.mxu0  ;;  %v525_v33 = vpop.permute.xlu0 %524  ;;  %vm1588_vm12 = vcmp.eq.s32.totalorder %v8085_v8, %v1463_v9 }
 0x26f   :  { %v9966_v5 = vpop.f32.mrf.mxu1  ;;  %7295 = vmatmul.mubr.msk.bf16.gmra.mxu1 %vm1934_vm5, %v1900_v46  ;;  %vm650_vm13 = vcmp.eq.s32.totalorder %v8085_v8, %v525_v33  ;;  %v6006_v11 = vsel %vm1588_vm12, 1.0, %v11848_v38 }
 0x270   :  { %11942 = vst [vmem:[#allocation102_spill] sm:$0xff] %v9966_v5  ;;  %v9970_v34 = vpop.f32.mrf.mxu0  ;;  %7035 = vmatmul.mubr.msk.bf16.gmra.mxu0 %vm1934_vm5, %v962_v58  ;;  %7298 = vmatprep.mubr.msk.bf16.mxu1 %vm7831_vm0, %v11848_v38  ;;  %v5881_v61 = vsel %vm650_vm13, 1.0, %v11848_v38  ;;  %v1901_v58 = vpack.c.bf16 %v6006_v11, %v6006_v11  ;;  %v11944_v5 = vpack.c.bf16 %v8768_v2, %v8745_v55 }
 0x271   :  { %v7200_v16 = vpop.f32.mrf.mxu1  ;;  %7038 = vmatprep.mubr.msk.bf16.mxu0 %vm7831_vm0, %v11848_v38  ;;  %v963_v46 = vpack.c.bf16 %v5881_v61, %v5881_v61  ;;  %v11948_v55 = vpack.c.bf16 %v8844_v52, %v8821_v41  ;;  %v11952_v41 = vpack.c.bf16 %v8920_v53, %v8897_v39  ;;  %v11956_v39 = vpack.c.bf16 %v8996_v23, %v8973_v59 }
 0x272   :  { %v6940_v9 = vpop.f32.mrf.mxu0  ;;  %v11961_v59 = vpack.c.bf16 %v9072_v3, %v9049_v13  ;;  %v11971_v13 = vld [vmem:[#allocation2_spill] sm:$0xff] }
 0x273   :  { %v9979_v62 = vpop.f32.mrf.mxu1 }
 0x274   :  { %v9981_v14 = vpop.f32.mrf.mxu0 }
 0x275   :  { %v7201_v32 = vpop.f32.mrf.mxu1 }
 0x276   :  { %v6941_v16 = vpop.f32.mrf.mxu0 }
 0x277   :  { %v9987_v26 = vpop.f32.mrf.mxu1  ;;  %7299 = vmatmul.mubr.msk.bf16.gmra.mxu1 %vm1934_vm5, %v1901_v58  ;;  %v11946_v58 = vpack.c.bf16 %v8806_v28, %v8783_v17  ;;  %v11950_v17 = vpack.c.bf16 %v8882_v22, %v8859_v4  ;;  %v11954_v4 = vpack.c.bf16 %v8958_v36, %v8935_v15  ;;  %v11958_v15 = vpack.c.bf16 %v9034_v24, %v9011_v51 }
 0x278   :  { %v9990_v9 = vpop.f32.mrf.mxu0  ;;  %7039 = vmatmul.mubr.msk.bf16.gmra.mxu0 %vm1934_vm5, %v963_v46  ;;  %7562 = vmatprep.mubr.msk.bf16.mxu1 %vm7831_vm0, %v11848_v38  ;;  %v11965_v51 = vpack.c.bf16 %v9110_v27, %v9087_v44  ;;  %v11976_v44 = vld [vmem:[#allocation6_spill] sm:$0xff]  ;;  %vm5627_vm5 = vcmask 60416  }
 0x279   :  { %v7204_v30 = vpop.f32.mrf.mxu1  ;;  %7306 = vmatprep.mubr.msk.bf16.mxu0 %vm7831_vm0, %v11848_v38 }
 0x27a   :  { %v6944_v11 = vpop.f32.mrf.mxu0  ;;  %v11943_v30 = vpack.c.bf16 %v8776_v7, %v8753_v57 }
 0x27b   :  { %v9997_v8 = vpop.f32.mrf.mxu1 }
 0x27c   :  { %v9999_v61 = vpop.f32.mrf.mxu0 }
 0x27d   :  { %v7205_v46 = vpop.f32.mrf.mxu1 }
 0x27e   :  { %v6945_v16 = vpop.f32.mrf.mxu0 }
 0x27f   :  { %v10005_v33 = vpop.f32.mrf.mxu1  ;;  %7563 = vmatmul.mubr.msk.bf16.vlgmr.msra.gmra.mxu1 %vm3531_vm14, %v11943_v30 }
 0x280   :  { %v10011_v11 = vpop.f32.mrf.mxu0  ;;  %7307 = vmatmul.mubr.msk.bf16.vlgmr.msra.gmra.mxu0 %vm3531_vm14, %v11944_v5  ;;  %7566 = vmatprep.mubr.msk.bf16.mxu1 %vm7831_vm0, %v11848_v38 }
 0x281   :  { %v7208_v32 = vpop.f32.mrf.mxu1  ;;  %7310 = vmatprep.mubr.msk.bf16.mxu0 %vm7831_vm0, %v11848_v38 }
 0x282   :  { %v6948_v46 = vpop.f32.mrf.mxu0  ;;  %v11945_v32 = vpack.c.bf16 %v8812_v31, %v8791_v19 }
 0x283   :  { %v10021_v16 = vpop.f32.mrf.mxu1 }
 0x284   :  { %v10023_v57 = vpop.f32.mrf.mxu0 }
 0x285   :  { %v7209_v2 = vpop.f32.mrf.mxu1 }
 0x286   :  { %v6949_v5 = vpop.f32.mrf.mxu0 }
 0x287   :  { %v10029_v30 = vpop.f32.mrf.mxu1  ;;  %7567 = vmatmul.mubr.msk.bf16.gmra.mxu1 %vm3531_vm14, %v11945_v32 }
 0x288   :  { %v10035_v46 = vpop.f32.mrf.mxu0  ;;  %7311 = vmatmul.mubr.msk.bf16.gmra.mxu0 %vm3531_vm14, %v11946_v58  ;;  %7570 = vmatprep.mubr.msk.bf16.mxu1 %vm7831_vm0, %v11848_v38 }
 0x289   :  { %v7212_v7 = vpop.f32.mrf.mxu1  ;;  %7314 = vmatprep.mubr.msk.bf16.mxu0 %vm7831_vm0, %v11848_v38 }
 0x28a   :  { %v6952_v2 = vpop.f32.mrf.mxu0  ;;  %v11947_v7 = vpack.c.bf16 %v8850_v56, %v8829_v43 }
 0x28b   :  { %v10045_v5 = vpop.f32.mrf.mxu1 }
 0x28c   :  { %v10047_v19 = vpop.f32.mrf.mxu0 }
 0x28d   :  { %v7213_v28 = vpop.f32.mrf.mxu1 }
 0x28e   :  { %v6953_v58 = vpop.f32.mrf.mxu0 }
 0x28f   :  { %v10053_v32 = vpop.f32.mrf.mxu1  ;;  %7571 = vmatmul.mubr.msk.bf16.gmra.mxu1 %vm3531_vm14, %v11947_v7 }
 0x290   :  { %v10059_v2 = vpop.f32.mrf.mxu0  ;;  %7315 = vmatmul.mubr.msk.bf16.gmra.mxu0 %vm3531_vm14, %v11948_v55  ;;  %7574 = vmatprep.mubr.msk.bf16.mxu1 %vm7831_vm0, %v11848_v38 }
 0x291   :  { %v7216_v31 = vpop.f32.mrf.mxu1  ;;  %7318 = vmatprep.mubr.msk.bf16.mxu0 %vm7831_vm0, %v11848_v38 }
 0x292   :  { %v6956_v28 = vpop.f32.mrf.mxu0  ;;  %v11949_v31 = vpack.c.bf16 %v8888_v25, %v8867_v10 }
 0x293   :  { %v10069_v58 = vpop.f32.mrf.mxu1 }
 0x294   :  { %v10071_v43 = vpop.f32.mrf.mxu0 }
 0x295   :  { %v7217_v52 = vpop.f32.mrf.mxu1 }
 0x296   :  { %v6957_v55 = vpop.f32.mrf.mxu0 }
 0x297   :  { %v10077_v7 = vpop.f32.mrf.mxu1  ;;  %7575 = vmatmul.mubr.msk.bf16.gmra.mxu1 %vm3531_vm14, %v11949_v31 }
 0x298   :  { %v10083_v28 = vpop.f32.mrf.mxu0  ;;  %7319 = vmatmul.mubr.msk.bf16.gmra.mxu0 %vm3531_vm14, %v11950_v17  ;;  %7578 = vmatprep.mubr.msk.bf16.mxu1 %vm7831_vm0, %v11848_v38 }
 0x299   :  { %v7220_v56 = vpop.f32.mrf.mxu1  ;;  %7322 = vmatprep.mubr.msk.bf16.mxu0 %vm7831_vm0, %v11848_v38 }
 0x29a   :  { %v6960_v52 = vpop.f32.mrf.mxu0  ;;  %v11951_v56 = vpack.c.bf16 %v8926_v60, %v8905_v42 }
 0x29b   :  { %v10093_v55 = vpop.f32.mrf.mxu1 }
 0x29c   :  { %v10095_v10 = vpop.f32.mrf.mxu0 }
 0x29d   :  { %v7221_v22 = vpop.f32.mrf.mxu1 }
 0x29e   :  { %v6961_v17 = vpop.f32.mrf.mxu0 }
 0x29f   :  { %v10101_v31 = vpop.f32.mrf.mxu1  ;;  %7579 = vmatmul.mubr.msk.bf16.gmra.mxu1 %vm3531_vm14, %v11951_v56 }
 0x2a0   :  { %v10107_v52 = vpop.f32.mrf.mxu0  ;;  %7323 = vmatmul.mubr.msk.bf16.gmra.mxu0 %vm3531_vm14, %v11952_v41  ;;  %7582 = vmatprep.mubr.msk.bf16.mxu1 %vm7831_vm0, %v11848_v38 }
 0x2a1   :  { %v7224_v25 = vpop.f32.mrf.mxu1  ;;  %7326 = vmatprep.mubr.msk.bf16.mxu0 %vm7831_vm0, %v11848_v38 }
 0x2a2   :  { %v6964_v22 = vpop.f32.mrf.mxu0  ;;  %v11953_v25 = vpack.c.bf16 %v8964_v40, %v8943_v18 }
 0x2a3   :  { %v10117_v17 = vpop.f32.mrf.mxu1 }
 0x2a4   :  { %v10119_v42 = vpop.f32.mrf.mxu0 }
 0x2a5   :  { %v7225_v53 = vpop.f32.mrf.mxu1 }
 0x2a6   :  { %v6965_v41 = vpop.f32.mrf.mxu0 }
 0x2a7   :  { %v10125_v56 = vpop.f32.mrf.mxu1  ;;  %7583 = vmatmul.mubr.msk.bf16.gmra.mxu1 %vm3531_vm14, %v11953_v25 }
 0x2a8   :  { %v10131_v22 = vpop.f32.mrf.mxu0  ;;  %7327 = vmatmul.mubr.msk.bf16.gmra.mxu0 %vm3531_vm14, %v11954_v4  ;;  %7586 = vmatprep.mubr.msk.bf16.mxu1 %vm7831_vm0, %v11848_v38 }
 0x2a9   :  { %v7228_v60 = vpop.f32.mrf.mxu1  ;;  %7330 = vmatprep.mubr.msk.bf16.mxu0 %vm7831_vm0, %v11848_v38 }
 0x2aa   :  { %v6968_v53 = vpop.f32.mrf.mxu0  ;;  %v11955_v60 = vpack.c.bf16 %v9002_v29, %v8981_v0 }
 0x2ab   :  { %v10141_v41 = vpop.f32.mrf.mxu1 }
 0x2ac   :  { %v10143_v18 = vpop.f32.mrf.mxu0 }
 0x2ad   :  { %v7229_v36 = vpop.f32.mrf.mxu1 }
 0x2ae   :  { %v6969_v4 = vpop.f32.mrf.mxu0 }
 0x2af   :  { %v10149_v25 = vpop.f32.mrf.mxu1  ;;  %7587 = vmatmul.mubr.msk.bf16.gmra.mxu1 %vm3531_vm14, %v11955_v60 }
 0x2b0   :  { %v10155_v53 = vpop.f32.mrf.mxu0  ;;  %7331 = vmatmul.mubr.msk.bf16.gmra.mxu0 %vm3531_vm14, %v11956_v39  ;;  %7590 = vmatprep.mubr.msk.bf16.mxu1 %vm7831_vm0, %v11848_v38 }
 0x2b1   :  { %v7232_v40 = vpop.f32.mrf.mxu1  ;;  %7334 = vmatprep.mubr.msk.bf16.mxu0 %vm7831_vm0, %v11848_v38 }
 0x2b2   :  { %v6972_v36 = vpop.f32.mrf.mxu0  ;;  %v11957_v40 = vpack.c.bf16 %v9040_v37, %v9019_v63 }
 0x2b3   :  { %v10165_v4 = vpop.f32.mrf.mxu1 }
 0x2b4   :  { %v10167_v0 = vpop.f32.mrf.mxu0 }
 0x2b5   :  { %v7233_v23 = vpop.f32.mrf.mxu1 }
 0x2b6   :  { %v6973_v39 = vpop.f32.mrf.mxu0 }
 0x2b7   :  { %v10173_v60 = vpop.f32.mrf.mxu1  ;;  %7591 = vmatmul.mubr.msk.bf16.gmra.mxu1 %vm3531_vm14, %v11957_v40 }
 0x2b8   :  { %v10179_v36 = vpop.f32.mrf.mxu0  ;;  %7335 = vmatmul.mubr.msk.bf16.gmra.mxu0 %vm3531_vm14, %v11958_v15  ;;  %7594 = vmatprep.mubr.msk.bf16.mxu1 %vm7831_vm0, %v11848_v38 }
 0x2b9   :  { %v7236_v29 = vpop.f32.mrf.mxu1  ;;  %7338 = vmatprep.mubr.msk.bf16.mxu0 %vm7831_vm0, %v11848_v38 }
 0x2ba   :  { %v6976_v23 = vpop.f32.mrf.mxu0  ;;  %v11960_v29 = vpack.c.bf16 %v9078_v20, %v9057_v21 }
 0x2bb   :  { %v10189_v39 = vpop.f32.mrf.mxu1 }
 0x2bc   :  { %v10191_v63 = vpop.f32.mrf.mxu0 }
 0x2bd   :  { %v7237_v24 = vpop.f32.mrf.mxu1 }
 0x2be   :  { %v6977_v15 = vpop.f32.mrf.mxu0 }
 0x2bf   :  { %v10197_v40 = vpop.f32.mrf.mxu1  ;;  %7595 = vmatmul.mubr.msk.bf16.gmra.mxu1 %vm3531_vm14, %v11960_v29 }
 0x2c0   :  { %11959 = vst [vmem:[#allocation103_spill] sm:$0xff] %v10197_v40  ;;  %v10203_v23 = vpop.f32.mrf.mxu0  ;;  %7339 = vmatmul.mubr.msk.bf16.gmra.mxu0 %vm3531_vm14, %v11961_v59  ;;  %7598 = vmatprep.mubr.msk.bf16.mxu1 %vm7831_vm0, %v11848_v38  ;;  %v11972_v40 = vpack.c.bf16 %v9148_v50, %v11971_v13  ;;  %v11986_v50 = vld [vmem:[#allocation10_spill] sm:$0xff] }
 0x2c1   :  { %v7240_v37 = vpop.f32.mrf.mxu1  ;;  %7342 = vmatprep.mubr.msk.bf16.mxu0 %vm7831_vm0, %v11848_v38 }
 0x2c2   :  { %v6980_v24 = vpop.f32.mrf.mxu0  ;;  %v11963_v37 = vpack.c.bf16 %v9116_v48, %v9095_v54 }
 0x2c3   :  { %v10213_v15 = vpop.f32.mrf.mxu1 }
 0x2c4   :  { %v10215_v21 = vpop.f32.mrf.mxu0 }
 0x2c5   :  { %v7241_v3 = vpop.f32.mrf.mxu1 }
 0x2c6   :  { %v6981_v59 = vpop.f32.mrf.mxu0 }
 0x2c7   :  { %v10221_v29 = vpop.f32.mrf.mxu1  ;;  %7599 = vmatmul.mubr.msk.bf16.gmra.mxu1 %vm3531_vm14, %v11963_v37 }
 0x2c8   :  { %11962 = vst [vmem:[#allocation104_spill] sm:$0xff] %v10221_v29  ;;  %v10227_v24 = vpop.f32.mrf.mxu0  ;;  %7343 = vmatmul.mubr.msk.bf16.gmra.mxu0 %vm3531_vm14, %v11965_v51  ;;  %7602 = vmatprep.mubr.msk.bf16.mxu1 %vm7831_vm0, %v11848_v38 }
 0x2c9   :  { %11964 = vst [vmem:[#allocation105_spill] sm:$0xff] %v10227_v24  ;;  %v7244_v20 = vpop.f32.mrf.mxu1  ;;  %7346 = vmatprep.mubr.msk.bf16.mxu0 %vm7831_vm0, %v11848_v38  ;;  %v11981_v24 = vld [vmem:[#allocation3_spill] sm:$0xff] }
 0x2ca   :  { %v6984_v3 = vpop.f32.mrf.mxu0  ;;  %v11969_v20 = vpack.c.bf16 %v9154_v45, %v9133_v12 }
 0x2cb   :  { %v10237_v59 = vpop.f32.mrf.mxu1 }
 0x2cc   :  { %11966 = vst [vmem:[#allocation106_spill] sm:$0xff] %v10237_v59  ;;  %v10239_v54 = vpop.f32.mrf.mxu0  ;;  %v11980_v59 = vld [vmem:[#allocation5_spill] sm:$0xff] }
 0x2cd   :  { %11967 = vst [vmem:[#allocation107_spill] sm:$0xff] %v10239_v54  ;;  %v7245_v27 = vpop.f32.mrf.mxu1  ;;  %v11982_v54 = vpack.c.bf16 %v11980_v59, %v11981_v24  ;;  %v11996_v24 = vld [vmem:[#allocation14_spill] sm:$0xff] }
 0x2ce   :  { %v6985_v51 = vpop.f32.mrf.mxu0 }
 0x2cf   :  { %v10245_v37 = vpop.f32.mrf.mxu1  ;;  %7603 = vmatmul.mubr.msk.bf16.gmra.mxu1 %vm3531_vm14, %v11969_v20 }
 0x2d0   :  { %11968 = vst [vmem:[#allocation108_spill] sm:$0xff] %v10245_v37  ;;  %v10251_v3 = vpop.f32.mrf.mxu0  ;;  %7347 = vmatmul.mubr.msk.bf16.gmra.mxu0 %vm3531_vm14, %v11972_v40  ;;  %7606 = vmatprep.mubr.msk.bf16.mxu1 %vm7831_vm0, %v11848_v38 }
 0x2d1   :  { %11970 = vst [vmem:[#allocation109_spill] sm:$0xff] %v10251_v3  ;;  %v7248_v48 = vpop.f32.mrf.mxu1  ;;  %7350 = vmatprep.mubr.msk.bf16.mxu0 %vm7831_vm0, %v11848_v38  ;;  %v11991_v3 = vld [vmem:[#allocation7_spill] sm:$0xff] }
 0x2d2   :  { %v6988_v27 = vpop.f32.mrf.mxu0  ;;  %v11977_v48 = vld [vmem:[#allocation4_spill] sm:$0xff] }
 0x2d3   :  { %v10261_v51 = vpop.f32.mrf.mxu1  ;;  %v11978_v29 = vpack.c.bf16 %v11976_v44, %v11977_v48 }
 0x2d4   :  { %11973 = vst [vmem:[#allocation2_spill] sm:$0xff] %v10261_v51  ;;  %v10263_v12 = vpop.f32.mrf.mxu0  ;;  %v11990_v51 = vld [vmem:[#allocation9_spill] sm:$0xff] }
 0x2d5   :  { %11974 = vst [vmem:[#allocation110_spill] sm:$0xff] %v10263_v12  ;;  %v7249_v13 = vpop.f32.mrf.mxu1  ;;  %v11992_v12 = vpack.c.bf16 %v11990_v51, %v11991_v3  ;;  %v12006_v3 = vld [vmem:[#allocation18_spill] sm:$0xff] }
 0x2d6   :  { %v6989_v40 = vpop.f32.mrf.mxu0 }
 0x2d7   :  { %v10269_v20 = vpop.f32.mrf.mxu1  ;;  %7607 = vmatmul.mubr.msk.bf16.gmra.mxu1 %vm3531_vm14, %v11978_v29 }
 0x2d8   :  { %11975 = vst [vmem:[#allocation111_spill] sm:$0xff] %v10269_v20  ;;  %v10275_v27 = vpop.f32.mrf.mxu0  ;;  %7351 = vmatmul.mubr.msk.bf16.gmra.mxu0 %vm3531_vm14, %v11982_v54  ;;  %7610 = vmatprep.mubr.msk.bf16.mxu1 %vm7831_vm0, %v11848_v38 }
 0x2d9   :  { %11979 = vst [vmem:[#allocation6_spill] sm:$0xff] %v10275_v27  ;;  %v7252_v45 = vpop.f32.mrf.mxu1  ;;  %7354 = vmatprep.mubr.msk.bf16.mxu0 %vm7831_vm0, %v11848_v38  ;;  %v12001_v27 = vld [vmem:[#allocation11_spill] sm:$0xff] }
 0x2da   :  { %v6992_v13 = vpop.f32.mrf.mxu0  ;;  %v11987_v45 = vld [vmem:[#allocation8_spill] sm:$0xff] }
 0x2db   :  { %v10285_v40 = vpop.f32.mrf.mxu1  ;;  %v11988_v37 = vpack.c.bf16 %v11986_v50, %v11987_v45 }
 0x2dc   :  { %11983 = vst [vmem:[#allocation4_spill] sm:$0xff] %v10285_v40  ;;  %v10287_v44 = vpop.f32.mrf.mxu0  ;;  %v12000_v40 = vld [vmem:[#allocation13_spill] sm:$0xff] }
 0x2dd   :  { %11984 = vst [vmem:[#allocation5_spill] sm:$0xff] %v10287_v44  ;;  %v7253_v59 = vpop.f32.mrf.mxu1  ;;  %v12002_v44 = vpack.c.bf16 %v12000_v40, %v12001_v27  ;;  %v12016_v27 = vld [vmem:[#allocation22_spill] sm:$0xff] }
 0x2de   :  { %v6993_v54 = vpop.f32.mrf.mxu0 }
 0x2df   :  { %v10293_v48 = vpop.f32.mrf.mxu1  ;;  %7611 = vmatmul.mubr.msk.bf16.gmra.mxu1 %vm3531_vm14, %v11988_v37 }
 0x2e0   :  { %11985 = vst [vmem:[#allocation3_spill] sm:$0xff] %v10293_v48  ;;  %v10299_v13 = vpop.f32.mrf.mxu0  ;;  %7355 = vmatmul.mubr.msk.bf16.gmra.mxu0 %vm3531_vm14, %v11992_v12  ;;  %7614 = vmatprep.mubr.msk.bf16.mxu1 %vm7831_vm0, %v11848_v38 }
 0x2e1   :  { %11989 = vst [vmem:[#allocation10_spill] sm:$0xff] %v10299_v13  ;;  %v7256_v29 = vpop.f32.mrf.mxu1  ;;  %7358 = vmatprep.mubr.msk.bf16.mxu0 %vm7831_vm0, %v11848_v38  ;;  %v12011_v13 = vld [vmem:[#allocation15_spill] sm:$0xff] }
 0x2e2   :  { %v6996_v59 = vpop.f32.mrf.mxu0  ;;  %v11997_v29 = vld [vmem:[#allocation12_spill] sm:$0xff] }
 0x2e3   :  { %v10309_v54 = vpop.f32.mrf.mxu1  ;;  %v11998_v20 = vpack.c.bf16 %v11996_v24, %v11997_v29 }
 0x2e4   :  { %11993 = vst [vmem:[#allocation8_spill] sm:$0xff] %v10309_v54  ;;  %v10311_v50 = vpop.f32.mrf.mxu0  ;;  %v12010_v54 = vld [vmem:[#allocation17_spill] sm:$0xff] }
 0x2e5   :  { %11994 = vst [vmem:[#allocation9_spill] sm:$0xff] %v10311_v50  ;;  %v7257_v51 = vpop.f32.mrf.mxu1  ;;  %v12012_v50 = vpack.c.bf16 %v12010_v54, %v12011_v13  ;;  %v12026_v13 = vld [vmem:[#allocation26_spill] sm:$0xff] }
 0x2e6   :  { %v6997_v12 = vpop.f32.mrf.mxu0 }
 0x2e7   :  { %v10317_v45 = vpop.f32.mrf.mxu1  ;;  %7615 = vmatmul.mubr.msk.bf16.gmra.mxu1 %vm3531_vm14, %v11998_v20 }
 0x2e8   :  { %11995 = vst [vmem:[#allocation7_spill] sm:$0xff] %v10317_v45  ;;  %v10323_v59 = vpop.f32.mrf.mxu0  ;;  %7359 = vmatmul.mubr.msk.bf16.gmra.mxu0 %vm3531_vm14, %v12002_v44  ;;  %7618 = vmatprep.mubr.msk.bf16.mxu1 %vm7831_vm0, %v11848_v38 }
 0x2e9   :  { %11999 = vst [vmem:[#allocation14_spill] sm:$0xff] %v10323_v59  ;;  %v7260_v37 = vpop.f32.mrf.mxu1  ;;  %7362 = vmatprep.mubr.msk.bf16.mxu0 %vm7831_vm0, %v11848_v38  ;;  %v12021_v59 = vld [vmem:[#allocation19_spill] sm:$0xff] }
 0x2ea   :  { %v7000_v51 = vpop.f32.mrf.mxu0  ;;  %v12007_v37 = vld [vmem:[#allocation16_spill] sm:$0xff] }
 0x2eb   :  { %v10333_v12 = vpop.f32.mrf.mxu1  ;;  %v12008_v48 = vpack.c.bf16 %v12006_v3, %v12007_v37 }
 0x2ec   :  { %12003 = vst [vmem:[#allocation12_spill] sm:$0xff] %v10333_v12  ;;  %v10335_v24 = vpop.f32.mrf.mxu0  ;;  %v12020_v12 = vld [vmem:[#allocation21_spill] sm:$0xff] }
 0x2ed   :  { %12004 = vst [vmem:[#allocation13_spill] sm:$0xff] %v10335_v24  ;;  %v7261_v40 = vpop.f32.mrf.mxu1  ;;  %v12022_v24 = vpack.c.bf16 %v12020_v12, %v12021_v59  ;;  %v12036_v59 = vld [vmem:[#allocation30_spill] sm:$0xff] }
 0x2ee   :  { %v7001_v44 = vpop.f32.mrf.mxu0 }
 0x2ef   :  { %v10341_v29 = vpop.f32.mrf.mxu1  ;;  %7619 = vmatmul.mubr.msk.bf16.gmra.mxu1 %vm3531_vm14, %v12008_v48 }
 0x2f0   :  { %12005 = vst [vmem:[#allocation11_spill] sm:$0xff] %v10341_v29  ;;  %v10347_v51 = vpop.f32.mrf.mxu0  ;;  %7363 = vmatmul.mubr.msk.bf16.gmra.mxu0 %vm3531_vm14, %v12012_v50  ;;  %7622 = vmatprep.mubr.msk.bf16.mxu1 %vm7831_vm0, %v11848_v38 }
 0x2f1   :  { %12009 = vst [vmem:[#allocation18_spill] sm:$0xff] %v10347_v51  ;;  %v7264_v20 = vpop.f32.mrf.mxu1  ;;  %7366 = vmatprep.mubr.msk.bf16.mxu0 %vm7831_vm0, %v11848_v38  ;;  %v12031_v51 = vld [vmem:[#allocation23_spill] sm:$0xff] }
 0x2f2   :  { %v7004_v40 = vpop.f32.mrf.mxu0  ;;  %v12017_v20 = vld [vmem:[#allocation20_spill] sm:$0xff] }
 0x2f3   :  { %v10357_v44 = vpop.f32.mrf.mxu1  ;;  %v12018_v45 = vpack.c.bf16 %v12016_v27, %v12017_v20 }
 0x2f4   :  { %12013 = vst [vmem:[#allocation16_spill] sm:$0xff] %v10357_v44  ;;  %v10359_v3 = vpop.f32.mrf.mxu0  ;;  %v12030_v44 = vld [vmem:[#allocation25_spill] sm:$0xff] }
 0x2f5   :  { %12014 = vst [vmem:[#allocation17_spill] sm:$0xff] %v10359_v3  ;;  %v7265_v54 = vpop.f32.mrf.mxu1  ;;  %v12032_v3 = vpack.c.bf16 %v12030_v44, %v12031_v51  ;;  %v12046_v51 = vld [vmem:[#allocation34_spill] sm:$0xff] }
 0x2f6   :  { %v7005_v50 = vpop.f32.mrf.mxu0 }
 0x2f7   :  { %v10365_v37 = vpop.f32.mrf.mxu1  ;;  %7623 = vmatmul.mubr.msk.bf16.gmra.mxu1 %vm3531_vm14, %v12018_v45 }
 0x2f8   :  { %12015 = vst [vmem:[#allocation15_spill] sm:$0xff] %v10365_v37  ;;  %v10371_v40 = vpop.f32.mrf.mxu0  ;;  %7367 = vmatmul.mubr.msk.bf16.gmra.mxu0 %vm3531_vm14, %v12022_v24  ;;  %7626 = vmatprep.mubr.msk.bf16.mxu1 %vm7831_vm0, %v11848_v38 }
 0x2f9   :  { %12019 = vst [vmem:[#allocation22_spill] sm:$0xff] %v10371_v40  ;;  %v7268_v48 = vpop.f32.mrf.mxu1  ;;  %7370 = vmatprep.mubr.msk.bf16.mxu0 %vm7831_vm0, %v11848_v38  ;;  %v12041_v40 = vld [vmem:[#allocation27_spill] sm:$0xff] }
 0x2fa   :  { %v7008_v54 = vpop.f32.mrf.mxu0  ;;  %v12027_v48 = vld [vmem:[#allocation24_spill] sm:$0xff] }
 0x2fb   :  { %v10381_v50 = vpop.f32.mrf.mxu1  ;;  %v12028_v29 = vpack.c.bf16 %v12026_v13, %v12027_v48 }
 0x2fc   :  { %12023 = vst [vmem:[#allocation20_spill] sm:$0xff] %v10381_v50  ;;  %v10383_v27 = vpop.f32.mrf.mxu0  ;;  %v12040_v50 = vld [vmem:[#allocation29_spill] sm:$0xff] }
 0x2fd   :  { %12024 = vst [vmem:[#allocation21_spill] sm:$0xff] %v10383_v27  ;;  %v7269_v12 = vpop.f32.mrf.mxu1  ;;  %v12042_v27 = vpack.c.bf16 %v12040_v50, %v12041_v40  ;;  %v12055_v40 = vld [vmem:[#allocation38_spill] sm:$0xff] }
 0x2fe   :  { %v7009_v24 = vpop.f32.mrf.mxu0 }
 0x2ff   :  { %v10389_v20 = vpop.f32.mrf.mxu1  ;;  %7627 = vmatmul.mubr.msk.bf16.gmra.mxu1 %vm3531_vm14, %v12028_v29 }
 0x300   :  { %12025 = vst [vmem:[#allocation19_spill] sm:$0xff] %v10389_v20  ;;  %v10395_v54 = vpop.f32.mrf.mxu0  ;;  %7371 = vmatmul.mubr.msk.bf16.gmra.mxu0 %vm3531_vm14, %v12032_v3  ;;  %7630 = vmatprep.mubr.msk.bf16.mxu1 %vm7831_vm0, %v11848_v38 }
 0x301   :  { %12029 = vst [vmem:[#allocation26_spill] sm:$0xff] %v10395_v54  ;;  %v7272_v45 = vpop.f32.mrf.mxu1  ;;  %7374 = vmatprep.mubr.msk.bf16.mxu0 %vm7831_vm0, %v11848_v38  ;;  %v12051_v54 = vld [vmem:[#allocation31_spill] sm:$0xff] }
 0x302   :  { %v7012_v12 = vpop.f32.mrf.mxu0  ;;  %v12037_v45 = vld [vmem:[#allocation28_spill] sm:$0xff] }
 0x303   :  { %v10405_v24 = vpop.f32.mrf.mxu1  ;;  %v12038_v37 = vpack.c.bf16 %v12036_v59, %v12037_v45 }
 0x304   :  { %12033 = vst [vmem:[#allocation24_spill] sm:$0xff] %v10405_v24  ;;  %v10407_v13 = vpop.f32.mrf.mxu0  ;;  %v12050_v24 = vld [vmem:[#allocation33_spill] sm:$0xff] }
 0x305   :  { %12034 = vst [vmem:[#allocation25_spill] sm:$0xff] %v10407_v13  ;;  %v7273_v44 = vpop.f32.mrf.mxu1  ;;  %v12052_v13 = vpack.c.bf16 %v12050_v24, %v12051_v54 }
 0x306   :  { %v7013_v3 = vpop.f32.mrf.mxu0 }
 0x307   :  { %v10413_v48 = vpop.f32.mrf.mxu1  ;;  %7631 = vmatmul.mubr.msk.bf16.gmra.mxu1 %vm3531_vm14, %v12038_v37 }
 0x308   :  { %12035 = vst [vmem:[#allocation23_spill] sm:$0xff] %v10413_v48  ;;  %v10419_v12 = vpop.f32.mrf.mxu0  ;;  %7375 = vmatmul.mubr.msk.bf16.gmra.mxu0 %vm3531_vm14, %v12042_v27  ;;  %7634 = vmatprep.mubr.msk.bf16.mxu1 %vm7831_vm0, %v11848_v38 }
 0x309   :  { %12039 = vst [vmem:[#allocation30_spill] sm:$0xff] %v10419_v12  ;;  %v7276_v29 = vpop.f32.mrf.mxu1  ;;  %7378 = vmatprep.mubr.msk.bf16.mxu0 %vm7831_vm0, %v11848_v38  ;;  %v12060_v12 = vld [vmem:[#allocation35_spill] sm:$0xff] }
 0x30a   :  { %v7016_v44 = vpop.f32.mrf.mxu0  ;;  %v12047_v29 = vld [vmem:[#allocation32_spill] sm:$0xff] }
 0x30b   :  { %v10429_v3 = vpop.f32.mrf.mxu1  ;;  %v12048_v20 = vpack.c.bf16 %v12046_v51, %v12047_v29 }
 0x30c   :  { %12043 = vst [vmem:[#allocation28_spill] sm:$0xff] %v10429_v3  ;;  %v10431_v59 = vpop.f32.mrf.mxu0  ;;  %v12059_v3 = vld [vmem:[#allocation37_spill] sm:$0xff] }
 0x30d   :  { %12044 = vst [vmem:[#allocation29_spill] sm:$0xff] %v10431_v59  ;;  %v7277_v50 = vpop.f32.mrf.mxu1  ;;  %v12061_v59 = vpack.c.bf16 %v12059_v3, %v12060_v12  ;;  %v12074_v12 = vld [vmem:[#allocation45_spill] sm:$0xff] }
 0x30e   :  { %v7017_v27 = vpop.f32.mrf.mxu0 }
 0x30f   :  { %v10437_v45 = vpop.f32.mrf.mxu1  ;;  %7635 = vmatmul.mubr.msk.bf16.gmra.mxu1 %vm3531_vm14, %v12048_v20 }
 0x310   :  { %12045 = vst [vmem:[#allocation27_spill] sm:$0xff] %v10437_v45  ;;  %v10443_v44 = vpop.f32.mrf.mxu0  ;;  %7379 = vmatmul.mubr.msk.bf16.gmra.mxu0 %vm3531_vm14, %v12052_v13  ;;  %7638 = vmatprep.mubr.msk.bf16.mxu1 %vm7831_vm0, %v11848_v38  ;;  %v12068_v45 = vld [vmem:[#allocation41_spill] sm:$0xff] }
 0x311   :  { %12049 = vst [vmem:[#allocation34_spill] sm:$0xff] %v10443_v44  ;;  %v7280_v37 = vpop.f32.mrf.mxu1  ;;  %7382 = vmatprep.mubr.msk.bf16.mxu0 %vm7831_vm0, %v11848_v38 }
 0x312   :  { %v7020_v50 = vpop.f32.mrf.mxu0  ;;  %v12056_v37 = vld [vmem:[#allocation36_spill] sm:$0xff] }
 0x313   :  { %v10453_v27 = vpop.f32.mrf.mxu1  ;;  %v12057_v48 = vpack.c.bf16 %v12055_v40, %v12056_v37 }
 0x314   :  { %12053 = vst [vmem:[#allocation32_spill] sm:$0xff] %v10453_v27  ;;  %v10455_v51 = vpop.f32.mrf.mxu0  ;;  %v12069_v27 = vld [vmem:[#allocation39_spill] sm:$0xff] }
 0x315   :  { %v7281_v24 = vpop.f32.mrf.mxu1  ;;  %v12070_v44 = vpack.c.bf16 %v12068_v45, %v12069_v27  ;;  %v12084_v45 = vld [vmem:[#allocation49_spill] sm:$0xff] }
 0x316   :  { %v7021_v13 = vpop.f32.mrf.mxu0 }
 0x317   :  { %v10461_v29 = vpop.f32.mrf.mxu1  ;;  %7639 = vmatmul.mubr.msk.bf16.gmra.mxu1 %vm3531_vm14, %v12057_v48 }
 0x318   :  { %12054 = vst [vmem:[#allocation33_spill] sm:$0xff] %v10461_v29  ;;  %v10467_v50 = vpop.f32.mrf.mxu0  ;;  %7383 = vmatmul.mubr.msk.bf16.gmra.mxu0 %vm3531_vm14, %v12061_v59  ;;  %7642 = vmatprep.mubr.msk.bf16.mxu1 %vm7831_vm0, %v11848_v38 }
 0x319   :  { %12058 = vst [vmem:[#allocation31_spill] sm:$0xff] %v10467_v50  ;;  %v7284_v20 = vpop.f32.mrf.mxu1  ;;  %7386 = vmatprep.mubr.msk.bf16.mxu0 %vm7831_vm0, %v11848_v38  ;;  %v12079_v50 = vld [vmem:[#allocation42_spill] sm:$0xff] }
 0x31a   :  { %v7024_v24 = vpop.f32.mrf.mxu0  ;;  %v12065_v20 = vld [vmem:[#allocation40_spill] sm:$0xff] }
 0x31b   :  { %v10477_v13 = vpop.f32.mrf.mxu1  ;;  %v12066_v54 = vpack.c.bf16 %v9534_v6, %v12065_v20 }
 0x31c   :  { %12062 = vst [vmem:[#allocation38_spill] sm:$0xff] %v10477_v13  ;;  %v10479_v40 = vpop.f32.mrf.mxu0  ;;  %v12078_v13 = vld [vmem:[#allocation44_spill] sm:$0xff] }
 0x31d   :  { %12063 = vst [vmem:[#allocation36_spill] sm:$0xff] %v10479_v40  ;;  %v7285_v3 = vpop.f32.mrf.mxu1  ;;  %v12080_v40 = vpack.c.bf16 %v12078_v13, %v12079_v50  ;;  %v12094_v50 = vld [vmem:[#allocation53_spill] sm:$0xff] }
 0x31e   :  { %v7025_v59 = vpop.f32.mrf.mxu0 }
 0x31f   :  { %v10485_v37 = vpop.f32.mrf.mxu1  ;;  %7643 = vmatmul.mubr.msk.bf16.gmra.mxu1 %vm3531_vm14, %v12066_v54 }
 0x320   :  { %12064 = vst [vmem:[#allocation37_spill] sm:$0xff] %v10485_v37  ;;  %v10491_v24 = vpop.f32.mrf.mxu0  ;;  %7387 = vmatmul.mubr.msk.bf16.gmra.mxu0 %vm3531_vm14, %v12070_v44  ;;  %7646 = vmatprep.mubr.msk.bf16.mxu1 %vm7831_vm0, %v11848_v38 }
 0x321   :  { %12067 = vst [vmem:[#allocation35_spill] sm:$0xff] %v10491_v24  ;;  %v7288_v48 = vpop.f32.mrf.mxu1  ;;  %7390 = vmatprep.mubr.msk.bf16.mxu0 %vm7831_vm0, %v11848_v38  ;;  %v12089_v24 = vld [vmem:[#allocation46_spill] sm:$0xff] }
 0x322   :  { %v7028_v3 = vpop.f32.mrf.mxu0  ;;  %v12075_v48 = vld [vmem:[#allocation43_spill] sm:$0xff] }
 0x323   :  { %v10501_v59 = vpop.f32.mrf.mxu1  ;;  %v12076_v29 = vpack.c.bf16 %v12074_v12, %v12075_v48 }
 0x324   :  { %12071 = vst [vmem:[#allocation40_spill] sm:$0xff] %v10501_v59  ;;  %v10503_v6 = vpop.f32.mrf.mxu0  ;;  %v12088_v59 = vld [vmem:[#allocation48_spill] sm:$0xff] }
 0x325   :  { %12072 = vst [vmem:[#allocation41_spill] sm:$0xff] %v10503_v6  ;;  %v7289_v27 = vpop.f32.mrf.mxu1  ;;  %v12090_v6 = vpack.c.bf16 %v12088_v59, %v12089_v24 }
 0x326   :  { %v7029_v44 = vpop.f32.mrf.mxu0 }
 0x327   :  { %v10509_v20 = vpop.f32.mrf.mxu1  ;;  %7647 = vmatmul.mubr.msk.bf16.gmra.mxu1 %vm3531_vm14, %v12076_v29 }
 0x328   :  { %12073 = vst [vmem:[#allocation39_spill] sm:$0xff] %v10509_v20  ;;  %v10515_v3 = vpop.f32.mrf.mxu0  ;;  %7391 = vmatmul.mubr.msk.bf16.gmra.mxu0 %vm3531_vm14, %v12080_v40  ;;  %7650 = vmatprep.mubr.msk.bf16.mxu1 %vm7831_vm0, %v11848_v38 }
 0x329   :  { %12077 = vst [vmem:[#allocation45_spill] sm:$0xff] %v10515_v3  ;;  %v7292_v54 = vpop.f32.mrf.mxu1  ;;  %7394 = vmatprep.mubr.msk.bf16.mxu0 %vm7831_vm0, %v11848_v38  ;;  %v12099_v3 = vld [vmem:[#allocation50_spill] sm:$0xff] }
 0x32a   :  { %v7032_v27 = vpop.f32.mrf.mxu0  ;;  %v12085_v54 = vld [vmem:[#allocation47_spill] sm:$0xff] }
 0x32b   :  { %v10525_v44 = vpop.f32.mrf.mxu1  ;;  %v12086_v37 = vpack.c.bf16 %v12084_v45, %v12085_v54 }
 0x32c   :  { %12081 = vst [vmem:[#allocation43_spill] sm:$0xff] %v10525_v44  ;;  %v10527_v12 = vpop.f32.mrf.mxu0  ;;  %v12098_v44 = vld [vmem:[#allocation52_spill] sm:$0xff] }
 0x32d   :  { %12082 = vst [vmem:[#allocation44_spill] sm:$0xff] %v10527_v12  ;;  %v7293_v13 = vpop.f32.mrf.mxu1  ;;  %v12100_v12 = vpack.c.bf16 %v12098_v44, %v12099_v3  ;;  %v12104_v44 = vld [vmem:[#allocation56_spill] sm:$0xff] }
 0x32e   :  { %v7033_v40 = vpop.f32.mrf.mxu0 }
 0x32f   :  { %v10533_v48 = vpop.f32.mrf.mxu1  ;;  %7651 = vmatmul.mubr.msk.bf16.gmra.mxu1 %vm3531_vm14, %v12086_v37 }
 0x330   :  { %12083 = vst [vmem:[#allocation42_spill] sm:$0xff] %v10533_v48  ;;  %v10539_v27 = vpop.f32.mrf.mxu0  ;;  %7395 = vmatmul.mubr.msk.bf16.gmra.mxu0 %vm3531_vm14, %v12090_v6  ;;  %7654 = vmatprep.mubr.msk.bf16.mxu1 %vm7831_vm0, %v11848_v38 }
 0x331   :  { %12087 = vst [vmem:[#allocation49_spill] sm:$0xff] %v10539_v27  ;;  %v7296_v29 = vpop.f32.mrf.mxu1  ;;  %7398 = vmatprep.mubr.msk.bf16.mxu0 %vm7831_vm0, %v11848_v38  ;;  %v12110_v27 = vld [vmem:[#allocation60_spill] sm:$0xff] }
 0x332   :  { %v7036_v13 = vpop.f32.mrf.mxu0  ;;  %v12095_v29 = vld [vmem:[#allocation51_spill] sm:$0xff] }
 0x333   :  { %v10549_v40 = vpop.f32.mrf.mxu1  ;;  %v12096_v20 = vpack.c.bf16 %v12094_v50, %v12095_v29 }
 0x334   :  { %12091 = vst [vmem:[#allocation47_spill] sm:$0xff] %v10549_v40  ;;  %v10551_v45 = vpop.f32.mrf.mxu0 }
 0x335   :  { %12092 = vst [vmem:[#allocation48_spill] sm:$0xff] %v10551_v45  ;;  %v7297_v59 = vpop.f32.mrf.mxu1  ;;  %v12111_v45 = vld [vmem:[#allocation58_spill] sm:$0xff] }
 0x336   :  { %v7037_v6 = vpop.f32.mrf.mxu0 }
 0x337   :  { %v10557_v54 = vpop.f32.mrf.mxu1  ;;  %7655 = vmatmul.mubr.msk.bf16.gmra.mxu1 %vm3531_vm14, %v12096_v20 }
 0x338   :  { %12093 = vst [vmem:[#allocation46_spill] sm:$0xff] %v10557_v54  ;;  %v10563_v13 = vpop.f32.mrf.mxu0  ;;  %7399 = vmatmul.mubr.msk.bf16.gmra.mxu0 %vm3531_vm14, %v12100_v12  ;;  %7658 = vmatprep.mubr.msk.bf16.mxu1 %vm7831_vm0, %v11848_v38  ;;  %v12101_v54 = vld [vmem:[#allocation57_spill] sm:$0xff]  ;;  %v12105_v12 = vld [vmem:[#allocation54_spill] sm:$0xff] }
 0x339   :  { %12097 = vst [vmem:[#allocation53_spill] sm:$0xff] %v10563_v13  ;;  %v7300_v37 = vpop.f32.mrf.mxu1  ;;  %7402 = vmatprep.mubr.msk.bf16.mxu0 %vm7831_vm0, %v11848_v38  ;;  %v12102_v13 = vld [vmem:[#allocation55_spill] sm:$0xff]  ;;  %v12106_v40 = vpack.c.bf16 %v12104_v44, %v12105_v12  ;;  %v12107_v12 = vld [vmem:[#allocation61_spill] sm:$0xff] }
 0x33a   :  { %v7040_v59 = vpop.f32.mrf.mxu0  ;;  %v12103_v48 = vpack.c.bf16 %v12101_v54, %v12102_v13  ;;  %v10584_v37 = vld [vmem:[%s11680_s5] ss:$0 sm:$0xff] }
 0x33b   :  { %v3445_v6 = vpop.f32.mrf.mxu1 }
 0x33c   :  { %v2657_v24 = vpop.f32.mrf.mxu0 }
 0x33d   :  { %v7301_v50 = vpop.f32.mrf.mxu1 }
 0x33e   :  { %v7041_v29 = vpop.f32.mrf.mxu0 }
 0x33f   :  { %v4492_v20 = vpop.f32.mrf.mxu1  ;;  %7659 = vmatmul.mubr.msk.bf16.gmra.mxu1 %vm3531_vm14, %v12103_v48 }
 0x340   :  { %v3755_v3 = vpop.f32.mrf.mxu0  ;;  %7403 = vmatmul.mubr.msk.bf16.gmra.mxu0 %vm3531_vm14, %v12106_v40  ;;  %7662 = vmatprep.mubr.msk.bf16.mxu1 %vm7831_vm0, %v11848_v38 }
 0x341   :  { %v4493_v24 = vadd.f32 %v4492_v20, %v3755_v3  ;;  %v7564_v59 = vpop.f32.mrf.mxu1  ;;  %7406 = vmatprep.mubr.msk.bf16.mxu0 %vm7831_vm0, %v11848_v38 }
 0x342   :  { %v7308_v48 = vpop.f32.mrf.mxu0  ;;  %v12108_v59 = vld [vmem:[#allocation59_spill] sm:$0xff] }
 0x343   :  { %v5001_v54 = vadd.f32 %v10584_v37, %v4493_v24  ;;  %v4495_v13 = vpop.f32.mrf.mxu1  ;;  %v12109_v48 = vpack.c.bf16 %v12107_v12, %v12108_v59 }
 0x344   :  { %v3758_v6 = vpop.f32.mrf.mxu0 }
 0x345   :  { %v6393_v40 = vpack.c.bf16 %v5001_v54, %v5001_v54  ;;  %v4496_v50 = vadd.f32 %v4495_v13, %v3758_v6  ;;  %v7565_v29 = vpop.f32.mrf.mxu1  ;;  %v12112_v54 = vpack.c.bf16 %v12110_v27, %v12111_v45 }
 0x346   :  { %v7309_v44 = vpop.f32.mrf.mxu0 }
 0x347   :  { %5628 = vst.msk [vmem:[%s11681_s6] sm:$0xf] %vm5627_vm5, %v6393_v40  ;;  %v5002_v20 = vadd.f32 %v10584_v37, %v4496_v50  ;;  %v4500_v3 = vpop.f32.mrf.mxu1  ;;  %7663 = vmatmul.mubr.msk.bf16.gmra.mxu1 %vm3531_vm14, %v12109_v48 }
 0x348   :  { %v3763_v24 = vpop.f32.mrf.mxu0  ;;  %7407 = vmatmul.mubr.msk.bf16.gmra.mxu0 %vm3531_vm14, %v12112_v54  ;;  %7666 = vmatprep.mubr.msk.bf16.mxu1 %vm7831_vm0, %v11848_v38  ;;  %v12114_v54 = vld [vmem:[#allocation63_spill] sm:$0xff] }
 0x349   :  { %v6394_v13 = vpack.c.bf16 %v5002_v20, %v5002_v20  ;;  %v4501_v6 = vadd.f32 %v4500_v3, %v3763_v24  ;;  %v7568_v40 = vpop.f32.mrf.mxu1  ;;  %7410 = vmatprep.mubr.msk.bf16.mxu0 %vm7831_vm0, %v11848_v38  ;;  %v12113_v24 = vld [vmem:[#allocation65_spill] sm:$0xff] }
 0x34a   :  { %v7312_v50 = vpop.f32.mrf.mxu0  ;;  %v12115_v40 = vpack.c.bf16 %v12113_v24, %v12114_v54 }
 0x34b   :  { %5629 = vst.msk [vmem:[%s11681_s6 + $0x4] sm:$0xf] %vm5627_vm5, %v6394_v13  ;;  %v5003_v29 = vadd.f32 %v10584_v37, %v4501_v6  ;;  %v4503_v27 = vpop.f32.mrf.mxu1  ;;  %v12116_v6 = vld [vmem:[#allocation64_spill] sm:$0xff]  ;;  %v12117_v50 = vld [vmem:[#allocation62_spill] sm:$0xff] }
 0x34c   :  { %v3766_v45 = vpop.f32.mrf.mxu0 }
 0x34d   :  { %v6395_v44 = vpack.c.bf16 %v5003_v29, %v5003_v29  ;;  %v4504_v12 = vadd.f32 %v4503_v27, %v3766_v45  ;;  %v7569_v59 = vpop.f32.mrf.mxu1  ;;  %v12118_v29 = vpack.c.bf16 %v12116_v6, %v12117_v50 }
 0x34e   :  { %v7313_v48 = vpop.f32.mrf.mxu0 }
 0x34f   :  { %5630 = vst.msk [vmem:[%s11681_s6 + $0x8] sm:$0xf] %vm5627_vm5, %v6395_v44  ;;  %v5004_v20 = vadd.f32 %v10584_v37, %v4504_v12  ;;  %v4508_v3 = vpop.f32.mrf.mxu1  ;;  %7667 = vmatmul.mubr.msk.bf16.gmra.mxu1 %vm3531_vm14, %v12115_v40 }
 0x350   :  { %v3771_v13 = vpop.f32.mrf.mxu0  ;;  %7411 = vmatmul.mubr.msk.bf16.gmra.mxu0 %vm3531_vm14, %v12118_v29  ;;  %7670 = vmatprep.mubr.msk.bf16.mxu1 %vm7831_vm0, %v11848_v38  ;;  %v12120_v29 = vld [vmem:[#allocation67_spill] sm:$0xff] }
 0x351   :  { %v6396_v27 = vpack.c.bf16 %v5004_v20, %v5004_v20  ;;  %v4509_v45 = vadd.f32 %v4508_v3, %v3771_v13  ;;  %v7572_v44 = vpop.f32.mrf.mxu1  ;;  %7414 = vmatprep.mubr.msk.bf16.mxu0 %vm7831_vm0, %v11848_v38  ;;  %v12119_v13 = vld [vmem:[#allocation69_spill] sm:$0xff] }
 0x352   :  { %v7316_v12 = vpop.f32.mrf.mxu0  ;;  %v12121_v44 = vpack.c.bf16 %v12119_v13, %v12120_v29 }
 0x353   :  { %5631 = vst.msk [vmem:[%s11681_s6 + $0xc] sm:$0xf] %vm5627_vm5, %v6396_v27  ;;  %v5005_v59 = vadd.f32 %v10584_v37, %v4509_v45  ;;  %v4511_v48 = vpop.f32.mrf.mxu1  ;;  %v12122_v45 = vld [vmem:[#allocation68_spill] sm:$0xff]  ;;  %v12123_v12 = vld [vmem:[#allocation66_spill] sm:$0xff] }
 0x354   :  { %v3774_v24 = vpop.f32.mrf.mxu0 }
 0x355   :  { %v6397_v54 = vpack.c.bf16 %v5005_v59, %v5005_v59  ;;  %v4512_v40 = vadd.f32 %v4511_v48, %v3774_v24  ;;  %v7573_v6 = vpop.f32.mrf.mxu1  ;;  %v12124_v59 = vpack.c.bf16 %v12122_v45, %v12123_v12 }
 0x356   :  { %v7317_v50 = vpop.f32.mrf.mxu0 }
 0x357   :  { %5632 = vst.msk [vmem:[%s11681_s6 + $0x10] sm:$0xf] %vm5627_vm5, %v6397_v54  ;;  %v5006_v20 = vadd.f32 %v10584_v37, %v4512_v40  ;;  %v4516_v3 = vpop.f32.mrf.mxu1  ;;  %7671 = vmatmul.mubr.msk.bf16.gmra.mxu1 %vm3531_vm14, %v12121_v44 }
 0x358   :  { %v3779_v27 = vpop.f32.mrf.mxu0  ;;  %7415 = vmatmul.mubr.msk.bf16.gmra.mxu0 %vm3531_vm14, %v12124_v59  ;;  %7674 = vmatprep.mubr.msk.bf16.mxu1 %vm7831_vm0, %v11848_v38  ;;  %v12126_v59 = vld [vmem:[#allocation71_spill] sm:$0xff] }
 0x359   :  { %v6398_v48 = vpack.c.bf16 %v5006_v20, %v5006_v20  ;;  %v4517_v24 = vadd.f32 %v4516_v3, %v3779_v27  ;;  %v7576_v54 = vpop.f32.mrf.mxu1  ;;  %7418 = vmatprep.mubr.msk.bf16.mxu0 %vm7831_vm0, %v11848_v38  ;;  %v12125_v27 = vld [vmem:[#allocation73_spill] sm:$0xff] }
 0x35a   :  { %v7320_v40 = vpop.f32.mrf.mxu0  ;;  %v12127_v54 = vpack.c.bf16 %v12125_v27, %v12126_v59 }
 0x35b   :  { %5633 = vst.msk [vmem:[%s11681_s6 + $0x14] sm:$0xf] %vm5627_vm5, %v6398_v48  ;;  %v5007_v6 = vadd.f32 %v10584_v37, %v4517_v24  ;;  %v4519_v50 = vpop.f32.mrf.mxu1  ;;  %v12128_v24 = vld [vmem:[#allocation72_spill] sm:$0xff]  ;;  %v12129_v40 = vld [vmem:[#allocation70_spill] sm:$0xff] }
 0x35c   :  { %v3782_v13 = vpop.f32.mrf.mxu0 }
 0x35d   :  { %v6399_v29 = vpack.c.bf16 %v5007_v6, %v5007_v6  ;;  %v4520_v44 = vadd.f32 %v4519_v50, %v3782_v13  ;;  %v7577_v45 = vpop.f32.mrf.mxu1  ;;  %v12130_v6 = vpack.c.bf16 %v12128_v24, %v12129_v40 }
 0x35e   :  { %v7321_v12 = vpop.f32.mrf.mxu0 }
 0x35f   :  { %5634 = vst.msk [vmem:[%s11681_s6 + $0x18] sm:$0xf] %vm5627_vm5, %v6399_v29  ;;  %v5008_v20 = vadd.f32 %v10584_v37, %v4520_v44  ;;  %v4524_v3 = vpop.f32.mrf.mxu1  ;;  %7675 = vmatmul.mubr.msk.bf16.gmra.mxu1 %vm3531_vm14, %v12127_v54 }
 0x360   :  { %v3787_v48 = vpop.f32.mrf.mxu0  ;;  %7419 = vmatmul.mubr.msk.bf16.gmra.mxu0 %vm3531_vm14, %v12130_v6  ;;  %7678 = vmatprep.mubr.msk.bf16.mxu1 %vm7831_vm0, %v11848_v38  ;;  %v12132_v6 = vld [vmem:[#allocation75_spill] sm:$0xff] }
 0x361   :  { %v6400_v50 = vpack.c.bf16 %v5008_v20, %v5008_v20  ;;  %v4525_v13 = vadd.f32 %v4524_v3, %v3787_v48  ;;  %v7580_v29 = vpop.f32.mrf.mxu1  ;;  %7422 = vmatprep.mubr.msk.bf16.mxu0 %vm7831_vm0, %v11848_v38  ;;  %v12131_v48 = vld [vmem:[#allocation77_spill] sm:$0xff] }
 0x362   :  { %v7324_v44 = vpop.f32.mrf.mxu0  ;;  %v12133_v29 = vpack.c.bf16 %v12131_v48, %v12132_v6 }
 0x363   :  { %5635 = vst.msk [vmem:[%s11681_s6 + $0x1c] sm:$0xf] %vm5627_vm5, %v6400_v50  ;;  %v5009_v45 = vadd.f32 %v10584_v37, %v4525_v13  ;;  %v4527_v12 = vpop.f32.mrf.mxu1  ;;  %v12134_v13 = vld [vmem:[#allocation76_spill] sm:$0xff]  ;;  %v12135_v44 = vld [vmem:[#allocation74_spill] sm:$0xff] }
 0x364   :  { %v3790_v27 = vpop.f32.mrf.mxu0 }
 0x365   :  { %v6401_v59 = vpack.c.bf16 %v5009_v45, %v5009_v45  ;;  %v4528_v54 = vadd.f32 %v4527_v12, %v3790_v27  ;;  %v7581_v24 = vpop.f32.mrf.mxu1  ;;  %v12136_v45 = vpack.c.bf16 %v12134_v13, %v12135_v44 }
 0x366   :  { %v7325_v40 = vpop.f32.mrf.mxu0 }
 0x367   :  { %5636 = vst.msk [vmem:[%s11681_s6 + $0x20] sm:$0xf] %vm5627_vm5, %v6401_v59  ;;  %v5010_v20 = vadd.f32 %v10584_v37, %v4528_v54  ;;  %v4532_v3 = vpop.f32.mrf.mxu1  ;;  %7679 = vmatmul.mubr.msk.bf16.gmra.mxu1 %vm3531_vm14, %v12133_v29 }
 0x368   :  { %v3795_v50 = vpop.f32.mrf.mxu0  ;;  %7423 = vmatmul.mubr.msk.bf16.gmra.mxu0 %vm3531_vm14, %v12136_v45  ;;  %7682 = vmatprep.mubr.msk.bf16.mxu1 %vm7831_vm0, %v11848_v38  ;;  %v12138_v45 = vld [vmem:[#allocation79_spill] sm:$0xff] }
 0x369   :  { %v6402_v12 = vpack.c.bf16 %v5010_v20, %v5010_v20  ;;  %v4533_v27 = vadd.f32 %v4532_v3, %v3795_v50  ;;  %v7584_v59 = vpop.f32.mrf.mxu1  ;;  %7426 = vmatprep.mubr.msk.bf16.mxu0 %vm7831_vm0, %v11848_v38  ;;  %v12137_v50 = vld [vmem:[#allocation81_spill] sm:$0xff] }
 0x36a   :  { %v7328_v54 = vpop.f32.mrf.mxu0  ;;  %v12139_v59 = vpack.c.bf16 %v12137_v50, %v12138_v45 }
 0x36b   :  { %5637 = vst.msk [vmem:[%s11681_s6 + $0x24] sm:$0xf] %vm5627_vm5, %v6402_v12  ;;  %v5011_v24 = vadd.f32 %v10584_v37, %v4533_v27  ;;  %v4535_v40 = vpop.f32.mrf.mxu1  ;;  %v12140_v27 = vld [vmem:[#allocation80_spill] sm:$0xff]  ;;  %v12141_v54 = vld [vmem:[#allocation78_spill] sm:$0xff] }
 0x36c   :  { %v3798_v48 = vpop.f32.mrf.mxu0 }
 0x36d   :  { %v6403_v6 = vpack.c.bf16 %v5011_v24, %v5011_v24  ;;  %v4536_v29 = vadd.f32 %v4535_v40, %v3798_v48  ;;  %v7585_v13 = vpop.f32.mrf.mxu1  ;;  %v12142_v24 = vpack.c.bf16 %v12140_v27, %v12141_v54 }
 0x36e   :  { %v7329_v44 = vpop.f32.mrf.mxu0 }
 0x36f   :  { %5638 = vst.msk [vmem:[%s11681_s6 + $0x28] sm:$0xf] %vm5627_vm5, %v6403_v6  ;;  %v5012_v20 = vadd.f32 %v10584_v37, %v4536_v29  ;;  %v4540_v3 = vpop.f32.mrf.mxu1  ;;  %7683 = vmatmul.mubr.msk.bf16.gmra.mxu1 %vm3531_vm14, %v12139_v59 }
 0x370   :  { %v3803_v12 = vpop.f32.mrf.mxu0  ;;  %7427 = vmatmul.mubr.msk.bf16.gmra.mxu0 %vm3531_vm14, %v12142_v24  ;;  %7686 = vmatprep.mubr.msk.bf16.mxu1 %vm7831_vm0, %v11848_v38  ;;  %v12144_v24 = vld [vmem:[#allocation83_spill] sm:$0xff] }
 0x371   :  { %v6404_v40 = vpack.c.bf16 %v5012_v20, %v5012_v20  ;;  %v4541_v48 = vadd.f32 %v4540_v3, %v3803_v12  ;;  %v7588_v6 = vpop.f32.mrf.mxu1  ;;  %7430 = vmatprep.mubr.msk.bf16.mxu0 %vm7831_vm0, %v11848_v38  ;;  %v12143_v12 = vld [vmem:[#allocation85_spill] sm:$0xff] }
 0x372   :  { %v7332_v29 = vpop.f32.mrf.mxu0  ;;  %v12145_v6 = vpack.c.bf16 %v12143_v12, %v12144_v24 }
 0x373   :  { %5639 = vst.msk [vmem:[%s11681_s6 + $0x2c] sm:$0xf] %vm5627_vm5, %v6404_v40  ;;  %v5013_v13 = vadd.f32 %v10584_v37, %v4541_v48  ;;  %v4543_v44 = vpop.f32.mrf.mxu1  ;;  %v12146_v48 = vld [vmem:[#allocation84_spill] sm:$0xff]  ;;  %v12147_v29 = vld [vmem:[#allocation82_spill] sm:$0xff] }
 0x374   :  { %v3806_v50 = vpop.f32.mrf.mxu0 }
 0x375   :  { %v6405_v45 = vpack.c.bf16 %v5013_v13, %v5013_v13  ;;  %v4544_v59 = vadd.f32 %v4543_v44, %v3806_v50  ;;  %v7589_v27 = vpop.f32.mrf.mxu1  ;;  %v12148_v13 = vpack.c.bf16 %v12146_v48, %v12147_v29 }
 0x376   :  { %v7333_v54 = vpop.f32.mrf.mxu0 }
 0x377   :  { %5640 = vst.msk [vmem:[%s11681_s6 + $0x30] sm:$0xf] %vm5627_vm5, %v6405_v45  ;;  %v5014_v20 = vadd.f32 %v10584_v37, %v4544_v59  ;;  %v4548_v3 = vpop.f32.mrf.mxu1  ;;  %7687 = vmatmul.mubr.msk.bf16.gmra.mxu1 %vm3531_vm14, %v12145_v6 }
 0x378   :  { %v3811_v40 = vpop.f32.mrf.mxu0  ;;  %7431 = vmatmul.mubr.msk.bf16.gmra.mxu0 %vm3531_vm14, %v12148_v13  ;;  %7690 = vmatprep.mubr.msk.bf16.mxu1 %vm7831_vm0, %v11848_v38  ;;  %v12150_v13 = vld [vmem:[#allocation87_spill] sm:$0xff] }
 0x379   :  { %v6406_v44 = vpack.c.bf16 %v5014_v20, %v5014_v20  ;;  %v4549_v50 = vadd.f32 %v4548_v3, %v3811_v40  ;;  %v7592_v45 = vpop.f32.mrf.mxu1  ;;  %7434 = vmatprep.mubr.msk.bf16.mxu0 %vm7831_vm0, %v11848_v38  ;;  %v12149_v40 = vld [vmem:[#allocation89_spill] sm:$0xff] }
 0x37a   :  { %v7336_v59 = vpop.f32.mrf.mxu0  ;;  %v12151_v45 = vpack.c.bf16 %v12149_v40, %v12150_v13 }
 0x37b   :  { %5641 = vst.msk [vmem:[%s11681_s6 + $0x34] sm:$0xf] %vm5627_vm5, %v6406_v44  ;;  %v5015_v27 = vadd.f32 %v10584_v37, %v4549_v50  ;;  %v4551_v54 = vpop.f32.mrf.mxu1  ;;  %v12152_v50 = vld [vmem:[#allocation88_spill] sm:$0xff]  ;;  %v12153_v59 = vld [vmem:[#allocation86_spill] sm:$0xff] }
 0x37c   :  { %v3814_v12 = vpop.f32.mrf.mxu0 }
 0x37d   :  { %v6407_v24 = vpack.c.bf16 %v5015_v27, %v5015_v27  ;;  %v4552_v6 = vadd.f32 %v4551_v54, %v3814_v12  ;;  %v7593_v48 = vpop.f32.mrf.mxu1  ;;  %v12154_v27 = vpack.c.bf16 %v12152_v50, %v12153_v59 }
 0x37e   :  { %v7337_v29 = vpop.f32.mrf.mxu0 }
 0x37f   :  { %5642 = vst.msk [vmem:[%s11681_s6 + $0x38] sm:$0xf] %vm5627_vm5, %v6407_v24  ;;  %v5016_v20 = vadd.f32 %v10584_v37, %v4552_v6  ;;  %v4556_v3 = vpop.f32.mrf.mxu1  ;;  %7691 = vmatmul.mubr.msk.bf16.gmra.mxu1 %vm3531_vm14, %v12151_v45 }
 0x380   :  { %v3819_v44 = vpop.f32.mrf.mxu0  ;;  %7435 = vmatmul.mubr.msk.bf16.gmra.mxu0 %vm3531_vm14, %v12154_v27  ;;  %7694 = vmatprep.mubr.msk.bf16.mxu1 %vm7831_vm0, %v11848_v38  ;;  %v12156_v27 = vld [vmem:[#allocation91_spill] sm:$0xff] }
 0x381   :  { %v6408_v54 = vpack.c.bf16 %v5016_v20, %v5016_v20  ;;  %v4557_v12 = vadd.f32 %v4556_v3, %v3819_v44  ;;  %v7596_v24 = vpop.f32.mrf.mxu1  ;;  %7438 = vmatprep.mubr.msk.bf16.mxu0 %vm7831_vm0, %v11848_v38  ;;  %v12155_v44 = vld [vmem:[#allocation93_spill] sm:$0xff] }
 0x382   :  { %v7340_v6 = vpop.f32.mrf.mxu0  ;;  %v12157_v24 = vpack.c.bf16 %v12155_v44, %v12156_v27 }
 0x383   :  { %5643 = vst.msk [vmem:[%s11681_s6 + $0x3c] sm:$0xf] %vm5627_vm5, %v6408_v54  ;;  %v5017_v48 = vadd.f32 %v10584_v37, %v4557_v12  ;;  %v4559_v29 = vpop.f32.mrf.mxu1  ;;  %v12158_v12 = vld [vmem:[#allocation92_spill] sm:$0xff]  ;;  %v12159_v6 = vld [vmem:[#allocation90_spill] sm:$0xff] }
 0x384   :  { %v3822_v40 = vpop.f32.mrf.mxu0 }
 0x385   :  { %v6409_v13 = vpack.c.bf16 %v5017_v48, %v5017_v48  ;;  %v4560_v45 = vadd.f32 %v4559_v29, %v3822_v40  ;;  %v7597_v50 = vpop.f32.mrf.mxu1  ;;  %v12160_v48 = vpack.c.bf16 %v12158_v12, %v12159_v6 }
 0x386   :  { %v7341_v59 = vpop.f32.mrf.mxu0 }
 0x387   :  { %5644 = vst.msk [vmem:[%s11681_s6 + $0x40] sm:$0xf] %vm5627_vm5, %v6409_v13  ;;  %v5018_v20 = vadd.f32 %v10584_v37, %v4560_v45  ;;  %v4564_v3 = vpop.f32.mrf.mxu1  ;;  %7695 = vmatmul.mubr.msk.bf16.gmra.mxu1 %vm3531_vm14, %v12157_v24 }
 0x388   :  { %v3827_v54 = vpop.f32.mrf.mxu0  ;;  %7439 = vmatmul.mubr.msk.bf16.gmra.mxu0 %vm3531_vm14, %v12160_v48  ;;  %7698 = vmatprep.mubr.msk.bf16.mxu1 %vm7831_vm0, %v11848_v38  ;;  %v12162_v48 = vld [vmem:[#allocation95_spill] sm:$0xff] }
 0x389   :  { %v6410_v29 = vpack.c.bf16 %v5018_v20, %v5018_v20  ;;  %v4565_v40 = vadd.f32 %v4564_v3, %v3827_v54  ;;  %v7600_v13 = vpop.f32.mrf.mxu1  ;;  %7442 = vmatprep.mubr.msk.bf16.mxu0 %vm7831_vm0, %v11848_v38  ;;  %v12161_v54 = vld [vmem:[#allocation97_spill] sm:$0xff] }
 0x38a   :  { %v7344_v45 = vpop.f32.mrf.mxu0  ;;  %v12163_v13 = vpack.c.bf16 %v12161_v54, %v12162_v48 }
 0x38b   :  { %5645 = vst.msk [vmem:[%s11681_s6 + $0x44] sm:$0xf] %vm5627_vm5, %v6410_v29  ;;  %v5019_v50 = vadd.f32 %v10584_v37, %v4565_v40  ;;  %v4567_v59 = vpop.f32.mrf.mxu1  ;;  %v12164_v40 = vld [vmem:[#allocation96_spill] sm:$0xff]  ;;  %v12165_v45 = vld [vmem:[#allocation94_spill] sm:$0xff] }
 0x38c   :  { %v3830_v44 = vpop.f32.mrf.mxu0 }
 0x38d   :  { %v6411_v27 = vpack.c.bf16 %v5019_v50, %v5019_v50  ;;  %v4568_v24 = vadd.f32 %v4567_v59, %v3830_v44  ;;  %v7601_v12 = vpop.f32.mrf.mxu1  ;;  %v12166_v50 = vpack.c.bf16 %v12164_v40, %v12165_v45 }
 0x38e   :  { %v7345_v6 = vpop.f32.mrf.mxu0 }
 0x38f   :  { %5646 = vst.msk [vmem:[%s11681_s6 + $0x48] sm:$0xf] %vm5627_vm5, %v6411_v27  ;;  %v5020_v20 = vadd.f32 %v10584_v37, %v4568_v24  ;;  %v4572_v3 = vpop.f32.mrf.mxu1  ;;  %7699 = vmatmul.mubr.msk.bf16.gmra.mxu1 %vm3531_vm14, %v12163_v13 }
 0x390   :  { %v3835_v29 = vpop.f32.mrf.mxu0  ;;  %7443 = vmatmul.mubr.msk.bf16.gmra.mxu0 %vm3531_vm14, %v12166_v50  ;;  %7702 = vmatprep.mubr.msk.bf16.mxu1 %vm7831_vm0, %v11848_v38  ;;  %v12168_v50 = vld [vmem:[#allocation99_spill] sm:$0xff] }
 0x391   :  { %v6412_v59 = vpack.c.bf16 %v5020_v20, %v5020_v20  ;;  %v4573_v44 = vadd.f32 %v4572_v3, %v3835_v29  ;;  %v7604_v27 = vpop.f32.mrf.mxu1  ;;  %7446 = vmatprep.mubr.msk.bf16.mxu0 %vm7831_vm0, %v11848_v38  ;;  %v12167_v29 = vld [vmem:[#allocation101_spill] sm:$0xff] }
 0x392   :  { %v7348_v24 = vpop.f32.mrf.mxu0  ;;  %v12169_v27 = vpack.c.bf16 %v12167_v29, %v12168_v50 }
 0x393   :  { %5647 = vst.msk [vmem:[%s11681_s6 + $0x4c] sm:$0xf] %vm5627_vm5, %v6412_v59  ;;  %v5021_v12 = vadd.f32 %v10584_v37, %v4573_v44  ;;  %v4575_v6 = vpop.f32.mrf.mxu1  ;;  %v12170_v44 = vld [vmem:[#allocation100_spill] sm:$0xff]  ;;  %v12171_v24 = vld [vmem:[#allocation98_spill] sm:$0xff] }
 0x394   :  { %v3838_v54 = vpop.f32.mrf.mxu0 }
 0x395   :  { %v6413_v48 = vpack.c.bf16 %v5021_v12, %v5021_v12  ;;  %v4576_v13 = vadd.f32 %v4575_v6, %v3838_v54  ;;  %v7605_v40 = vpop.f32.mrf.mxu1  ;;  %v12172_v12 = vpack.c.bf16 %v12170_v44, %v12171_v24 }
 0x396   :  { %v7349_v45 = vpop.f32.mrf.mxu0 }
 0x397   :  { %5648 = vst.msk [vmem:[%s11681_s6 + $0x50] sm:$0xf] %vm5627_vm5, %v6413_v48  ;;  %v5022_v20 = vadd.f32 %v10584_v37, %v4576_v13  ;;  %v4580_v3 = vpop.f32.mrf.mxu1  ;;  %7703 = vmatmul.mubr.msk.bf16.gmra.mxu1 %vm3531_vm14, %v12169_v27 }
 0x398   :  { %v3843_v59 = vpop.f32.mrf.mxu0  ;;  %7447 = vmatmul.mubr.msk.bf16.gmra.mxu0 %vm3531_vm14, %v12172_v12  ;;  %7706 = vmatprep.mubr.msk.bf16.mxu1 %vm7831_vm0, %v11848_v38 }
 0x399   :  { %v6414_v6 = vpack.c.bf16 %v5022_v20, %v5022_v20  ;;  %v4581_v54 = vadd.f32 %v4580_v3, %v3843_v59  ;;  %v7608_v48 = vpop.f32.mrf.mxu1  ;;  %7450 = vmatprep.mubr.msk.bf16.mxu0 %vm7831_vm0, %v11848_v38  ;;  %v12173_v59 = vpack.c.bf16 %v9959_v35, %v9944_v49 }
 0x39a   :  { %v7352_v13 = vpop.f32.mrf.mxu0 }
 0x39b   :  { %5649 = vst.msk [vmem:[%s11681_s6 + $0x54] sm:$0xf] %vm5627_vm5, %v6414_v6  ;;  %v5023_v40 = vadd.f32 %v10584_v37, %v4581_v54  ;;  %v4583_v45 = vpop.f32.mrf.mxu1  ;;  %v12174_v6 = vpack.c.bf16 %v9956_v47, %v9939_v1 }
 0x39c   :  { %v3846_v29 = vpop.f32.mrf.mxu0 }
 0x39d   :  { %v6415_v50 = vpack.c.bf16 %v5023_v40, %v5023_v40  ;;  %v4584_v27 = vadd.f32 %v4583_v45, %v3846_v29  ;;  %v7609_v44 = vpop.f32.mrf.mxu1 }
 0x39e   :  { %v7353_v24 = vpop.f32.mrf.mxu0 }
 0x39f   :  { %5650 = vst.msk [vmem:[%s11681_s6 + $0x58] sm:$0xf] %vm5627_vm5, %v6415_v50  ;;  %v5024_v20 = vadd.f32 %v10584_v37, %v4584_v27  ;;  %v4588_v3 = vpop.f32.mrf.mxu1  ;;  %7707 = vmatmul.mubr.msk.bf16.gmra.mxu1 %vm3531_vm14, %v12173_v59  ;;  %v12175_v24 = vpack.c.bf16 %v9981_v14, %v9970_v34 }
 0x3a0   :  { %v3851_v12 = vpop.f32.mrf.mxu0  ;;  %7451 = vmatmul.mubr.msk.bf16.gmra.mxu0 %vm3531_vm14, %v12174_v6  ;;  %7710 = vmatprep.mubr.msk.bf16.mxu1 %vm7831_vm0, %v11848_v38 }
 0x3a1   :  { %v6416_v54 = vpack.c.bf16 %v5024_v20, %v5024_v20  ;;  %v4589_v48 = vadd.f32 %v4588_v3, %v3851_v12  ;;  %v7612_v13 = vpop.f32.mrf.mxu1  ;;  %7454 = vmatprep.mubr.msk.bf16.mxu0 %vm7831_vm0, %v11848_v38  ;;  %v12176_v3 = vld [vmem:[#allocation102_spill] sm:$0xff] }
 0x3a2   :  { %v7356_v40 = vpop.f32.mrf.mxu0  ;;  %v12177_v59 = vpack.c.bf16 %v9979_v62, %v12176_v3 }
 0x3a3   :  { %5651 = vst.msk [vmem:[%s11681_s6 + $0x5c] sm:$0xf] %vm5627_vm5, %v6416_v54  ;;  %v5025_v49 = vadd.f32 %v10584_v37, %v4589_v48  ;;  %v4591_v1 = vpop.f32.mrf.mxu1 }
 0x3a4   :  { %v3854_v47 = vpop.f32.mrf.mxu0 }
 0x3a5   :  { %v6417_v35 = vpack.c.bf16 %v5025_v49, %v5025_v49  ;;  %v4592_v45 = vadd.f32 %v4591_v1, %v3854_v47  ;;  %v7613_v29 = vpop.f32.mrf.mxu1 }
 0x3a6   :  { %v7357_v50 = vpop.f32.mrf.mxu0 }
 0x3a7   :  { %5652 = vst.msk [vmem:[%s11681_s6 + $0x60] sm:$0xf] %vm5627_vm5, %v6417_v35  ;;  %v5026_v27 = vadd.f32 %v10584_v37, %v4592_v45  ;;  %v4596_v44 = vpop.f32.mrf.mxu1  ;;  %7711 = vmatmul.mubr.msk.bf16.gmra.mxu1 %vm3531_vm14, %v12175_v24  ;;  %v12178_v45 = vpack.c.bf16 %v9999_v61, %v9990_v9  ;;  %v12179_v50 = vpack.c.bf16 %v9997_v8, %v9987_v26 }
 0x3a8   :  { %v3859_v20 = vpop.f32.mrf.mxu0  ;;  %7455 = vmatmul.mubr.msk.bf16.gmra.mxu0 %vm3531_vm14, %v12177_v59  ;;  %7714 = vmatprep.mubr.msk.bf16.mxu1 %vm7831_vm0, %v11848_v38 }
 0x3a9   :  { %v6418_v12 = vpack.c.bf16 %v5026_v27, %v5026_v27  ;;  %v4597_v6 = vadd.f32 %v4596_v44, %v3859_v20  ;;  %v7616_v54 = vpop.f32.mrf.mxu1  ;;  %7458 = vmatprep.mubr.msk.bf16.mxu0 %vm7831_vm0, %v11848_v38 }
 0x3aa   :  { %v7360_v48 = vpop.f32.mrf.mxu0 }
 0x3ab   :  { %5653 = vst.msk [vmem:[%s11681_s6 + $0x64] sm:$0xf] %vm5627_vm5, %v6418_v12  ;;  %v5027_v34 = vadd.f32 %v10584_v37, %v4597_v6  ;;  %v4599_v62 = vpop.f32.mrf.mxu1  ;;  %v12180_v48 = vpack.c.bf16 %v10023_v57, %v10011_v11 }
 0x3ac   :  { %v3862_v14 = vpop.f32.mrf.mxu0 }
 0x3ad   :  { %v6419_v13 = vpack.c.bf16 %v5027_v34, %v5027_v34  ;;  %v4600_v40 = vadd.f32 %v4599_v62, %v3862_v14  ;;  %v7617_v49 = vpop.f32.mrf.mxu1  ;;  %v12181_v62 = vpack.c.bf16 %v10021_v16, %v10005_v33 }
 0x3ae   :  { %v7361_v1 = vpop.f32.mrf.mxu0 }
 0x3af   :  { %5654 = vst.msk [vmem:[%s11681_s6 + $0x68] sm:$0xf] %vm5627_vm5, %v6419_v13  ;;  %v5028_v47 = vadd.f32 %v10584_v37, %v4600_v40  ;;  %v4604_v35 = vpop.f32.mrf.mxu1  ;;  %7715 = vmatmul.mubr.msk.bf16.gmra.mxu1 %vm3531_vm14, %v12178_v45 }
 0x3b0   :  { %v3867_v29 = vpop.f32.mrf.mxu0  ;;  %7459 = vmatmul.mubr.msk.bf16.gmra.mxu0 %vm3531_vm14, %v12179_v50  ;;  %7718 = vmatprep.mubr.msk.bf16.mxu1 %vm7831_vm0, %v11848_v38  ;;  %v12182_v50 = vpack.c.bf16 %v10047_v19, %v10035_v46 }
 0x3b1   :  { %v6420_v27 = vpack.c.bf16 %v5028_v47, %v5028_v47  ;;  %v4605_v44 = vadd.f32 %v4604_v35, %v3867_v29  ;;  %v7620_v24 = vpop.f32.mrf.mxu1  ;;  %7462 = vmatprep.mubr.msk.bf16.mxu0 %vm7831_vm0, %v11848_v38 }
 0x3b2   :  { %v7364_v20 = vpop.f32.mrf.mxu0 }
 0x3b3   :  { %5655 = vst.msk [vmem:[%s11681_s6 + $0x6c] sm:$0xf] %vm5627_vm5, %v6420_v27  ;;  %v5029_v9 = vadd.f32 %v10584_v37, %v4605_v44  ;;  %v4607_v26 = vpop.f32.mrf.mxu1  ;;  %v12183_v44 = vpack.c.bf16 %v10045_v5, %v10029_v30 }
 0x3b4   :  { %v3870_v8 = vpop.f32.mrf.mxu0 }
 0x3b5   :  { %v6421_v61 = vpack.c.bf16 %v5029_v9, %v5029_v9  ;;  %v4608_v3 = vadd.f32 %v4607_v26, %v3870_v8  ;;  %v7621_v59 = vpop.f32.mrf.mxu1 }
 0x3b6   :  { %v7365_v12 = vpop.f32.mrf.mxu0 }
 0x3b7   :  { %5656 = vst.msk [vmem:[%s11681_s6 + $0x70] sm:$0xf] %vm5627_vm5, %v6421_v61  ;;  %v5030_v6 = vadd.f32 %v10584_v37, %v4608_v3  ;;  %v4612_v54 = vpop.f32.mrf.mxu1  ;;  %7719 = vmatmul.mubr.msk.bf16.gmra.mxu1 %vm3531_vm14, %v12180_v48  ;;  %v12185_v48 = vpack.c.bf16 %v10069_v58, %v10053_v32 }
 0x3b8   :  { %v3875_v34 = vpop.f32.mrf.mxu0  ;;  %7463 = vmatmul.mubr.msk.bf16.gmra.mxu0 %vm3531_vm14, %v12181_v62  ;;  %7722 = vmatprep.mubr.msk.bf16.mxu1 %vm7831_vm0, %v11848_v38 }
 0x3b9   :  { %v6422_v14 = vpack.c.bf16 %v5030_v6, %v5030_v6  ;;  %v4613_v13 = vadd.f32 %v4612_v54, %v3875_v34  ;;  %v7624_v40 = vpop.f32.mrf.mxu1  ;;  %7466 = vmatprep.mubr.msk.bf16.mxu0 %vm7831_vm0, %v11848_v38  ;;  %v12184_v6 = vpack.c.bf16 %v10071_v43, %v10059_v2 }
 0x3ba   :  { %v7368_v49 = vpop.f32.mrf.mxu0 }
 0x3bb   :  { %5657 = vst.msk [vmem:[%s11681_s6 + $0x74] sm:$0xf] %vm5627_vm5, %v6422_v14  ;;  %v5031_v11 = vadd.f32 %v10584_v37, %v4613_v13  ;;  %v4615_v33 = vpop.f32.mrf.mxu1 }
 0x3bc   :  { %v3878_v16 = vpop.f32.mrf.mxu0 }
 0x3bd   :  { %v6423_v57 = vpack.c.bf16 %v5031_v11, %v5031_v11  ;;  %v4616_v1 = vadd.f32 %v4615_v33, %v3878_v16  ;;  %v7625_v47 = vpop.f32.mrf.mxu1 }
 0x3be   :  { %v7369_v35 = vpop.f32.mrf.mxu0  ;;  %v12187_v47 = vpack.c.bf16 %v10093_v55, %v10077_v7 }
 0x3bf   :  { %5658 = vst.msk [vmem:[%s11681_s6 + $0x78] sm:$0xf] %vm5627_vm5, %v6423_v57  ;;  %v5032_v45 = vadd.f32 %v10584_v37, %v4616_v1  ;;  %v4620_v29 = vpop.f32.mrf.mxu1  ;;  %7723 = vmatmul.mubr.msk.bf16.gmra.mxu1 %vm3531_vm14, %v12182_v50  ;;  %v12186_v57 = vpack.c.bf16 %v10095_v10, %v10083_v28 }
 0x3c0   :  { %v3883_v27 = vpop.f32.mrf.mxu0  ;;  %7467 = vmatmul.mubr.msk.bf16.gmra.mxu0 %vm3531_vm14, %v12183_v44  ;;  %7726 = vmatprep.mubr.msk.bf16.mxu1 %vm7831_vm0, %v11848_v38 }
 0x3c1   :  { %v6424_v24 = vpack.c.bf16 %v5032_v45, %v5032_v45  ;;  %v4621_v20 = vadd.f32 %v4620_v29, %v3883_v27  ;;  %v7628_v9 = vpop.f32.mrf.mxu1  ;;  %7470 = vmatprep.mubr.msk.bf16.mxu0 %vm7831_vm0, %v11848_v38 }
 0x3c2   :  { %v7372_v26 = vpop.f32.mrf.mxu0 }
 0x3c3   :  { %5659 = vst.msk [vmem:[%s11681_s6 + $0x7c] sm:$0xf] %vm5627_vm5, %v6424_v24  ;;  %v5033_v46 = vadd.f32 %v10584_v37, %v4621_v20  ;;  %v4623_v30 = vpop.f32.mrf.mxu1  ;;  %v12188_v26 = vpack.c.bf16 %v10119_v42, %v10107_v52 }
 0x3c4   :  { %v3886_v5 = vpop.f32.mrf.mxu0 }
 0x3c5   :  { %v6425_v19 = vpack.c.bf16 %v5033_v46, %v5033_v46  ;;  %v4624_v8 = vadd.f32 %v4623_v30, %v3886_v5  ;;  %v7629_v61 = vpop.f32.mrf.mxu1  ;;  %v12189_v30 = vpack.c.bf16 %v10117_v17, %v10101_v31 }
 0x3c6   :  { %v7373_v3 = vpop.f32.mrf.mxu0 }
 0x3c7   :  { %5660 = vst.msk [vmem:[%s11681_s6 + $0x80] sm:$0xf] %vm5627_vm5, %v6425_v19  ;;  %v5034_v59 = vadd.f32 %v10584_v37, %v4624_v8  ;;  %v4628_v12 = vpop.f32.mrf.mxu1  ;;  %7727 = vmatmul.mubr.msk.bf16.gmra.mxu1 %vm3531_vm14, %v12184_v6 }
 0x3c8   :  { %v3891_v54 = vpop.f32.mrf.mxu0  ;;  %7471 = vmatmul.mubr.msk.bf16.gmra.mxu0 %vm3531_vm14, %v12185_v48  ;;  %7730 = vmatprep.mubr.msk.bf16.mxu1 %vm7831_vm0, %v11848_v38  ;;  %v12190_v48 = vpack.c.bf16 %v10143_v18, %v10131_v22 }
 0x3c9   :  { %v6426_v34 = vpack.c.bf16 %v5034_v59, %v5034_v59  ;;  %v4629_v62 = vadd.f32 %v4628_v12, %v3891_v54  ;;  %v7632_v14 = vpop.f32.mrf.mxu1  ;;  %7474 = vmatprep.mubr.msk.bf16.mxu0 %vm7831_vm0, %v11848_v38 }
 0x3ca   :  { %v7376_v13 = vpop.f32.mrf.mxu0 }
 0x3cb   :  { %5661 = vst.msk [vmem:[%s11681_s6 + $0x84] sm:$0xf] %vm5627_vm5, %v6426_v34  ;;  %v5035_v2 = vadd.f32 %v10584_v37, %v4629_v62  ;;  %v4631_v32 = vpop.f32.mrf.mxu1  ;;  %v12191_v62 = vpack.c.bf16 %v10141_v41, %v10125_v56 }
 0x3cc   :  { %v3894_v58 = vpop.f32.mrf.mxu0 }
 0x3cd   :  { %v6427_v43 = vpack.c.bf16 %v5035_v2, %v5035_v2  ;;  %v4632_v40 = vadd.f32 %v4631_v32, %v3894_v58  ;;  %v7633_v49 = vpop.f32.mrf.mxu1 }
 0x3ce   :  { %v7377_v11 = vpop.f32.mrf.mxu0 }
 0x3cf   :  { %5662 = vst.msk [vmem:[%s11681_s6 + $0x88] sm:$0xf] %vm5627_vm5, %v6427_v43  ;;  %v5036_v33 = vadd.f32 %v10584_v37, %v4632_v40  ;;  %v4636_v16 = vpop.f32.mrf.mxu1  ;;  %7731 = vmatmul.mubr.msk.bf16.gmra.mxu1 %vm3531_vm14, %v12186_v57  ;;  %v12193_v57 = vpack.c.bf16 %v10165_v4, %v10149_v25 }
 0x3d0   :  { %v3899_v1 = vpop.f32.mrf.mxu0  ;;  %7475 = vmatmul.mubr.msk.bf16.gmra.mxu0 %vm3531_vm14, %v12187_v47  ;;  %7734 = vmatprep.mubr.msk.bf16.mxu1 %vm7831_vm0, %v11848_v38 }
 0x3d1   :  { %v6428_v35 = vpack.c.bf16 %v5036_v33, %v5036_v33  ;;  %v4637_v45 = vadd.f32 %v4636_v16, %v3899_v1  ;;  %v7636_v29 = vpop.f32.mrf.mxu1  ;;  %7478 = vmatprep.mubr.msk.bf16.mxu0 %vm7831_vm0, %v11848_v38  ;;  %v12192_v33 = vpack.c.bf16 %v10167_v0, %v10155_v53 }
 0x3d2   :  { %v7380_v50 = vpop.f32.mrf.mxu0 }
 0x3d3   :  { %5663 = vst.msk [vmem:[%s11681_s6 + $0x8c] sm:$0xf] %vm5627_vm5, %v6428_v35  ;;  %v5037_v28 = vadd.f32 %v10584_v37, %v4637_v45  ;;  %v4639_v7 = vpop.f32.mrf.mxu1 }
 0x3d4   :  { %v3902_v55 = vpop.f32.mrf.mxu0 }
 0x3d5   :  { %v6429_v10 = vpack.c.bf16 %v5037_v28, %v5037_v28  ;;  %v4640_v27 = vadd.f32 %v4639_v7, %v3902_v55  ;;  %v7637_v44 = vpop.f32.mrf.mxu1 }
 0x3d6   :  { %v7381_v24 = vpop.f32.mrf.mxu0  ;;  %v12195_v44 = vpack.c.bf16 %v10189_v39, %v10173_v60 }
 0x3d7   :  { %5664 = vst.msk [vmem:[%s11681_s6 + $0x90] sm:$0xf] %vm5627_vm5, %v6429_v10  ;;  %v5038_v20 = vadd.f32 %v10584_v37, %v4640_v27  ;;  %v4644_v9 = vpop.f32.mrf.mxu1  ;;  %7735 = vmatmul.mubr.msk.bf16.gmra.mxu1 %vm3531_vm14, %v12188_v26  ;;  %v12194_v10 = vpack.c.bf16 %v10191_v63, %v10179_v36 }
 0x3d8   :  { %v3907_v46 = vpop.f32.mrf.mxu0  ;;  %7479 = vmatmul.mubr.msk.bf16.gmra.mxu0 %vm3531_vm14, %v12189_v30  ;;  %7738 = vmatprep.mubr.msk.bf16.mxu1 %vm7831_vm0, %v11848_v38 }
 0x3d9   :  { %v6430_v5 = vpack.c.bf16 %v5038_v20, %v5038_v20  ;;  %v4645_v19 = vadd.f32 %v4644_v9, %v3907_v46  ;;  %v7640_v8 = vpop.f32.mrf.mxu1  ;;  %7482 = vmatprep.mubr.msk.bf16.mxu0 %vm7831_vm0, %v11848_v38 }
 0x3da   :  { %v7384_v61 = vpop.f32.mrf.mxu0 }
 0x3db   :  { %5665 = vst.msk [vmem:[%s11681_s6 + $0x94] sm:$0xf] %vm5627_vm5, %v6430_v5  ;;  %v5039_v52 = vadd.f32 %v10584_v37, %v4645_v19  ;;  %v4647_v31 = vpop.f32.mrf.mxu1  ;;  %v12196_v61 = vpack.c.bf16 %v10215_v21, %v10203_v23 }
 0x3dc   :  { %v3910_v17 = vpop.f32.mrf.mxu0 }
 0x3dd   :  { %v6431_v42 = vpack.c.bf16 %v5039_v52, %v5039_v52  ;;  %v4648_v3 = vadd.f32 %v4647_v31, %v3910_v17  ;;  %v7641_v59 = vpop.f32.mrf.mxu1  ;;  %v12197_v31 = vld [vmem:[#allocation103_spill] sm:$0xff] }
 0x3de   :  { %v7385_v12 = vpop.f32.mrf.mxu0  ;;  %v12198_v17 = vpack.c.bf16 %v10213_v15, %v12197_v31 }
 0x3df   :  { %5666 = vst.msk [vmem:[%s11681_s6 + $0x98] sm:$0xf] %vm5627_vm5, %v6431_v42  ;;  %v5040_v6 = vadd.f32 %v10584_v37, %v4648_v3  ;;  %v4652_v54 = vpop.f32.mrf.mxu1  ;;  %7739 = vmatmul.mubr.msk.bf16.gmra.mxu1 %vm3531_vm14, %v12190_v48 }
 0x3e0   :  { %v3915_v34 = vpop.f32.mrf.mxu0  ;;  %7483 = vmatmul.mubr.msk.bf16.gmra.mxu0 %vm3531_vm14, %v12191_v62  ;;  %7742 = vmatprep.mubr.msk.bf16.mxu1 %vm7831_vm0, %v11848_v38 }
 0x3e1   :  { %v6432_v14 = vpack.c.bf16 %v5040_v6, %v5040_v6  ;;  %v4653_v13 = vadd.f32 %v4652_v54, %v3915_v34  ;;  %v7644_v2 = vpop.f32.mrf.mxu1  ;;  %7486 = vmatprep.mubr.msk.bf16.mxu0 %vm7831_vm0, %v11848_v38 }
 0x3e2   :  { %v7388_v32 = vpop.f32.mrf.mxu0  ;;  %v12200_v2 = vld [vmem:[#allocation105_spill] sm:$0xff] }
 0x3e3   :  { %5667 = vst.msk [vmem:[%s11681_s6 + $0x9c] sm:$0xf] %vm5627_vm5, %v6432_v14  ;;  %v5041_v22 = vadd.f32 %v10584_v37, %v4653_v13  ;;  %v4655_v56 = vpop.f32.mrf.mxu1  ;;  %v12199_v13 = vld [vmem:[#allocation107_spill] sm:$0xff] }
 0x3e4   :  { %v3918_v41 = vpop.f32.mrf.mxu0  ;;  %v12201_v32 = vpack.c.bf16 %v12199_v13, %v12200_v2  ;;  %v12218_v13 = vld [vmem:[#allocation10_spill] sm:$0xff] }
 0x3e5   :  { %v6433_v18 = vpack.c.bf16 %v5041_v22, %v5041_v22  ;;  %v4656_v58 = vadd.f32 %v4655_v56, %v3918_v41  ;;  %v7645_v43 = vpop.f32.mrf.mxu1  ;;  %v12202_v56 = vld [vmem:[#allocation106_spill] sm:$0xff]  ;;  %v12203_v41 = vld [vmem:[#allocation104_spill] sm:$0xff] }
 0x3e6   :  { %v7389_v40 = vpop.f32.mrf.mxu0 }
 0x3e7   :  { %5668 = vst.msk [vmem:[%s11681_s6 + $0xa0] sm:$0xf] %vm5627_vm5, %v6433_v18  ;;  %v5042_v49 = vadd.f32 %v10584_v37, %v4656_v58  ;;  %v4660_v11 = vpop.f32.mrf.mxu1  ;;  %7743 = vmatmul.mubr.msk.bf16.gmra.mxu1 %vm3531_vm14, %v12192_v33  ;;  %v12204_v18 = vpack.c.bf16 %v12202_v56, %v12203_v41  ;;  %v12221_v56 = vld [vmem:[#allocation3_spill] sm:$0xff] }
 0x3e8   :  { %v3923_v16 = vpop.f32.mrf.mxu0  ;;  %7487 = vmatmul.mubr.msk.bf16.gmra.mxu0 %vm3531_vm14, %v12193_v57  ;;  %7746 = vmatprep.mubr.msk.bf16.mxu1 %vm7831_vm0, %v11848_v38 }
 0x3e9   :  { %v6434_v1 = vpack.c.bf16 %v5042_v49, %v5042_v49  ;;  %v4661_v47 = vadd.f32 %v4660_v11, %v3923_v16  ;;  %v7648_v35 = vpop.f32.mrf.mxu1  ;;  %7490 = vmatprep.mubr.msk.bf16.mxu0 %vm7831_vm0, %v11848_v38 }
 0x3ea   :  { %v7392_v45 = vpop.f32.mrf.mxu0 }
 0x3eb   :  { %5669 = vst.msk [vmem:[%s11681_s6 + $0xa4] sm:$0xf] %vm5627_vm5, %v6434_v1  ;;  %v5043_v53 = vadd.f32 %v10584_v37, %v4661_v47  ;;  %v4663_v25 = vpop.f32.mrf.mxu1 }
 0x3ec   :  { %v3926_v4 = vpop.f32.mrf.mxu0 }
 0x3ed   :  { %v6435_v0 = vpack.c.bf16 %v5043_v53, %v5043_v53  ;;  %v4664_v29 = vadd.f32 %v4663_v25, %v3926_v4  ;;  %v7649_v50 = vpop.f32.mrf.mxu1  ;;  %v12205_v25 = vld [vmem:[#allocation110_spill] sm:$0xff]  ;;  %v12206_v4 = vld [vmem:[#allocation109_spill] sm:$0xff] }
 0x3ee   :  { %v7393_v28 = vpop.f32.mrf.mxu0  ;;  %v12208_v50 = vld [vmem:[#allocation2_spill] sm:$0xff] }
 0x3ef   :  { %5670 = vst.msk [vmem:[%s11681_s6 + $0xa8] sm:$0xf] %vm5627_vm5, %v6435_v0  ;;  %v5044_v7 = vadd.f32 %v10584_v37, %v4664_v29  ;;  %v4668_v55 = vpop.f32.mrf.mxu1  ;;  %7747 = vmatmul.mubr.msk.bf16.gmra.mxu1 %vm3531_vm14, %v12194_v10  ;;  %v12207_v0 = vpack.c.bf16 %v12205_v25, %v12206_v4  ;;  %v12209_v28 = vld [vmem:[#allocation108_spill] sm:$0xff]  ;;  %v12224_v25 = vld [vmem:[#allocation14_spill] sm:$0xff] }
 0x3f0   :  { %v3931_v27 = vpop.f32.mrf.mxu0  ;;  %7491 = vmatmul.mubr.msk.bf16.gmra.mxu0 %vm3531_vm14, %v12195_v44  ;;  %7750 = vmatprep.mubr.msk.bf16.mxu1 %vm7831_vm0, %v11848_v38 }
 0x3f1   :  { %v6436_v24 = vpack.c.bf16 %v5044_v7, %v5044_v7  ;;  %v4669_v20 = vadd.f32 %v4668_v55, %v3931_v27  ;;  %v7652_v9 = vpop.f32.mrf.mxu1  ;;  %7494 = vmatprep.mubr.msk.bf16.mxu0 %vm7831_vm0, %v11848_v38  ;;  %v12210_v7 = vpack.c.bf16 %v12208_v50, %v12209_v28  ;;  %v12227_v50 = vld [vmem:[#allocation7_spill] sm:$0xff] }
 0x3f2   :  { %v7396_v26 = vpop.f32.mrf.mxu0 }
 0x3f3   :  { %5671 = vst.msk [vmem:[%s11681_s6 + $0xac] sm:$0xf] %vm5627_vm5, %v6436_v24  ;;  %v5045_v36 = vadd.f32 %v10584_v37, %v4669_v20  ;;  %v4671_v60 = vpop.f32.mrf.mxu1 }
 0x3f4   :  { %v3934_v39 = vpop.f32.mrf.mxu0 }
 0x3f5   :  { %v6437_v63 = vpack.c.bf16 %v5045_v36, %v5045_v36  ;;  %v4672_v46 = vadd.f32 %v4671_v60, %v3934_v39  ;;  %v7653_v30 = vpop.f32.mrf.mxu1 }
 0x3f6   :  { %v7397_v5 = vpop.f32.mrf.mxu0 }
 0x3f7   :  { %5672 = vst.msk [vmem:[%s11681_s6 + $0xb0] sm:$0xf] %vm5627_vm5, %v6437_v63  ;;  %v5046_v19 = vadd.f32 %v10584_v37, %v4672_v46  ;;  %v4676_v8 = vpop.f32.mrf.mxu1  ;;  %7751 = vmatmul.mubr.msk.bf16.gmra.mxu1 %vm3531_vm14, %v12196_v61  ;;  %v11148_v63 = vld [vmem:[%s11680_s5] ss:$0 sm:$0xff]  ;;  %v12214_v61 = vld [vmem:[#allocation4_spill] sm:$0xff] }
 0x3f8   :  { %v3939_v52 = vpop.f32.mrf.mxu0  ;;  %7495 = vmatmul.mubr.msk.bf16.gmra.mxu0 %vm3531_vm14, %v12198_v17  ;;  %7754 = vmatprep.mubr.msk.bf16.mxu1 %vm7831_vm0, %v11848_v38  ;;  %v12212_v5 = vld [vmem:[#allocation6_spill] sm:$0xff] }
 0x3f9   :  { %v6438_v42 = vpack.c.bf16 %v5046_v19, %v5046_v19  ;;  %v4677_v3 = vadd.f32 %v4676_v8, %v3939_v52  ;;  %v7656_v59 = vpop.f32.mrf.mxu1  ;;  %7498 = vmatprep.mubr.msk.bf16.mxu0 %vm7831_vm0, %v11848_v38  ;;  %v12215_v52 = vld [vmem:[#allocation111_spill] sm:$0xff] }
 0x3fa   :  { %v7400_v12 = vpop.f32.mrf.mxu0  ;;  %v12216_v31 = vpack.c.bf16 %v12214_v61, %v12215_v52  ;;  %v12233_v61 = vld [vmem:[#allocation11_spill] sm:$0xff] }
 0x3fb   :  { %5673 = vst.msk [vmem:[%s11681_s6 + $0xb4] sm:$0xf] %vm5627_vm5, %v6438_v42  ;;  %v5047_v23 = vadd.f32 %v10584_v37, %v4677_v3  ;;  %v4679_v15 = vpop.f32.mrf.mxu1 }
 0x3fc   :  { %v3942_v21 = vpop.f32.mrf.mxu0 }
 0x3fd   :  { %v6439_v6 = vpack.c.bf16 %v5047_v23, %v5047_v23  ;;  %v4680_v54 = vadd.f32 %v4679_v15, %v3942_v21  ;;  %v7657_v48 = vpop.f32.mrf.mxu1 }
 0x3fe   :  { %v7401_v34 = vpop.f32.mrf.mxu0 }
 0x3ff   :  { %5674 = vst.msk [vmem:[%s11681_s6 + $0xb8] sm:$0xf] %vm5627_vm5, %v6439_v6  ;;  %v5048_v62 = vadd.f32 %v10584_v37, %v4680_v54  ;;  %v4684_v14 = vpop.f32.mrf.mxu1  ;;  %7755 = vmatmul.mubr.msk.bf16.gmra.mxu1 %vm3531_vm14, %v12201_v32 }
 0x400   :  { %v3947_v22 = vpop.f32.mrf.mxu0  ;;  %7499 = vmatmul.mubr.msk.bf16.gmra.mxu0 %vm3531_vm14, %v12204_v18  ;;  %7758 = vmatprep.mubr.msk.bf16.mxu1 %vm7831_vm0, %v11848_v38 }
 0x401   :  { %v6440_v58 = vpack.c.bf16 %v5048_v62, %v5048_v62  ;;  %v4685_v43 = vadd.f32 %v4684_v14, %v3947_v22  ;;  %v7660_v40 = vpop.f32.mrf.mxu1  ;;  %7502 = vmatprep.mubr.msk.bf16.mxu0 %vm7831_vm0, %v11848_v38  ;;  %v12217_v14 = vld [vmem:[#allocation9_spill] sm:$0xff]  ;;  %v12220_v22 = vld [vmem:[#allocation8_spill] sm:$0xff] }
 0x402   :  { %v7404_v49 = vpop.f32.mrf.mxu0  ;;  %v12219_v2 = vpack.c.bf16 %v12217_v14, %v12218_v13  ;;  %v12222_v41 = vpack.c.bf16 %v12220_v22, %v12221_v56  ;;  %v12236_v14 = vld [vmem:[#allocation22_spill] sm:$0xff]  ;;  %v12239_v22 = vld [vmem:[#allocation15_spill] sm:$0xff] }
 0x403   :  { %5675 = vst.msk [vmem:[%s11681_s6 + $0xbc] sm:$0xf] %vm5627_vm5, %v6440_v58  ;;  %v5049_v11 = vadd.f32 %v10584_v37, %v4685_v43  ;;  %v4687_v33 = vpop.f32.mrf.mxu1 }
 0x404   :  { %v3950_v16 = vpop.f32.mrf.mxu0 }
 0x405   :  { %v6441_v57 = vpack.c.bf16 %v5049_v11, %v5049_v11  ;;  %v4688_v1 = vadd.f32 %v4687_v33, %v3950_v16  ;;  %v7661_v47 = vpop.f32.mrf.mxu1 }
 0x406   :  { %v7405_v35 = vpop.f32.mrf.mxu0 }
 0x407   :  { %5676 = vst.msk [vmem:[%s11681_s6 + $0xc0] sm:$0xf] %vm5627_vm5, %v6441_v57  ;;  %v5050_v45 = vadd.f32 %v10584_v37, %v4688_v1  ;;  %v4692_v53 = vpop.f32.mrf.mxu1  ;;  %7759 = vmatmul.mubr.msk.bf16.gmra.mxu1 %vm3531_vm14, %v12207_v0 }
 0x408   :  { %v3955_v29 = vpop.f32.mrf.mxu0  ;;  %7503 = vmatmul.mubr.msk.bf16.gmra.mxu0 %vm3531_vm14, %v12210_v7  ;;  %7762 = vmatprep.mubr.msk.bf16.mxu1 %vm7831_vm0, %v11848_v38 }
 0x409   :  { %v6442_v55 = vpack.c.bf16 %v5050_v45, %v5050_v45  ;;  %v4693_v10 = vadd.f32 %v4692_v53, %v3955_v29  ;;  %v7664_v27 = vpop.f32.mrf.mxu1  ;;  %7506 = vmatprep.mubr.msk.bf16.mxu0 %vm7831_vm0, %v11848_v38  ;;  %v12223_v53 = vld [vmem:[#allocation13_spill] sm:$0xff]  ;;  %v12226_v29 = vld [vmem:[#allocation12_spill] sm:$0xff] }
 0x40a   :  { %v7408_v44 = vpop.f32.mrf.mxu0  ;;  %v12225_v4 = vpack.c.bf16 %v12223_v53, %v12224_v25  ;;  %v12228_v28 = vpack.c.bf16 %v12226_v29, %v12227_v50  ;;  %v12242_v53 = vld [vmem:[#allocation26_spill] sm:$0xff]  ;;  %v12245_v29 = vld [vmem:[#allocation19_spill] sm:$0xff] }
 0x40b   :  { %5677 = vst.msk [vmem:[%s11681_s6 + $0xc4] sm:$0xf] %vm5627_vm5, %v6442_v55  ;;  %v5051_v24 = vadd.f32 %v10584_v37, %v4693_v10  ;;  %v4695_v20 = vpop.f32.mrf.mxu1  ;;  %v12211_v37 = vld [vmem:[#allocation5_spill] sm:$0xff] }
 0x40c   :  { %v3958_v9 = vpop.f32.mrf.mxu0  ;;  %v12213_v19 = vpack.c.bf16 %v12211_v37, %v12212_v5  ;;  %v12230_v37 = vld [vmem:[#allocation18_spill] sm:$0xff] }
 0x40d   :  { %v6443_v26 = vpack.c.bf16 %v5051_v24, %v5051_v24  ;;  %v4696_v36 = vadd.f32 %v4695_v20, %v3958_v9  ;;  %v7665_v60 = vpop.f32.mrf.mxu1 }
 0x40e   :  { %v7409_v39 = vpop.f32.mrf.mxu0 }
 0x40f   :  { %5678 = vst.msk [vmem:[%s11681_s6 + $0xc8] sm:$0xf] %vm5627_vm5, %v6443_v26  ;;  %v5052_v46 = vadd.f32 %v11148_v63, %v4696_v36  ;;  %v4700_v30 = vpop.f32.mrf.mxu1  ;;  %7763 = vmatmul.mubr.msk.bf16.gmra.mxu1 %vm3531_vm14, %v12213_v19 }
 0x410   :  { %v3963_v8 = vpop.f32.mrf.mxu0  ;;  %7507 = vmatmul.mubr.msk.bf16.gmra.mxu0 %vm3531_vm14, %v12216_v31  ;;  %7766 = vmatprep.mubr.msk.bf16.mxu1 %vm7831_vm0, %v11848_v38 }
 0x411   :  { %v6444_v17 = vpack.c.bf16 %v5052_v46, %v5052_v46  ;;  %v4701_v42 = vadd.f32 %v4700_v30, %v3963_v8  ;;  %v7668_v3 = vpop.f32.mrf.mxu1  ;;  %7510 = vmatprep.mubr.msk.bf16.mxu0 %vm7831_vm0, %v11848_v38  ;;  %v12229_v30 = vld [vmem:[#allocation17_spill] sm:$0xff]  ;;  %v12232_v8 = vld [vmem:[#allocation16_spill] sm:$0xff] }
 0x412   :  { %v7412_v59 = vpop.f32.mrf.mxu0  ;;  %v12231_v5 = vpack.c.bf16 %v12229_v30, %v12230_v37  ;;  %v12234_v52 = vpack.c.bf16 %v12232_v8, %v12233_v61  ;;  %v12248_v30 = vld [vmem:[#allocation30_spill] sm:$0xff]  ;;  %v12251_v8 = vld [vmem:[#allocation23_spill] sm:$0xff] }
 0x413   :  { %5679 = vst.msk [vmem:[%s11681_s6 + $0xcc] sm:$0xf] %vm5627_vm5, %v6444_v17  ;;  %v5053_v12 = vadd.f32 %v11148_v63, %v4701_v42  ;;  %v4703_v23 = vpop.f32.mrf.mxu1 }
 0x414   :  { %v3966_v15 = vpop.f32.mrf.mxu0 }
 0x415   :  { %v6445_v21 = vpack.c.bf16 %v5053_v12, %v5053_v12  ;;  %v4704_v6 = vadd.f32 %v4703_v23, %v3966_v15  ;;  %v7669_v54 = vpop.f32.mrf.mxu1 }
 0x416   :  { %v7413_v48 = vpop.f32.mrf.mxu0 }
 0x417   :  { %5680 = vst.msk [vmem:[%s11681_s6 + $0xd0] sm:$0xf] %vm5627_vm5, %v6445_v21  ;;  %v5054_v34 = vadd.f32 %v11148_v63, %v4704_v6  ;;  %v4708_v62 = vpop.f32.mrf.mxu1  ;;  %7767 = vmatmul.mubr.msk.bf16.gmra.mxu1 %vm3531_vm14, %v12219_v2 }
 0x418   :  { %v3971_v32 = vpop.f32.mrf.mxu0  ;;  %7511 = vmatmul.mubr.msk.bf16.gmra.mxu0 %vm3531_vm14, %v12222_v41  ;;  %7770 = vmatprep.mubr.msk.bf16.mxu1 %vm7831_vm0, %v11848_v38 }
 0x419   :  { %v6446_v18 = vpack.c.bf16 %v5054_v34, %v5054_v34  ;;  %v4709_v58 = vadd.f32 %v4708_v62, %v3971_v32  ;;  %v7672_v43 = vpop.f32.mrf.mxu1  ;;  %7514 = vmatprep.mubr.msk.bf16.mxu0 %vm7831_vm0, %v11848_v38  ;;  %v12235_v62 = vld [vmem:[#allocation21_spill] sm:$0xff]  ;;  %v12238_v32 = vld [vmem:[#allocation20_spill] sm:$0xff] }
 0x41a   :  { %v7416_v40 = vpop.f32.mrf.mxu0  ;;  %v12237_v13 = vpack.c.bf16 %v12235_v62, %v12236_v14  ;;  %v12240_v56 = vpack.c.bf16 %v12238_v32, %v12239_v22 }
 0x41b   :  { %5681 = vst.msk [vmem:[%s11681_s6 + $0xd4] sm:$0xf] %vm5627_vm5, %v6446_v18  ;;  %v5055_v49 = vadd.f32 %v11148_v63, %v4709_v58  ;;  %v4711_v11 = vpop.f32.mrf.mxu1 }
 0x41c   :  { %v3974_v33 = vpop.f32.mrf.mxu0 }
 0x41d   :  { %v6447_v16 = vpack.c.bf16 %v5055_v49, %v5055_v49  ;;  %v4712_v57 = vadd.f32 %v4711_v11, %v3974_v33  ;;  %v7673_v1 = vpop.f32.mrf.mxu1 }
 0x41e   :  { %v7417_v47 = vpop.f32.mrf.mxu0 }
 0x41f   :  { %5682 = vst.msk [vmem:[%s11681_s6 + $0xd8] sm:$0xf] %vm5627_vm5, %v6447_v16  ;;  %v5056_v35 = vadd.f32 %v11148_v63, %v4712_v57  ;;  %v4716_v45 = vpop.f32.mrf.mxu1  ;;  %7771 = vmatmul.mubr.msk.bf16.gmra.mxu1 %vm3531_vm14, %v12225_v4 }
 0x420   :  { %v3979_v0 = vpop.f32.mrf.mxu0  ;;  %7515 = vmatmul.mubr.msk.bf16.gmra.mxu0 %vm3531_vm14, %v12228_v28  ;;  %7774 = vmatprep.mubr.msk.bf16.mxu1 %vm7831_vm0, %v11848_v38 }
 0x421   :  { %v6448_v7 = vpack.c.bf16 %v5056_v35, %v5056_v35  ;;  %v4717_v55 = vadd.f32 %v4716_v45, %v3979_v0  ;;  %v7676_v10 = vpop.f32.mrf.mxu1  ;;  %7518 = vmatprep.mubr.msk.bf16.mxu0 %vm7831_vm0, %v11848_v38  ;;  %v12241_v45 = vld [vmem:[#allocation25_spill] sm:$0xff]  ;;  %v12244_v0 = vld [vmem:[#allocation24_spill] sm:$0xff] }
 0x422   :  { %v7420_v27 = vpop.f32.mrf.mxu0  ;;  %v12243_v25 = vpack.c.bf16 %v12241_v45, %v12242_v53  ;;  %v12246_v50 = vpack.c.bf16 %v12244_v0, %v12245_v29  ;;  %v12261_v53 = vld [vmem:[#allocation38_spill] sm:$0xff] }
 0x423   :  { %5683 = vst.msk [vmem:[%s11681_s6 + $0xdc] sm:$0xf] %vm5627_vm5, %v6448_v7  ;;  %v5057_v44 = vadd.f32 %v11148_v63, %v4717_v55  ;;  %v4719_v24 = vpop.f32.mrf.mxu1 }
 0x424   :  { %v3982_v20 = vpop.f32.mrf.mxu0 }
 0x425   :  { %v6449_v9 = vpack.c.bf16 %v5057_v44, %v5057_v44  ;;  %v4720_v26 = vadd.f32 %v4719_v24, %v3982_v20  ;;  %v7677_v36 = vpop.f32.mrf.mxu1 }
 0x426   :  { %v7421_v60 = vpop.f32.mrf.mxu0 }
 0x427   :  { %5684 = vst.msk [vmem:[%s11681_s6 + $0xe0] sm:$0xf] %vm5627_vm5, %v6449_v9  ;;  %v5058_v39 = vadd.f32 %v11148_v63, %v4720_v26  ;;  %v4724_v46 = vpop.f32.mrf.mxu1  ;;  %7775 = vmatmul.mubr.msk.bf16.gmra.mxu1 %vm3531_vm14, %v12231_v5 }
 0x428   :  { %v3987_v19 = vpop.f32.mrf.mxu0  ;;  %7519 = vmatmul.mubr.msk.bf16.gmra.mxu0 %vm3531_vm14, %v12234_v52  ;;  %7778 = vmatprep.mubr.msk.bf16.mxu1 %vm7831_vm0, %v11848_v38 }
 0x429   :  { %v6450_v31 = vpack.c.bf16 %v5058_v39, %v5058_v39  ;;  %v4725_v17 = vadd.f32 %v4724_v46, %v3987_v19  ;;  %v7680_v42 = vpop.f32.mrf.mxu1  ;;  %7522 = vmatprep.mubr.msk.bf16.mxu0 %vm7831_vm0, %v11848_v38  ;;  %v12247_v46 = vld [vmem:[#allocation29_spill] sm:$0xff]  ;;  %v12250_v19 = vld [vmem:[#allocation28_spill] sm:$0xff] }
 0x42a   :  { %v7424_v3 = vpop.f32.mrf.mxu0  ;;  %v12249_v37 = vpack.c.bf16 %v12247_v46, %v12248_v30  ;;  %v12252_v61 = vpack.c.bf16 %v12250_v19, %v12251_v8  ;;  %v12267_v30 = vld [vmem:[#allocation40_spill] sm:$0xff] }
 0x42b   :  { %5685 = vst.msk [vmem:[%s11681_s6 + $0xe4] sm:$0xf] %vm5627_vm5, %v6450_v31  ;;  %v5059_v59 = vadd.f32 %v11148_v63, %v4725_v17  ;;  %v4727_v12 = vpop.f32.mrf.mxu1 }
 0x42c   :  { %v3990_v23 = vpop.f32.mrf.mxu0 }
 0x42d   :  { %v6451_v15 = vpack.c.bf16 %v5059_v59, %v5059_v59  ;;  %v4728_v21 = vadd.f32 %v4727_v12, %v3990_v23  ;;  %v7681_v6 = vpop.f32.mrf.mxu1 }
 0x42e   :  { %v7425_v54 = vpop.f32.mrf.mxu0 }
 0x42f   :  { %5686 = vst.msk [vmem:[%s11681_s6 + $0xe8] sm:$0xf] %vm5627_vm5, %v6451_v15  ;;  %v5060_v48 = vadd.f32 %v11148_v63, %v4728_v21  ;;  %v4732_v34 = vpop.f32.mrf.mxu1  ;;  %7779 = vmatmul.mubr.msk.bf16.gmra.mxu1 %vm3531_vm14, %v12237_v13  ;;  %v12255_v13 = vld [vmem:[#allocation32_spill] sm:$0xff] }
 0x430   :  { %v3995_v2 = vpop.f32.mrf.mxu0  ;;  %7523 = vmatmul.mubr.msk.bf16.gmra.mxu0 %vm3531_vm14, %v12240_v56  ;;  %7782 = vmatprep.mubr.msk.bf16.mxu1 %vm7831_vm0, %v11848_v38 }
 0x431   :  { %v6452_v41 = vpack.c.bf16 %v5060_v48, %v5060_v48  ;;  %v4733_v18 = vadd.f32 %v4732_v34, %v3995_v2  ;;  %v7684_v58 = vpop.f32.mrf.mxu1  ;;  %7526 = vmatprep.mubr.msk.bf16.mxu0 %vm7831_vm0, %v11848_v38  ;;  %v12253_v34 = vld [vmem:[#allocation34_spill] sm:$0xff]  ;;  %v12256_v2 = vld [vmem:[#allocation27_spill] sm:$0xff] }
 0x432   :  { %v7428_v43 = vpop.f32.mrf.mxu0  ;;  %v12254_v62 = vpack.c.bf16 %v10455_v51, %v12253_v34  ;;  %v12257_v32 = vpack.c.bf16 %v12255_v13, %v12256_v2 }
 0x433   :  { %5687 = vst.msk [vmem:[%s11681_s6 + $0xec] sm:$0xf] %vm5627_vm5, %v6452_v41  ;;  %v5061_v40 = vadd.f32 %v11148_v63, %v4733_v18  ;;  %v4735_v49 = vpop.f32.mrf.mxu1 }
 0x434   :  { %v3998_v11 = vpop.f32.mrf.mxu0 }
 0x435   :  { %v6453_v33 = vpack.c.bf16 %v5061_v40, %v5061_v40  ;;  %v4736_v16 = vadd.f32 %v4735_v49, %v3998_v11  ;;  %v7685_v57 = vpop.f32.mrf.mxu1 }
 0x436   :  { %v7429_v1 = vpop.f32.mrf.mxu0 }
 0x437   :  { %5688 = vst.msk [vmem:[%s11681_s6 + $0xf0] sm:$0xf] %vm5627_vm5, %v6453_v33  ;;  %v5062_v47 = vadd.f32 %v11148_v63, %v4736_v16  ;;  %v4740_v35 = vpop.f32.mrf.mxu1  ;;  %7783 = vmatmul.mubr.msk.bf16.gmra.mxu1 %vm3531_vm14, %v12243_v25  ;;  %v12258_v1 = vld [vmem:[#allocation36_spill] sm:$0xff]  ;;  %v12262_v25 = vld [vmem:[#allocation33_spill] sm:$0xff] }
 0x438   :  { %v4003_v4 = vpop.f32.mrf.mxu0  ;;  %7527 = vmatmul.mubr.msk.bf16.gmra.mxu0 %vm3531_vm14, %v12246_v50  ;;  %7786 = vmatprep.mubr.msk.bf16.mxu1 %vm7831_vm0, %v11848_v38 }
 0x439   :  { %v6454_v28 = vpack.c.bf16 %v5062_v47, %v5062_v47  ;;  %v4741_v7 = vadd.f32 %v4740_v35, %v4003_v4  ;;  %v7688_v55 = vpop.f32.mrf.mxu1  ;;  %7530 = vmatprep.mubr.msk.bf16.mxu0 %vm7831_vm0, %v11848_v38  ;;  %v12259_v47 = vld [vmem:[#allocation31_spill] sm:$0xff]  ;;  %v12263_v4 = vpack.c.bf16 %v12261_v53, %v12262_v25 }
 0x43a   :  { %v7432_v10 = vpop.f32.mrf.mxu0  ;;  %v12260_v35 = vpack.c.bf16 %v12258_v1, %v12259_v47 }
 0x43b   :  { %5689 = vst.msk [vmem:[%s11681_s6 + $0xf4] sm:$0xf] %vm5627_vm5, %v6454_v28  ;;  %v5063_v27 = vadd.f32 %v11148_v63, %v4741_v7  ;;  %v4743_v44 = vpop.f32.mrf.mxu1 }
 0x43c   :  { %v4006_v24 = vpop.f32.mrf.mxu0 }
 0x43d   :  { %v6455_v20 = vpack.c.bf16 %v5063_v27, %v5063_v27  ;;  %v4744_v9 = vadd.f32 %v4743_v44, %v4006_v24  ;;  %v7689_v26 = vpop.f32.mrf.mxu1 }
 0x43e   :  { %v7433_v36 = vpop.f32.mrf.mxu0 }
 0x43f   :  { %5690 = vst.msk [vmem:[%s11681_s6 + $0xf8] sm:$0xf] %vm5627_vm5, %v6455_v20  ;;  %v5064_v60 = vadd.f32 %v11148_v63, %v4744_v9  ;;  %v4748_v39 = vpop.f32.mrf.mxu1  ;;  %7787 = vmatmul.mubr.msk.bf16.gmra.mxu1 %vm3531_vm14, %v12249_v37  ;;  %v12264_v36 = vld [vmem:[#allocation41_spill] sm:$0xff] }
 0x440   :  { %v4011_v5 = vpop.f32.mrf.mxu0  ;;  %7531 = vmatmul.mubr.msk.bf16.gmra.mxu0 %vm3531_vm14, %v12252_v61  ;;  %7790 = vmatprep.mubr.msk.bf16.mxu1 %vm7831_vm0, %v11848_v38  ;;  %v12268_v37 = vld [vmem:[#allocation37_spill] sm:$0xff] }
 0x441   :  { %v6456_v52 = vpack.c.bf16 %v5064_v60, %v5064_v60  ;;  %v4749_v31 = vadd.f32 %v4748_v39, %v4011_v5  ;;  %v7692_v17 = vpop.f32.mrf.mxu1  ;;  %7534 = vmatprep.mubr.msk.bf16.mxu0 %vm7831_vm0, %v11848_v38  ;;  %v12265_v60 = vld [vmem:[#allocation35_spill] sm:$0xff]  ;;  %v12269_v5 = vpack.c.bf16 %v12267_v30, %v12268_v37 }
 0x442   :  { %v7436_v42 = vpop.f32.mrf.mxu0  ;;  %v12266_v39 = vpack.c.bf16 %v12264_v36, %v12265_v60 }
 0x443   :  { %5691 = vst.msk [vmem:[%s11681_s6 + $0xfc] sm:$0xf] %vm5627_vm5, %v6456_v52  ;;  %v5065_v3 = vadd.f32 %v11148_v63, %v4749_v31  ;;  %v4751_v59 = vpop.f32.mrf.mxu1 }
 0x444   :  { %v4014_v12 = vpop.f32.mrf.mxu0 }
 0x445   :  { %v6457_v23 = vpack.c.bf16 %v5065_v3, %v5065_v3  ;;  %v4752_v15 = vadd.f32 %v4751_v59, %v4014_v12  ;;  %v7693_v21 = vpop.f32.mrf.mxu1 }
 0x446   :  { %v7437_v6 = vpop.f32.mrf.mxu0 }
 0x447   :  { %5692 = vst.msk [vmem:[%s11681_s6 + $0x100] sm:$0xf] %vm5627_vm5, %v6457_v23  ;;  %v5066_v54 = vadd.f32 %v11148_v63, %v4752_v15  ;;  %v4756_v48 = vpop.f32.mrf.mxu1  ;;  %7791 = vmatmul.mubr.msk.bf16.gmra.mxu1 %vm3531_vm14, %v12254_v62  ;;  %v12270_v6 = vld [vmem:[#allocation44_spill] sm:$0xff]  ;;  %v12273_v62 = vld [vmem:[#allocation43_spill] sm:$0xff] }
 0x448   :  { %v4019_v14 = vpop.f32.mrf.mxu0  ;;  %7535 = vmatmul.mubr.msk.bf16.gmra.mxu0 %vm3531_vm14, %v12257_v32  ;;  %7794 = vmatprep.mubr.msk.bf16.mxu1 %vm7831_vm0, %v11848_v38 }
 0x449   :  { %v6458_v22 = vpack.c.bf16 %v5066_v54, %v5066_v54  ;;  %v4757_v56 = vadd.f32 %v4756_v48, %v4019_v14  ;;  %v7696_v41 = vpop.f32.mrf.mxu1  ;;  %7538 = vmatprep.mubr.msk.bf16.mxu0 %vm7831_vm0, %v11848_v38  ;;  %v12271_v54 = vld [vmem:[#allocation45_spill] sm:$0xff]  ;;  %v12274_v14 = vld [vmem:[#allocation39_spill] sm:$0xff] }
 0x44a   :  { %v7440_v18 = vpop.f32.mrf.mxu0  ;;  %v12272_v48 = vpack.c.bf16 %v12270_v6, %v12271_v54  ;;  %v12275_v13 = vpack.c.bf16 %v12273_v62, %v12274_v14 }
 0x44b   :  { %5693 = vst.msk [vmem:[%s11681_s6 + $0x104] sm:$0xf] %vm5627_vm5, %v6458_v22  ;;  %v5067_v51 = vadd.f32 %v11148_v63, %v4757_v56  ;;  %v4759_v58 = vpop.f32.mrf.mxu1 }
 0x44c   :  { %v4022_v43 = vpop.f32.mrf.mxu0 }
 0x44d   :  { %v6459_v40 = vpack.c.bf16 %v5067_v51, %v5067_v51  ;;  %v4760_v49 = vadd.f32 %v4759_v58, %v4022_v43  ;;  %v7697_v11 = vpop.f32.mrf.mxu1 }
 0x44e   :  { %v7441_v33 = vpop.f32.mrf.mxu0 }
 0x44f   :  { %5694 = vst.msk [vmem:[%s11681_s6 + $0x108] sm:$0xf] %vm5627_vm5, %v6459_v40  ;;  %v5068_v16 = vadd.f32 %v11148_v63, %v4760_v49  ;;  %v4764_v57 = vpop.f32.mrf.mxu1  ;;  %7795 = vmatmul.mubr.msk.bf16.gmra.mxu1 %vm3531_vm14, %v12260_v35  ;;  %v12279_v35 = vld [vmem:[#allocation47_spill] sm:$0xff] }
 0x450   :  { %v4027_v45 = vpop.f32.mrf.mxu0  ;;  %7539 = vmatmul.mubr.msk.bf16.gmra.mxu0 %vm3531_vm14, %v12263_v4  ;;  %7798 = vmatprep.mubr.msk.bf16.mxu1 %vm7831_vm0, %v11848_v38 }
 0x451   :  { %v6460_v0 = vpack.c.bf16 %v5068_v16, %v5068_v16  ;;  %v4765_v29 = vadd.f32 %v4764_v57, %v4027_v45  ;;  %v7700_v50 = vpop.f32.mrf.mxu1  ;;  %7542 = vmatprep.mubr.msk.bf16.mxu0 %vm7831_vm0, %v11848_v38  ;;  %v12276_v16 = vld [vmem:[#allocation48_spill] sm:$0xff]  ;;  %v12277_v57 = vld [vmem:[#allocation49_spill] sm:$0xff]  ;;  %v12280_v45 = vld [vmem:[#allocation42_spill] sm:$0xff] }
 0x452   :  { %v7444_v28 = vpop.f32.mrf.mxu0  ;;  %v12278_v1 = vpack.c.bf16 %v12276_v16, %v12277_v57  ;;  %v12281_v53 = vpack.c.bf16 %v12279_v35, %v12280_v45 }
 0x453   :  { %5695 = vst.msk [vmem:[%s11681_s6 + $0x10c] sm:$0xf] %vm5627_vm5, %v6460_v0  ;;  %v5069_v7 = vadd.f32 %v11148_v63, %v4765_v29  ;;  %v4767_v55 = vpop.f32.mrf.mxu1 }
 0x454   :  { %v4030_v10 = vpop.f32.mrf.mxu0 }
 0x455   :  { %v6461_v27 = vpack.c.bf16 %v5069_v7, %v5069_v7  ;;  %v4768_v44 = vadd.f32 %v4767_v55, %v4030_v10  ;;  %v7701_v24 = vpop.f32.mrf.mxu1  ;;  %v12282_v55 = vld [vmem:[#allocation53_spill] sm:$0xff] }
 0x456   :  { %v7445_v20 = vpop.f32.mrf.mxu0  ;;  %v2722_v10 = vpack.c.bf16 %v12282_v55, %v12282_v55 }
 0x457   :  { %5696 = vst.msk [vmem:[%s11681_s6 + $0x110] sm:$0xf] %vm5627_vm5, %v6461_v27  ;;  %v5070_v9 = vadd.f32 %v11148_v63, %v4768_v44  ;;  %v4772_v26 = vpop.f32.mrf.mxu1  ;;  %7799 = vmatmul.mubr.msk.bf16.gmra.mxu1 %vm3531_vm14, %v12266_v39  ;;  %v12283_v20 = vld [vmem:[#allocation46_spill] sm:$0xff] }
 0x458   :  { %v4035_v46 = vpop.f32.mrf.mxu0  ;;  %7543 = vmatmul.mubr.msk.bf16.gmra.mxu0 %vm3531_vm14, %v12269_v5  ;;  %7802 = vmatprep.mubr.msk.bf16.mxu1 %vm7831_vm0, %v11848_v38 }
 0x459   :  { %v6462_v19 = vpack.c.bf16 %v5070_v9, %v5070_v9  ;;  %v4773_v8 = vadd.f32 %v4772_v26, %v4035_v46  ;;  %v7704_v61 = vpop.f32.mrf.mxu1  ;;  %7546 = vmatprep.mubr.msk.bf16.mxu0 %vm7831_vm0, %v11848_v38  ;;  %v3510_v9 = vpack.c.bf16 %v12283_v20, %v12283_v20 }
 0x45a   :  { %v7448_v52 = vpop.f32.mrf.mxu0 }
 0x45b   :  { %5697 = vst.msk [vmem:[%s11681_s6 + $0x114] sm:$0xf] %vm5627_vm5, %v6462_v19  ;;  %v5071_v31 = vadd.f32 %v11148_v63, %v4773_v8  ;;  %v4775_v17 = vpop.f32.mrf.mxu1 }
 0x45c   :  { %v4038_v42 = vpop.f32.mrf.mxu0 }
 0x45d   :  { %v6463_v3 = vpack.c.bf16 %v5071_v31, %v5071_v31  ;;  %v4776_v59 = vadd.f32 %v4775_v17, %v4038_v42  ;;  %v7705_v12 = vpop.f32.mrf.mxu1 }
 0x45e   :  { %v7449_v23 = vpop.f32.mrf.mxu0 }
 0x45f   :  { %5698 = vst.msk [vmem:[%s11681_s6 + $0x118] sm:$0xf] %vm5627_vm5, %v6463_v3  ;;  %v5072_v15 = vadd.f32 %v11148_v63, %v4776_v59  ;;  %v4780_v21 = vpop.f32.mrf.mxu1  ;;  %7803 = vmatmul.mubr.msk.bf16.gmra.mxu1 %vm3531_vm14, %v12272_v48 }
 0x460   :  { %v4043_v34 = vpop.f32.mrf.mxu0  ;;  %7547 = vmatmul.mubr.msk.bf16.gmra.mxu0 %vm3531_vm14, %v12275_v13  ;;  %7806 = vmatprep.mubr.msk.bf16.mxu1 %vm7831_vm0, %v11848_v38 }
 0x461   :  { %v6464_v2 = vpack.c.bf16 %v5072_v15, %v5072_v15  ;;  %v4781_v32 = vadd.f32 %v4780_v21, %v4043_v34  ;;  %v7708_v22 = vpop.f32.mrf.mxu1  ;;  %7550 = vmatprep.mubr.msk.bf16.mxu0 %vm7831_vm0, %v11848_v38 }
 0x462   :  { %v7452_v56 = vpop.f32.mrf.mxu0 }
 0x463   :  { %5699 = vst.msk [vmem:[%s11681_s6 + $0x11c] sm:$0xf] %vm5627_vm5, %v6464_v2  ;;  %v5073_v41 = vadd.f32 %v11148_v63, %v4781_v32  ;;  %v4783_v18 = vpop.f32.mrf.mxu1 }
 0x464   :  { %v4046_v51 = vpop.f32.mrf.mxu0 }
 0x465   :  { %v6465_v58 = vpack.c.bf16 %v5073_v41, %v5073_v41  ;;  %v4784_v43 = vadd.f32 %v4783_v18, %v4046_v51  ;;  %v7709_v40 = vpop.f32.mrf.mxu1 }
 0x466   :  { %v7453_v49 = vpop.f32.mrf.mxu0 }
 0x467   :  { %5700 = vst.msk [vmem:[%s11681_s6 + $0x120] sm:$0xf] %vm5627_vm5, %v6465_v58  ;;  %v5074_v11 = vadd.f32 %v11148_v63, %v4784_v43  ;;  %v4788_v33 = vpop.f32.mrf.mxu1  ;;  %7807 = vmatmul.mubr.msk.bf16.gmra.mxu1 %vm3531_vm14, %v12278_v1 }
 0x468   :  { %v4051_v47 = vpop.f32.mrf.mxu0  ;;  %7551 = vmatmul.mubr.msk.bf16.gmra.mxu0 %vm3531_vm14, %v12281_v53  ;;  %7810 = vmatprep.mubr.msk.bf16.mxu1 %vm7831_vm0, %v11848_v38 }
 0x469   :  { %v6466_v25 = vpack.c.bf16 %v5074_v11, %v5074_v11  ;;  %v4789_v4 = vadd.f32 %v4788_v33, %v4051_v47  ;;  %v7712_v0 = vpop.f32.mrf.mxu1  ;;  %7554 = vmatprep.mubr.msk.bf16.mxu0 %vm7831_vm0, %v11848_v38 }
 0x46a   :  { %v7456_v29 = vpop.f32.mrf.mxu0 }
 0x46b   :  { %5701 = vst.msk [vmem:[%s11681_s6 + $0x124] sm:$0xf] %vm5627_vm5, %v6466_v25  ;;  %v5075_v50 = vadd.f32 %v11148_v63, %v4789_v4  ;;  %v4791_v28 = vpop.f32.mrf.mxu1 }
 0x46c   :  { %v4054_v7 = vpop.f32.mrf.mxu0 }
 0x46d   :  { %v6467_v27 = vpack.c.bf16 %v5075_v50, %v5075_v50  ;;  %v4792_v44 = vadd.f32 %v4791_v28, %v4054_v7  ;;  %v7713_v24 = vpop.f32.mrf.mxu1 }
 0x46e   :  { %v7457_v38 = vpop.f32.mrf.mxu0 }
 0x46f   :  { %5702 = vst.msk [vmem:[%s11681_s6 + $0x128] sm:$0xf] %vm5627_vm5, %v6467_v27  ;;  %v5076_v26 = vadd.f32 %v11148_v63, %v4792_v44  ;;  %v4796_v36 = vpop.f32.mrf.mxu1  ;;  %7811 = vmatmul.mubr.msk.bf16.gmra.mxu1 %vm3531_vm14, %v2722_v10 }
 0x470   :  { %v4059_v60 = vpop.f32.mrf.mxu0  ;;  %7555 = vmatmul.mubr.msk.bf16.gmra.mxu0 %vm3531_vm14, %v3510_v9 }
 0x471   :  { %v6468_v39 = vpack.c.bf16 %v5076_v26, %v5076_v26  ;;  %v4797_v46 = vadd.f32 %v4796_v36, %v4059_v60  ;;  %v7716_v30 = vpop.f32.mrf.mxu1 }
 0x472   :  { %v7460_v37 = vpop.f32.mrf.mxu0 }
 0x473   :  { %5703 = vst.msk [vmem:[%s11681_s6 + $0x12c] sm:$0xf] %vm5627_vm5, %v6468_v39  ;;  %v5077_v5 = vadd.f32 %v11148_v63, %v4797_v46  ;;  %v4799_v19 = vpop.f32.mrf.mxu1 }
 0x474   :  { %v4062_v8 = vpop.f32.mrf.mxu0 }
 0x475   :  { %v6469_v61 = vpack.c.bf16 %v5077_v5, %v5077_v5  ;;  %v4800_v52 = vadd.f32 %v4799_v19, %v4062_v8  ;;  %v7717_v31 = vpop.f32.mrf.mxu1 }
 0x476   :  { %v7461_v17 = vpop.f32.mrf.mxu0 }
 0x477   :  { %5704 = vst.msk [vmem:[%s11681_s6 + $0x130] sm:$0xf] %vm5627_vm5, %v6469_v61  ;;  %v5078_v42 = vadd.f32 %v11148_v63, %v4800_v52  ;;  %v4804_v3 = vpop.f32.mrf.mxu1 }
 0x478   :  { %v4067_v59 = vpop.f32.mrf.mxu0 }
 0x479   :  { %v6470_v12 = vpack.c.bf16 %v5078_v42, %v5078_v42  ;;  %v4805_v23 = vadd.f32 %v4804_v3, %v4067_v59  ;;  %v7720_v15 = vpop.f32.mrf.mxu1 }
 0x47a   :  { %v7464_v21 = vpop.f32.mrf.mxu0 }
 0x47b   :  { %5705 = vst.msk [vmem:[%s11681_s6 + $0x134] sm:$0xf] %vm5627_vm5, %v6470_v12  ;;  %v5079_v6 = vadd.f32 %v11148_v63, %v4805_v23  ;;  %v4807_v54 = vpop.f32.mrf.mxu1 }
 0x47c   :  { %v4070_v48 = vpop.f32.mrf.mxu0 }
 0x47d   :  { %v6471_v34 = vpack.c.bf16 %v5079_v6, %v5079_v6  ;;  %v4808_v62 = vadd.f32 %v4807_v54, %v4070_v48  ;;  %v7721_v14 = vpop.f32.mrf.mxu1 }
 0x47e   :  { %v7465_v13 = vpop.f32.mrf.mxu0 }
 0x47f   :  { %5706 = vst.msk [vmem:[%s11681_s6 + $0x138] sm:$0xf] %vm5627_vm5, %v6471_v34  ;;  %v5080_v2 = vadd.f32 %v11148_v63, %v4808_v62  ;;  %v4812_v32 = vpop.f32.mrf.mxu1 }
 0x480   :  { %v4075_v22 = vpop.f32.mrf.mxu0 }
 0x481   :  { %v6472_v56 = vpack.c.bf16 %v5080_v2, %v5080_v2  ;;  %v4813_v41 = vadd.f32 %v4812_v32, %v4075_v22  ;;  %v7724_v18 = vpop.f32.mrf.mxu1 }
 0x482   :  { %v7468_v51 = vpop.f32.mrf.mxu0 }
 0x483   :  { %5707 = vst.msk [vmem:[%s11681_s6 + $0x13c] sm:$0xf] %vm5627_vm5, %v6472_v56  ;;  %v5081_v58 = vadd.f32 %v11148_v63, %v4813_v41  ;;  %v4815_v43 = vpop.f32.mrf.mxu1 }
 0x484   :  { %v4078_v40 = vpop.f32.mrf.mxu0 }
 0x485   :  { %v6473_v49 = vpack.c.bf16 %v5081_v58, %v5081_v58  ;;  %v4816_v11 = vadd.f32 %v4815_v43, %v4078_v40  ;;  %v7725_v33 = vpop.f32.mrf.mxu1 }
 0x486   :  { %v7469_v16 = vpop.f32.mrf.mxu0 }
 0x487   :  { %5708 = vst.msk [vmem:[%s11681_s6 + $0x140] sm:$0xf] %vm5627_vm5, %v6473_v49  ;;  %v5082_v57 = vadd.f32 %v11148_v63, %v4816_v11  ;;  %v4820_v1 = vpop.f32.mrf.mxu1 }
 0x488   :  { %v4083_v47 = vpop.f32.mrf.mxu0 }
 0x489   :  { %v6474_v35 = vpack.c.bf16 %v5082_v57, %v5082_v57  ;;  %v4821_v45 = vadd.f32 %v4820_v1, %v4083_v47  ;;  %v7728_v53 = vpop.f32.mrf.mxu1 }
 0x48a   :  { %v7472_v25 = vpop.f32.mrf.mxu0 }
 0x48b   :  { %5709 = vst.msk [vmem:[%s11681_s6 + $0x144] sm:$0xf] %vm5627_vm5, %v6474_v35  ;;  %v5083_v4 = vadd.f32 %v11148_v63, %v4821_v45  ;;  %v4823_v0 = vpop.f32.mrf.mxu1 }
 0x48c   :  { %v4086_v29 = vpop.f32.mrf.mxu0 }
 0x48d   :  { %v6475_v50 = vpack.c.bf16 %v5083_v4, %v5083_v4  ;;  %v4824_v28 = vadd.f32 %v4823_v0, %v4086_v29  ;;  %v7729_v7 = vpop.f32.mrf.mxu1 }
 0x48e   :  { %v7473_v55 = vpop.f32.mrf.mxu0 }
 0x48f   :  { %5710 = vst.msk [vmem:[%s11681_s6 + $0x148] sm:$0xf] %vm5627_vm5, %v6475_v50  ;;  %v5084_v10 = vadd.f32 %v11148_v63, %v4824_v28  ;;  %v4828_v27 = vpop.f32.mrf.mxu1 }
 0x490   :  { %v4091_v44 = vpop.f32.mrf.mxu0 }
 0x491   :  { %v6476_v24 = vpack.c.bf16 %v5084_v10, %v5084_v10  ;;  %v4829_v20 = vadd.f32 %v4828_v27, %v4091_v44  ;;  %v7732_v9 = vpop.f32.mrf.mxu1 }
 0x492   :  { %v7476_v38 = vpop.f32.mrf.mxu0 }
 0x493   :  { %5711 = vst.msk [vmem:[%s11681_s6 + $0x14c] sm:$0xf] %vm5627_vm5, %v6476_v24  ;;  %v5085_v26 = vadd.f32 %v11148_v63, %v4829_v20  ;;  %v4831_v36 = vpop.f32.mrf.mxu1 }
 0x494   :  { %v4094_v60 = vpop.f32.mrf.mxu0 }
 0x495   :  { %v6477_v39 = vpack.c.bf16 %v5085_v26, %v5085_v26  ;;  %v4832_v46 = vadd.f32 %v4831_v36, %v4094_v60  ;;  %v7733_v30 = vpop.f32.mrf.mxu1 }
 0x496   :  { %v7477_v37 = vpop.f32.mrf.mxu0 }
 0x497   :  { %5712 = vst.msk [vmem:[%s11681_s6 + $0x150] sm:$0xf] %vm5627_vm5, %v6477_v39  ;;  %v5086_v5 = vadd.f32 %v11148_v63, %v4832_v46  ;;  %v4836_v19 = vpop.f32.mrf.mxu1 }
 0x498   :  { %v4099_v8 = vpop.f32.mrf.mxu0 }
 0x499   :  { %v6478_v61 = vpack.c.bf16 %v5086_v5, %v5086_v5  ;;  %v4837_v52 = vadd.f32 %v4836_v19, %v4099_v8  ;;  %v7736_v31 = vpop.f32.mrf.mxu1 }
 0x49a   :  { %v7480_v17 = vpop.f32.mrf.mxu0 }
 0x49b   :  { %5713 = vst.msk [vmem:[%s11681_s6 + $0x154] sm:$0xf] %vm5627_vm5, %v6478_v61  ;;  %v5087_v42 = vadd.f32 %v11148_v63, %v4837_v52  ;;  %v4839_v3 = vpop.f32.mrf.mxu1 }
 0x49c   :  { %v4102_v59 = vpop.f32.mrf.mxu0 }
 0x49d   :  { %v6479_v12 = vpack.c.bf16 %v5087_v42, %v5087_v42  ;;  %v4840_v23 = vadd.f32 %v4839_v3, %v4102_v59  ;;  %v7737_v15 = vpop.f32.mrf.mxu1 }
 0x49e   :  { %v7481_v21 = vpop.f32.mrf.mxu0 }
 0x49f   :  { %5714 = vst.msk [vmem:[%s11681_s6 + $0x158] sm:$0xf] %vm5627_vm5, %v6479_v12  ;;  %v5088_v6 = vadd.f32 %v11148_v63, %v4840_v23  ;;  %v4844_v54 = vpop.f32.mrf.mxu1 }
 0x4a0   :  { %v4107_v48 = vpop.f32.mrf.mxu0 }
 0x4a1   :  { %v6480_v34 = vpack.c.bf16 %v5088_v6, %v5088_v6  ;;  %v4845_v62 = vadd.f32 %v4844_v54, %v4107_v48  ;;  %v7740_v14 = vpop.f32.mrf.mxu1 }
 0x4a2   :  { %v7484_v13 = vpop.f32.mrf.mxu0 }
 0x4a3   :  { %5715 = vst.msk [vmem:[%s11681_s6 + $0x15c] sm:$0xf] %vm5627_vm5, %v6480_v34  ;;  %v5089_v2 = vadd.f32 %v11148_v63, %v4845_v62  ;;  %v4847_v32 = vpop.f32.mrf.mxu1 }
 0x4a4   :  { %v4110_v22 = vpop.f32.mrf.mxu0 }
 0x4a5   :  { %v6481_v56 = vpack.c.bf16 %v5089_v2, %v5089_v2  ;;  %v4848_v41 = vadd.f32 %v4847_v32, %v4110_v22  ;;  %v7741_v18 = vpop.f32.mrf.mxu1 }
 0x4a6   :  { %v7485_v51 = vpop.f32.mrf.mxu0 }
 0x4a7   :  { %5716 = vst.msk [vmem:[%s11681_s6 + $0x160] sm:$0xf] %vm5627_vm5, %v6481_v56  ;;  %v5090_v58 = vadd.f32 %v11148_v63, %v4848_v41  ;;  %v4852_v43 = vpop.f32.mrf.mxu1 }
 0x4a8   :  { %v4115_v40 = vpop.f32.mrf.mxu0 }
 0x4a9   :  { %v6482_v49 = vpack.c.bf16 %v5090_v58, %v5090_v58  ;;  %v4853_v11 = vadd.f32 %v4852_v43, %v4115_v40  ;;  %v7744_v33 = vpop.f32.mrf.mxu1 }
 0x4aa   :  { %v7488_v16 = vpop.f32.mrf.mxu0 }
 0x4ab   :  { %5717 = vst.msk [vmem:[%s11681_s6 + $0x164] sm:$0xf] %vm5627_vm5, %v6482_v49  ;;  %v5091_v57 = vadd.f32 %v11148_v63, %v4853_v11  ;;  %v4855_v1 = vpop.f32.mrf.mxu1 }
 0x4ac   :  { %v4118_v47 = vpop.f32.mrf.mxu0 }
 0x4ad   :  { %v6483_v35 = vpack.c.bf16 %v5091_v57, %v5091_v57  ;;  %v4856_v45 = vadd.f32 %v4855_v1, %v4118_v47  ;;  %v7745_v53 = vpop.f32.mrf.mxu1 }
 0x4ae   :  { %v7489_v25 = vpop.f32.mrf.mxu0 }
 0x4af   :  { %5718 = vst.msk [vmem:[%s11681_s6 + $0x168] sm:$0xf] %vm5627_vm5, %v6483_v35  ;;  %v5092_v4 = vadd.f32 %v11148_v63, %v4856_v45  ;;  %v4860_v0 = vpop.f32.mrf.mxu1 }
 0x4b0   :  { %v4123_v29 = vpop.f32.mrf.mxu0 }
 0x4b1   :  { %v6484_v50 = vpack.c.bf16 %v5092_v4, %v5092_v4  ;;  %v4861_v28 = vadd.f32 %v4860_v0, %v4123_v29  ;;  %v7748_v7 = vpop.f32.mrf.mxu1 }
 0x4b2   :  { %v7492_v55 = vpop.f32.mrf.mxu0 }
 0x4b3   :  { %5719 = vst.msk [vmem:[%s11681_s6 + $0x16c] sm:$0xf] %vm5627_vm5, %v6484_v50  ;;  %v5093_v10 = vadd.f32 %v11148_v63, %v4861_v28  ;;  %v4863_v27 = vpop.f32.mrf.mxu1 }
 0x4b4   :  { %v4126_v44 = vpop.f32.mrf.mxu0 }
 0x4b5   :  { %v6485_v24 = vpack.c.bf16 %v5093_v10, %v5093_v10  ;;  %v4864_v20 = vadd.f32 %v4863_v27, %v4126_v44  ;;  %v7749_v9 = vpop.f32.mrf.mxu1 }
 0x4b6   :  { %v7493_v38 = vpop.f32.mrf.mxu0 }
 0x4b7   :  { %5720 = vst.msk [vmem:[%s11681_s6 + $0x170] sm:$0xf] %vm5627_vm5, %v6485_v24  ;;  %v5094_v26 = vadd.f32 %v11148_v63, %v4864_v20  ;;  %v4868_v36 = vpop.f32.mrf.mxu1 }
 0x4b8   :  { %v4131_v60 = vpop.f32.mrf.mxu0 }
 0x4b9   :  { %v6486_v39 = vpack.c.bf16 %v5094_v26, %v5094_v26  ;;  %v4869_v46 = vadd.f32 %v4868_v36, %v4131_v60  ;;  %v7752_v30 = vpop.f32.mrf.mxu1 }
 0x4ba   :  { %v7496_v37 = vpop.f32.mrf.mxu0 }
 0x4bb   :  { %5721 = vst.msk [vmem:[%s11681_s6 + $0x174] sm:$0xf] %vm5627_vm5, %v6486_v39  ;;  %v5095_v5 = vadd.f32 %v11148_v63, %v4869_v46  ;;  %v4871_v19 = vpop.f32.mrf.mxu1 }
 0x4bc   :  { %v4134_v8 = vpop.f32.mrf.mxu0 }
 0x4bd   :  { %v6487_v61 = vpack.c.bf16 %v5095_v5, %v5095_v5  ;;  %v4872_v52 = vadd.f32 %v4871_v19, %v4134_v8  ;;  %v7753_v31 = vpop.f32.mrf.mxu1 }
 0x4be   :  { %v7497_v17 = vpop.f32.mrf.mxu0 }
 0x4bf   :  { %5722 = vst.msk [vmem:[%s11681_s6 + $0x178] sm:$0xf] %vm5627_vm5, %v6487_v61  ;;  %v5096_v42 = vadd.f32 %v11148_v63, %v4872_v52  ;;  %v4876_v3 = vpop.f32.mrf.mxu1 }
 0x4c0   :  { %v4139_v59 = vpop.f32.mrf.mxu0 }
 0x4c1   :  { %v6488_v12 = vpack.c.bf16 %v5096_v42, %v5096_v42  ;;  %v4877_v23 = vadd.f32 %v4876_v3, %v4139_v59  ;;  %v7756_v15 = vpop.f32.mrf.mxu1 }
 0x4c2   :  { %v7500_v21 = vpop.f32.mrf.mxu0 }
 0x4c3   :  { %5723 = vst.msk [vmem:[%s11681_s6 + $0x17c] sm:$0xf] %vm5627_vm5, %v6488_v12  ;;  %v5097_v6 = vadd.f32 %v11148_v63, %v4877_v23  ;;  %v4879_v54 = vpop.f32.mrf.mxu1 }
 0x4c4   :  { %v4142_v48 = vpop.f32.mrf.mxu0 }
 0x4c5   :  { %v6489_v34 = vpack.c.bf16 %v5097_v6, %v5097_v6  ;;  %v4880_v62 = vadd.f32 %v4879_v54, %v4142_v48  ;;  %v7757_v14 = vpop.f32.mrf.mxu1 }
 0x4c6   :  { %v7501_v13 = vpop.f32.mrf.mxu0 }
 0x4c7   :  { %5724 = vst.msk [vmem:[%s11681_s6 + $0x180] sm:$0xf] %vm5627_vm5, %v6489_v34  ;;  %v5098_v2 = vadd.f32 %v11148_v63, %v4880_v62  ;;  %v4884_v32 = vpop.f32.mrf.mxu1 }
 0x4c8   :  { %v4147_v22 = vpop.f32.mrf.mxu0 }
 0x4c9   :  { %v6490_v56 = vpack.c.bf16 %v5098_v2, %v5098_v2  ;;  %v4885_v41 = vadd.f32 %v4884_v32, %v4147_v22  ;;  %v7760_v18 = vpop.f32.mrf.mxu1 }
 0x4ca   :  { %v7504_v51 = vpop.f32.mrf.mxu0 }
 0x4cb   :  { %5725 = vst.msk [vmem:[%s11681_s6 + $0x184] sm:$0xf] %vm5627_vm5, %v6490_v56  ;;  %v5099_v58 = vadd.f32 %v11148_v63, %v4885_v41  ;;  %v4887_v43 = vpop.f32.mrf.mxu1 }
 0x4cc   :  { %v4150_v40 = vpop.f32.mrf.mxu0 }
 0x4cd   :  { %v6491_v49 = vpack.c.bf16 %v5099_v58, %v5099_v58  ;;  %v4888_v11 = vadd.f32 %v4887_v43, %v4150_v40  ;;  %v7761_v33 = vpop.f32.mrf.mxu1 }
 0x4ce   :  { %v7505_v16 = vpop.f32.mrf.mxu0 }
 0x4cf   :  { %5726 = vst.msk [vmem:[%s11681_s6 + $0x188] sm:$0xf] %vm5627_vm5, %v6491_v49  ;;  %v5100_v57 = vadd.f32 %v11148_v63, %v4888_v11  ;;  %v4892_v1 = vpop.f32.mrf.mxu1 }
 0x4d0   :  { %v4155_v47 = vpop.f32.mrf.mxu0 }
 0x4d1   :  { %v6492_v35 = vpack.c.bf16 %v5100_v57, %v5100_v57  ;;  %v4893_v45 = vadd.f32 %v4892_v1, %v4155_v47  ;;  %v7764_v53 = vpop.f32.mrf.mxu1 }
 0x4d2   :  { %v7508_v25 = vpop.f32.mrf.mxu0 }
 0x4d3   :  { %5727 = vst.msk [vmem:[%s11681_s6 + $0x18c] sm:$0xf] %vm5627_vm5, %v6492_v35  ;;  %v5101_v4 = vadd.f32 %v11148_v63, %v4893_v45  ;;  %v4895_v0 = vpop.f32.mrf.mxu1 }
 0x4d4   :  { %v4158_v29 = vpop.f32.mrf.mxu0 }
 0x4d5   :  { %v6493_v50 = vpack.c.bf16 %v5101_v4, %v5101_v4  ;;  %v4896_v28 = vadd.f32 %v4895_v0, %v4158_v29  ;;  %v7765_v7 = vpop.f32.mrf.mxu1  ;;  %v11593_v4 = vld [vmem:[%s11680_s5] ss:$0 sm:$0xff] }
 0x4d6   :  { %v7509_v55 = vpop.f32.mrf.mxu0 }
 0x4d7   :  { %5728 = vst.msk [vmem:[%s11681_s6 + $0x190] sm:$0xf] %vm5627_vm5, %v6493_v50  ;;  %v5102_v10 = vadd.f32 %v11148_v63, %v4896_v28  ;;  %v4900_v27 = vpop.f32.mrf.mxu1 }
 0x4d8   :  { %v4163_v44 = vpop.f32.mrf.mxu0 }
 0x4d9   :  { %v6494_v24 = vpack.c.bf16 %v5102_v10, %v5102_v10  ;;  %v4901_v20 = vadd.f32 %v4900_v27, %v4163_v44  ;;  %v7768_v9 = vpop.f32.mrf.mxu1 }
 0x4da   :  { %v7512_v38 = vpop.f32.mrf.mxu0 }
 0x4db   :  { %5729 = vst.msk [vmem:[%s11681_s6 + $0x194] sm:$0xf] %vm5627_vm5, %v6494_v24  ;;  %v5103_v26 = vadd.f32 %v11148_v63, %v4901_v20  ;;  %v4903_v36 = vpop.f32.mrf.mxu1 }
 0x4dc   :  { %v4166_v60 = vpop.f32.mrf.mxu0 }
 0x4dd   :  { %v6495_v39 = vpack.c.bf16 %v5103_v26, %v5103_v26  ;;  %v4904_v46 = vadd.f32 %v4903_v36, %v4166_v60  ;;  %v7769_v30 = vpop.f32.mrf.mxu1 }
 0x4de   :  { %v7513_v37 = vpop.f32.mrf.mxu0 }
 0x4df   :  { %5730 = vst.msk [vmem:[%s11681_s6 + $0x198] sm:$0xf] %vm5627_vm5, %v6495_v39  ;;  %v5104_v5 = vadd.f32 %v11148_v63, %v4904_v46  ;;  %v4908_v19 = vpop.f32.mrf.mxu1 }
 0x4e0   :  { %v4171_v8 = vpop.f32.mrf.mxu0 }
 0x4e1   :  { %v6496_v61 = vpack.c.bf16 %v5104_v5, %v5104_v5  ;;  %v4909_v52 = vadd.f32 %v4908_v19, %v4171_v8  ;;  %v7772_v31 = vpop.f32.mrf.mxu1 }
 0x4e2   :  { %v7516_v17 = vpop.f32.mrf.mxu0 }
 0x4e3   :  { %5731 = vst.msk [vmem:[%s11681_s6 + $0x19c] sm:$0xf] %vm5627_vm5, %v6496_v61  ;;  %v5105_v42 = vadd.f32 %v11148_v63, %v4909_v52  ;;  %v4911_v3 = vpop.f32.mrf.mxu1 }
 0x4e4   :  { %v4174_v59 = vpop.f32.mrf.mxu0 }
 0x4e5   :  { %v6497_v12 = vpack.c.bf16 %v5105_v42, %v5105_v42  ;;  %v4912_v23 = vadd.f32 %v4911_v3, %v4174_v59  ;;  %v7773_v15 = vpop.f32.mrf.mxu1 }
 0x4e6   :  { %v7517_v21 = vpop.f32.mrf.mxu0 }
 0x4e7   :  { %5732 = vst.msk [vmem:[%s11681_s6 + $0x1a0] sm:$0xf] %vm5627_vm5, %v6497_v12  ;;  %v5106_v6 = vadd.f32 %v11148_v63, %v4912_v23  ;;  %v4916_v54 = vpop.f32.mrf.mxu1 }
 0x4e8   :  { %v4179_v48 = vpop.f32.mrf.mxu0 }
 0x4e9   :  { %v6498_v34 = vpack.c.bf16 %v5106_v6, %v5106_v6  ;;  %v4917_v62 = vadd.f32 %v4916_v54, %v4179_v48  ;;  %v7776_v14 = vpop.f32.mrf.mxu1 }
 0x4ea   :  { %v7520_v13 = vpop.f32.mrf.mxu0 }
 0x4eb   :  { %5733 = vst.msk [vmem:[%s11681_s6 + $0x1a4] sm:$0xf] %vm5627_vm5, %v6498_v34  ;;  %v5107_v2 = vadd.f32 %v11148_v63, %v4917_v62  ;;  %v4919_v32 = vpop.f32.mrf.mxu1 }
 0x4ec   :  { %v4182_v22 = vpop.f32.mrf.mxu0 }
 0x4ed   :  { %v6499_v56 = vpack.c.bf16 %v5107_v2, %v5107_v2  ;;  %v4920_v41 = vadd.f32 %v4919_v32, %v4182_v22  ;;  %v7777_v18 = vpop.f32.mrf.mxu1 }
 0x4ee   :  { %v7521_v51 = vpop.f32.mrf.mxu0 }
 0x4ef   :  { %5734 = vst.msk [vmem:[%s11681_s6 + $0x1a8] sm:$0xf] %vm5627_vm5, %v6499_v56  ;;  %v5108_v58 = vadd.f32 %v11148_v63, %v4920_v41  ;;  %v4924_v43 = vpop.f32.mrf.mxu1 }
 0x4f0   :  { %v4187_v40 = vpop.f32.mrf.mxu0 }
 0x4f1   :  { %v6500_v49 = vpack.c.bf16 %v5108_v58, %v5108_v58  ;;  %v4925_v11 = vadd.f32 %v4924_v43, %v4187_v40  ;;  %v7780_v33 = vpop.f32.mrf.mxu1 }
 0x4f2   :  { %v7524_v16 = vpop.f32.mrf.mxu0 }
 0x4f3   :  { %5735 = vst.msk [vmem:[%s11681_s6 + $0x1ac] sm:$0xf] %vm5627_vm5, %v6500_v49  ;;  %v5109_v57 = vadd.f32 %v11148_v63, %v4925_v11  ;;  %v4927_v1 = vpop.f32.mrf.mxu1 }
 0x4f4   :  { %v4190_v47 = vpop.f32.mrf.mxu0 }
 0x4f5   :  { %v6501_v35 = vpack.c.bf16 %v5109_v57, %v5109_v57  ;;  %v4928_v45 = vadd.f32 %v4927_v1, %v4190_v47  ;;  %v7781_v53 = vpop.f32.mrf.mxu1 }
 0x4f6   :  { %v7525_v25 = vpop.f32.mrf.mxu0 }
 0x4f7   :  { %5736 = vst.msk [vmem:[%s11681_s6 + $0x1b0] sm:$0xf] %vm5627_vm5, %v6501_v35  ;;  %v5110_v0 = vadd.f32 %v11593_v4, %v4928_v45  ;;  %v4932_v29 = vpop.f32.mrf.mxu1 }
 0x4f8   :  { %v4195_v63 = vpop.f32.mrf.mxu0 }
 0x4f9   :  { %v6502_v50 = vpack.c.bf16 %v5110_v0, %v5110_v0  ;;  %v4933_v28 = vadd.f32 %v4932_v29, %v4195_v63  ;;  %v7784_v7 = vpop.f32.mrf.mxu1 }
 0x4fa   :  { %v7528_v55 = vpop.f32.mrf.mxu0 }
 0x4fb   :  { %5737 = vst.msk [vmem:[%s11681_s6 + $0x1b4] sm:$0xf] %vm5627_vm5, %v6502_v50  ;;  %v5111_v10 = vadd.f32 %v11593_v4, %v4933_v28  ;;  %v4935_v27 = vpop.f32.mrf.mxu1 }
 0x4fc   :  { %v4198_v44 = vpop.f32.mrf.mxu0 }
 0x4fd   :  { %v6503_v24 = vpack.c.bf16 %v5111_v10, %v5111_v10  ;;  %v4936_v20 = vadd.f32 %v4935_v27, %v4198_v44  ;;  %v7785_v9 = vpop.f32.mrf.mxu1 }
 0x4fe   :  { %v7529_v38 = vpop.f32.mrf.mxu0 }
 0x4ff   :  { %5738 = vst.msk [vmem:[%s11681_s6 + $0x1b8] sm:$0xf] %vm5627_vm5, %v6503_v24  ;;  %v5112_v26 = vadd.f32 %v11593_v4, %v4936_v20  ;;  %v4940_v36 = vpop.f32.mrf.mxu1 }
 0x500   :  { %v4203_v60 = vpop.f32.mrf.mxu0 }
 0x501   :  { %v6504_v39 = vpack.c.bf16 %v5112_v26, %v5112_v26  ;;  %v4941_v46 = vadd.f32 %v4940_v36, %v4203_v60  ;;  %v7788_v30 = vpop.f32.mrf.mxu1 }
 0x502   :  { %v7532_v37 = vpop.f32.mrf.mxu0 }
 0x503   :  { %5739 = vst.msk [vmem:[%s11681_s6 + $0x1bc] sm:$0xf] %vm5627_vm5, %v6504_v39  ;;  %v5113_v5 = vadd.f32 %v11593_v4, %v4941_v46  ;;  %v4943_v19 = vpop.f32.mrf.mxu1 }
 0x504   :  { %v4206_v8 = vpop.f32.mrf.mxu0 }
 0x505   :  { %v6505_v61 = vpack.c.bf16 %v5113_v5, %v5113_v5  ;;  %v4944_v52 = vadd.f32 %v4943_v19, %v4206_v8  ;;  %v7789_v31 = vpop.f32.mrf.mxu1 }
 0x506   :  { %v7533_v17 = vpop.f32.mrf.mxu0 }
 0x507   :  { %5740 = vst.msk [vmem:[%s11681_s6 + $0x1c0] sm:$0xf] %vm5627_vm5, %v6505_v61  ;;  %v5114_v42 = vadd.f32 %v11593_v4, %v4944_v52  ;;  %v4948_v3 = vpop.f32.mrf.mxu1 }
 0x508   :  { %v4211_v59 = vpop.f32.mrf.mxu0 }
 0x509   :  { %v6506_v12 = vpack.c.bf16 %v5114_v42, %v5114_v42  ;;  %v4949_v23 = vadd.f32 %v4948_v3, %v4211_v59  ;;  %v7792_v15 = vpop.f32.mrf.mxu1 }
 0x50a   :  { %v7536_v21 = vpop.f32.mrf.mxu0 }
 0x50b   :  { %5741 = vst.msk [vmem:[%s11681_s6 + $0x1c4] sm:$0xf] %vm5627_vm5, %v6506_v12  ;;  %v5115_v6 = vadd.f32 %v11593_v4, %v4949_v23  ;;  %v4951_v54 = vpop.f32.mrf.mxu1 }
 0x50c   :  { %v4214_v48 = vpop.f32.mrf.mxu0 }
 0x50d   :  { %v6507_v34 = vpack.c.bf16 %v5115_v6, %v5115_v6  ;;  %v4952_v62 = vadd.f32 %v4951_v54, %v4214_v48  ;;  %v7793_v14 = vpop.f32.mrf.mxu1 }
 0x50e   :  { %v7537_v13 = vpop.f32.mrf.mxu0 }
 0x50f   :  { %5742 = vst.msk [vmem:[%s11681_s6 + $0x1c8] sm:$0xf] %vm5627_vm5, %v6507_v34  ;;  %v5116_v2 = vadd.f32 %v11593_v4, %v4952_v62  ;;  %v4956_v32 = vpop.f32.mrf.mxu1 }
 0x510   :  { %v4219_v22 = vpop.f32.mrf.mxu0 }
 0x511   :  { %v6508_v56 = vpack.c.bf16 %v5116_v2, %v5116_v2  ;;  %v4957_v41 = vadd.f32 %v4956_v32, %v4219_v22  ;;  %v7796_v18 = vpop.f32.mrf.mxu1 }
 0x512   :  { %v7540_v51 = vpop.f32.mrf.mxu0 }
 0x513   :  { %5743 = vst.msk [vmem:[%s11681_s6 + $0x1cc] sm:$0xf] %vm5627_vm5, %v6508_v56  ;;  %v5117_v58 = vadd.f32 %v11593_v4, %v4957_v41  ;;  %v4959_v43 = vpop.f32.mrf.mxu1 }
 0x514   :  { %v4222_v40 = vpop.f32.mrf.mxu0 }
 0x515   :  { %v6509_v49 = vpack.c.bf16 %v5117_v58, %v5117_v58  ;;  %v4960_v11 = vadd.f32 %v4959_v43, %v4222_v40  ;;  %v7797_v33 = vpop.f32.mrf.mxu1 }
 0x516   :  { %v7541_v16 = vpop.f32.mrf.mxu0 }
 0x517   :  { %5744 = vst.msk [vmem:[%s11681_s6 + $0x1d0] sm:$0xf] %vm5627_vm5, %v6509_v49  ;;  %v5118_v57 = vadd.f32 %v11593_v4, %v4960_v11  ;;  %v4964_v1 = vpop.f32.mrf.mxu1 }
 0x518   :  { %v4227_v47 = vpop.f32.mrf.mxu0 }
 0x519   :  { %v6510_v35 = vpack.c.bf16 %v5118_v57, %v5118_v57  ;;  %v4965_v45 = vadd.f32 %v4964_v1, %v4227_v47  ;;  %v7800_v53 = vpop.f32.mrf.mxu1 }
 0x51a   :  { %v7544_v25 = vpop.f32.mrf.mxu0 }
 0x51b   :  { %5745 = vst.msk [vmem:[%s11681_s6 + $0x1d4] sm:$0xf] %vm5627_vm5, %v6510_v35  ;;  %v5119_v0 = vadd.f32 %v11593_v4, %v4965_v45  ;;  %v4967_v29 = vpop.f32.mrf.mxu1 }
 0x51c   :  { %v4230_v63 = vpop.f32.mrf.mxu0 }
 0x51d   :  { %v6511_v50 = vpack.c.bf16 %v5119_v0, %v5119_v0  ;;  %v4968_v28 = vadd.f32 %v4967_v29, %v4230_v63  ;;  %v7801_v7 = vpop.f32.mrf.mxu1 }
 0x51e   :  { %v7545_v55 = vpop.f32.mrf.mxu0 }
 0x51f   :  { %5746 = vst.msk [vmem:[%s11681_s6 + $0x1d8] sm:$0xf] %vm5627_vm5, %v6511_v50  ;;  %v5120_v10 = vadd.f32 %v11593_v4, %v4968_v28  ;;  %v4972_v27 = vpop.f32.mrf.mxu1 }
 0x520   :  { %v4235_v44 = vpop.f32.mrf.mxu0 }
 0x521   :  { %v6512_v24 = vpack.c.bf16 %v5120_v10, %v5120_v10  ;;  %v4973_v20 = vadd.f32 %v4972_v27, %v4235_v44  ;;  %v7804_v9 = vpop.f32.mrf.mxu1 }
 0x522   :  { %v7548_v38 = vpop.f32.mrf.mxu0 }
 0x523   :  { %5747 = vst.msk [vmem:[%s11681_s6 + $0x1dc] sm:$0xf] %vm5627_vm5, %v6512_v24  ;;  %v5121_v26 = vadd.f32 %v11593_v4, %v4973_v20  ;;  %v4975_v36 = vpop.f32.mrf.mxu1 }
 0x524   :  { %v4238_v60 = vpop.f32.mrf.mxu0 }
 0x525   :  { %v6513_v39 = vpack.c.bf16 %v5121_v26, %v5121_v26  ;;  %v4976_v46 = vadd.f32 %v4975_v36, %v4238_v60  ;;  %v7805_v30 = vpop.f32.mrf.mxu1 }
 0x526   :  { %v7549_v37 = vpop.f32.mrf.mxu0 }
 0x527   :  { %5748 = vst.msk [vmem:[%s11681_s6 + $0x1e0] sm:$0xf] %vm5627_vm5, %v6513_v39  ;;  %v5122_v5 = vadd.f32 %v11593_v4, %v4976_v46  ;;  %v4980_v19 = vpop.f32.mrf.mxu1 }
 0x528   :  { %v4243_v8 = vpop.f32.mrf.mxu0 }
 0x529   :  { %v6514_v61 = vpack.c.bf16 %v5122_v5, %v5122_v5  ;;  %v4981_v52 = vadd.f32 %v4980_v19, %v4243_v8  ;;  %v7808_v31 = vpop.f32.mrf.mxu1 }
 0x52a   :  { %v7552_v17 = vpop.f32.mrf.mxu0 }
 0x52b   :  { %5749 = vst.msk [vmem:[%s11681_s6 + $0x1e4] sm:$0xf] %vm5627_vm5, %v6514_v61  ;;  %v5123_v42 = vadd.f32 %v11593_v4, %v4981_v52  ;;  %v4983_v3 = vpop.f32.mrf.mxu1 }
 0x52c   :  { %v4246_v59 = vpop.f32.mrf.mxu0 }
 0x52d   :  { %v6515_v12 = vpack.c.bf16 %v5123_v42, %v5123_v42  ;;  %v4984_v23 = vadd.f32 %v4983_v3, %v4246_v59  ;;  %v7809_v15 = vpop.f32.mrf.mxu1 }
 0x52e   :  { %v7553_v21 = vpop.f32.mrf.mxu0 }
 0x52f   :  { %5750 = vst.msk [vmem:[%s11681_s6 + $0x1e8] sm:$0xf] %vm5627_vm5, %v6515_v12  ;;  %v5124_v6 = vadd.f32 %v11593_v4, %v4984_v23  ;;  %v4988_v54 = vpop.f32.mrf.mxu1 }
 0x530   :  { %v4251_v48 = vpop.f32.mrf.mxu0 }
 0x531   :  { %v6516_v34 = vpack.c.bf16 %v5124_v6, %v5124_v6  ;;  %v4989_v62 = vadd.f32 %v4988_v54, %v4251_v48  ;;  %v7812_v14 = vpop.f32.mrf.mxu1 }
 0x532   :  { %v7556_v13 = vpop.f32.mrf.mxu0 }
 0x533   :  { %5751 = vst.msk [vmem:[%s11681_s6 + $0x1ec] sm:$0xf] %vm5627_vm5, %v6516_v34  ;;  %v5125_v2 = vadd.f32 %v11593_v4, %v4989_v62  ;;  %v4991_v32 = vpop.f32.mrf.mxu1 }
 0x534   :  { %v4254_v22 = vpop.f32.mrf.mxu0 }
 0x535   :  { %v6517_v56 = vpack.c.bf16 %v5125_v2, %v5125_v2  ;;  %v7813_v41 = vpop.f32.mrf.mxu1 }
 0x536   :  { %v7557_v18 = vpop.f32.mrf.mxu0 }
 0x537   :  { %5752 = vst.msk [vmem:[%s11681_s6 + $0x1f0] sm:$0xf] %vm5627_vm5, %v6517_v56 }

</bundles_post_ra>
